<compile_context>
chip_gen: v5e
topology: v5e:2x2
jax: 0.10.0
libtpu: 0.0.40
codegen_flags: <defaults>
</compile_context>

<pallas_src>
import functools
import math

import jax
import jax.numpy as jnp
from jax import lax
from jax.experimental import pallas as pl
from jax.experimental.pallas import tpu as pltpu

# ----------------------------- config (small, synthetic) -----------------------------
VOCAB_SPEECH = 256
VOCAB_TEXT = 96
HIDDEN = 64
NUM_HEADS = 4
HEAD_DIM = HIDDEN // NUM_HEADS
NUM_LAYERS = 2
FFN = 128
MAX_POS = 64
SPEECH_PAD_TOKEN = 0
USE_ROPE = False  # -> relative positional embeddings are used, as in the reference
NEG_INF = -1e30


# ----------------------------- shared math helpers -----------------------------
def _ln(x, g, b):
    """Layernorm over the last dim. x:(...,H), g,b:(1,H). f32 on the VPU."""
    mu = jnp.mean(x, axis=-1, keepdims=True)
    var = jnp.mean((x - mu) ** 2, axis=-1, keepdims=True)
    return (x - mu) * lax.rsqrt(var + 1e-5) * g + b


# ----------------------------- fully fused forward kernel -----------------------------
def _stp_kernel(x_ref, bias_ref,
                ln1_g_ref, ln1_b_ref, qkv_w_ref, qkv_b_ref, o_w_ref, o_b_ref,
                ln2_g_ref, ln2_b_ref, ff1_w_ref, ff1_b_ref, ff2_w_ref, ff2_b_ref,
                fln_g_ref, fln_b_ref, proj_w_ref, proj_b_ref, cls_w_ref, cls_b_ref,
                logits_ref, hidden_ref, *, num_layers, num_heads, head_dim):
    """All decoder layers + epilogue for one batch element, entirely in VMEM.

    x_ref:      (1, T, H) activations
    bias_ref:   (1, 1, T) additive key-padding bias (0 valid / -1e30 padded)
    layer refs: leading dim = layer index (stacked, VMEM-resident)
    logits_ref: (1, T, V)  hidden_ref: (1, T, H)
    """
    x = x_ref[0].astype(jnp.float32)                      # (T, H)
    T, H = x.shape
    key_bias = bias_ref[0]                                # (1, T), broadcasts over queries

    row = lax.broadcasted_iota(jnp.int32, (T, T), 0)
    col = lax.broadcasted_iota(jnp.int32, (T, T), 1)
    causal = col <= row                                   # (T, T), reused by every layer/head
    scale = jnp.float32(1.0 / math.sqrt(head_dim))

    for l in range(num_layers):                           # static unroll (tiny L)
        # ---- attention block (pre-LN) ----
        x2 = _ln(x, ln1_g_ref[l], ln1_b_ref[l])           # (T, H)
        qkv = jnp.dot(x2, qkv_w_ref[l],
                      preferred_element_type=jnp.float32) + qkv_b_ref[l]  # (T, 3H)
        o_w = o_w_ref[l]                                  # (H, H)

        # Per-head 2-D MXU dots (static unroll) avoid 3-D transposes; the
        # out-projection is accumulated per head so no head-concat is needed.
        attn = jnp.zeros((T, H), jnp.float32)
        for h in range(num_heads):
            lo, hi = h * head_dim, (h + 1) * head_dim
            qh = qkv[:, lo:hi]                            # (T, hd)
            kh = qkv[:, H + lo:H + hi]                    # (T, hd)
            vh = qkv[:, 2 * H + lo:2 * H + hi]            # (T, hd)
            s = jnp.dot(qh, kh.T, preferred_element_type=jnp.float32) * scale  # (T, T)
            s = jnp.where(causal, s, jnp.float32(NEG_INF)) + key_bias
            m = jnp.max(s, axis=-1, keepdims=True)
            p = jnp.exp(s - m)
            denom = jnp.sum(p, axis=-1, keepdims=True)
            oh = jnp.dot(p, vh, preferred_element_type=jnp.float32)
            oh = oh * pl.reciprocal(denom, approx=True)   # EUP reciprocal, not a divide
            attn = attn + jnp.dot(oh, o_w[lo:hi, :], preferred_element_type=jnp.float32)

        x = x + attn + o_b_ref[l]

        # ---- FFN block (pre-LN) ----
        x2 = _ln(x, ln2_g_ref[l], ln2_b_ref[l])
        hmid = jnp.dot(x2, ff1_w_ref[l], preferred_element_type=jnp.float32) + ff1_b_ref[l]
        # TODO(synk): PyTorch's default GELU is exact (erf); tanh-approx kept for robust Mosaic lowering.
        hmid = jax.nn.gelu(hmid, approximate=True)
        x = x + jnp.dot(hmid, ff2_w_ref[l], preferred_element_type=jnp.float32) + ff2_b_ref[l]

    # ---- epilogue: final LN -> proj -> classifier (lane-dense 256-wide logits) ----
    x2 = _ln(x, fln_g_ref[...], fln_b_ref[...])
    hidden = jnp.dot(x2, proj_w_ref[...], preferred_element_type=jnp.float32) + proj_b_ref[...]
    logits = jnp.dot(hidden, cls_w_ref[...], preferred_element_type=jnp.float32) + cls_b_ref[...]
    hidden_ref[0] = hidden.astype(hidden_ref.dtype)
    logits_ref[0] = logits.astype(logits_ref.dtype)


def stp_decode_pallas(x, key_bias, params):
    """x: (B, T, H); key_bias: (B, 1, T) additive mask. One pallas_call total."""
    B, T, H = x.shape
    V = VOCAB_SPEECH
    d = params["dec"]

    kernel = functools.partial(_stp_kernel, num_layers=NUM_LAYERS,
                               num_heads=NUM_HEADS, head_dim=HEAD_DIM)

    def rep(arr):  # weight replicated across the batch grid -> stays VMEM-resident
        nd = arr.ndim
        return pl.BlockSpec(arr.shape, lambda b, _nd=nd: (0,) * _nd)

    weight_args = (
        d["ln1_g"], d["ln1_b"], d["qkv_w"], d["qkv_b"], d["o_w"], d["o_b"],
        d["ln2_g"], d["ln2_b"], d["ff1_w"], d["ff1_b"], d["ff2_w"], d["ff2_b"],
        params["final_ln_g"], params["final_ln_b"],
        params["proj_w"], params["proj_b"],
        params["cls_w"], params["cls_b"],
    )

    logits, hidden = pl.pallas_call(
        kernel,
        out_shape=(jax.ShapeDtypeStruct((B, T, V), jnp.float32),
                   jax.ShapeDtypeStruct((B, T, H), jnp.float32)),
        grid=(B,),
        in_specs=[pl.BlockSpec((1, T, H), lambda b: (b, 0, 0)),     # x
                  pl.BlockSpec((1, 1, T), lambda b: (b, 0, 0))]     # key-padding bias
                 + [rep(w) for w in weight_args],
        out_specs=(pl.BlockSpec((1, T, V), lambda b: (b, 0, 0)),
                   pl.BlockSpec((1, T, H), lambda b: (b, 0, 0))),
        compiler_params=pltpu.CompilerParams(dimension_semantics=("parallel",)),
    )(x, key_bias, *weight_args)
    return logits, hidden


# ----------------------------- parameter init (deterministic, synthetic) -----------------------------
def init_params(key):
    def nrm(k, shape, scale=0.02):
        return scale * jax.random.normal(k, shape, dtype=jnp.float32)

    keys = jax.random.split(key, 8 + NUM_LAYERS)
    p = {}
    # nn.Embedding(padding_idx=speech_pad_token) initializes that row to zero
    p["emb_speech"] = nrm(keys[0], (VOCAB_SPEECH, HIDDEN)).at[SPEECH_PAD_TOKEN].set(0.0)
    p["emb_text"] = nrm(keys[1], (VOCAB_TEXT, HIDDEN))
    # relative positional embeddings (padding_idx=0 -> zero row)
    p["pos_speech"] = nrm(keys[2], (MAX_POS + 1, HIDDEN)).at[0].set(0.0)
    p["pos_text"] = nrm(keys[3], (MAX_POS + 1, HIDDEN)).at[0].set(0.0)
    # proj: Linear(hidden, hidden); classifier: Linear(hidden, vocab_size_speech)
    p["proj_w"] = nrm(keys[4], (HIDDEN, HIDDEN))
    p["proj_b"] = jnp.zeros((1, HIDDEN), jnp.float32)
    p["cls_w"] = nrm(keys[5], (HIDDEN, VOCAB_SPEECH))
    p["cls_b"] = jnp.zeros((1, VOCAB_SPEECH), jnp.float32)
    p["final_ln_g"] = jnp.ones((1, HIDDEN), jnp.float32)
    p["final_ln_b"] = jnp.zeros((1, HIDDEN), jnp.float32)

    # per-layer weights stacked along a leading layer axis (VMEM-resident in-kernel)
    L, H, F = NUM_LAYERS, HIDDEN, FFN
    qkv_w, o_w, ff1_w, ff2_w = [], [], [], []
    for li in range(NUM_LAYERS):
        lk = jax.random.split(keys[8 + li], 4)
        qkv_w.append(nrm(lk[0], (H, 3 * H)))
        o_w.append(nrm(lk[1], (H, H)))
        ff1_w.append(nrm(lk[2], (H, F)))
        ff2_w.append(nrm(lk[3], (F, H)))
    p["dec"] = {
        "ln1_g": jnp.ones((L, 1, H), jnp.float32),
        "ln1_b": jnp.zeros((L, 1, H), jnp.float32),
        "qkv_w": jnp.stack(qkv_w),
        "qkv_b": jnp.zeros((L, 1, 3 * H), jnp.float32),
        "o_w": jnp.stack(o_w),
        "o_b": jnp.zeros((L, 1, H), jnp.float32),
        "ln2_g": jnp.ones((L, 1, H), jnp.float32),
        "ln2_b": jnp.zeros((L, 1, H), jnp.float32),
        "ff1_w": jnp.stack(ff1_w),
        "ff1_b": jnp.zeros((L, 1, F), jnp.float32),
        "ff2_w": jnp.stack(ff2_w),
        "ff2_b": jnp.zeros((L, 1, H), jnp.float32),
    }
    return p


# ----------------------------- model forward (gathers in plain JAX, hot path in Pallas) -----------------------------
def _position_ids(seq_len, lengths):
    # positions 1..len for valid tokens, 0 (padding_idx) for padded ones
    pos = jnp.arange(1, seq_len + 1, dtype=jnp.int32)[None, :]            # (1, S)
    valid = jnp.arange(seq_len, dtype=jnp.int32)[None, :] < lengths[:, None]
    return jnp.where(valid, pos, 0)                                       # (B, S)


def _key_padding_bias(t_text, t_speech, text_lengths, speech_lengths):
    """Additive (B, 1, T) bias over the concatenated [text; speech] sequence."""
    t_valid = jnp.arange(t_text, dtype=jnp.int32)[None, :] < text_lengths[:, None]
    s_valid = jnp.arange(t_speech, dtype=jnp.int32)[None, :] < speech_lengths[:, None]
    valid = jnp.concatenate([t_valid, s_valid], axis=1)                   # (B, T)
    bias = jnp.where(valid, 0.0, NEG_INF).astype(jnp.float32)
    return bias[:, None, :]                                               # (B, 1, T)


def stp_forward(params, text_tokens, speech_tokens, text_lengths, speech_lengths):
    """Returns (speech-vocab logits [B, T, V_speech], projected hidden states [B, T, H])."""
    B, Tt = text_tokens.shape
    _, Ts = speech_tokens.shape
    # embedding lookups (gather glue in plain JAX; no clean Pallas equivalent at this size)
    te = jnp.take(params["emb_text"], text_tokens, axis=0)                # (B, Tt, H)
    se = jnp.take(params["emb_speech"], speech_tokens, axis=0)            # (B, Ts, H)
    if not USE_ROPE:
        te = te + jnp.take(params["pos_text"], _position_ids(Tt, text_lengths), axis=0)
        se = se + jnp.take(params["pos_speech"], _position_ids(Ts, speech_lengths), axis=0)
    x = jnp.concatenate([te, se], axis=1)                                 # (B, T, H)

    key_bias = _key_padding_bias(Tt, Ts, text_lengths, speech_lengths)    # (B, 1, T)
    return stp_decode_pallas(x, key_bias, params)                         # ONE fused pallas_call


# ----------------------------- pure-JAX reference (for correctness check) -----------------------------
def _ref_forward(params, text_tokens, speech_tokens, text_lengths, speech_lengths):
    d = params["dec"]
    B, Tt = text_tokens.shape
    _, Ts = speech_tokens.shape
    te = jnp.take(params["emb_text"], text_tokens, axis=0)
    se = jnp.take(params["emb_speech"], speech_tokens, axis=0)
    te = te + jnp.take(params["pos_text"], _position_ids(Tt, text_lengths), axis=0)
    se = se + jnp.take(params["pos_speech"], _position_ids(Ts, speech_lengths), axis=0)
    x = jnp.concatenate([te, se], axis=1)                                 # (B, T, H)
    key_bias = _key_padding_bias(Tt, Ts, text_lengths, speech_lengths)    # (B, 1, T)

    B, T, H = x.shape
    causal = jnp.arange(T)[None, :] <= jnp.arange(T)[:, None]             # (T, T)
    scale = 1.0 / math.sqrt(HEAD_DIM)
    for l in range(NUM_LAYERS):
        x2 = _ln(x, d["ln1_g"][l], d["ln1_b"][l])
        qkv = x2 @ d["qkv_w"][l] + d["qkv_b"][l]
        q = qkv[..., :H].reshape(B, T, NUM_HEADS, HEAD_DIM)
        k = qkv[..., H:2 * H].reshape(B, T, NUM_HEADS, HEAD_DIM)
        v = qkv[..., 2 * H:].reshape(B, T, NUM_HEADS, HEAD_DIM)
        s = jnp.einsum('bqhd,bkhd->bhqk', q, k) * scale
        s = jnp.where(causal[None, None], s, NEG_INF) + key_bias[:, None, :, :]
        p = jax.nn.softmax(s, axis=-1)
        o = jnp.einsum('bhqk,bkhd->bqhd', p, v).reshape(B, T, H)
        x = x + o @ d["o_w"][l] + d["o_b"][l]
        x2 = _ln(x, d["ln2_g"][l], d["ln2_b"][l])
        hmid = jax.nn.gelu(x2 @ d["ff1_w"][l] + d["ff1_b"][l], approximate=True)
        x = x + hmid @ d["ff2_w"][l] + d["ff2_b"][l]
    x2 = _ln(x, params["final_ln_g"], params["final_ln_b"])
    hidden = x2 @ params["proj_w"] + params["proj_b"]
    logits = hidden @ params["cls_w"] + params["cls_b"]
    return logits, hidden


# ----------------------------- demo -----------------------------
if __name__ == "__main__":
    key = jax.random.PRNGKey(0)
    pk, k1, k2 = jax.random.split(key, 3)
    params = init_params(pk)

    B, T_TEXT, T_SPEECH = 2, 8, 8
    text_tokens = jax.random.randint(k1, (B, T_TEXT), 0, VOCAB_TEXT, dtype=jnp.int32)
    speech_tokens = jax.random.randint(k2, (B, T_SPEECH), 1, VOCAB_SPEECH, dtype=jnp.int32)
    text_lengths = jnp.array([8, 6], dtype=jnp.int32)
    speech_lengths = jnp.array([8, 5], dtype=jnp.int32)

    fwd = jax.jit(stp_forward)
    logits, hidden = fwd(params, text_tokens, speech_tokens, text_lengths, speech_lengths)
    jax.block_until_ready((logits, hidden))

    ref_logits, ref_hidden = _ref_forward(params, text_tokens, speech_tokens,
                                          text_lengths, speech_lengths)

    assert logits.shape == (B, T_TEXT + T_SPEECH, VOCAB_SPEECH)
    assert hidden.shape == (B, T_TEXT + T_SPEECH, HIDDEN)
    assert bool(jnp.all(jnp.isfinite(logits)))
    assert bool(jnp.all(jnp.isfinite(hidden)))
    # loose tolerance: kernel uses the EUP approx reciprocal in softmax
    assert float(jnp.max(jnp.abs(logits - ref_logits))) < 2e-2
    assert float(jnp.max(jnp.abs(hidden - ref_hidden))) < 2e-2
    print("KERNEL_OK")
</pallas_src>

<mosaic_0001>
module attributes {stable_mosaic.version = 11 : i64} {
  func.func @_stp_kernel(%arg0: i32, %arg1: memref<1x16x64xf32, #tpu.memory_space<vmem>>, %arg2: memref<1x1x16xf32, #tpu.memory_space<vmem>>, %arg3: memref<2x1x64xf32, #tpu.memory_space<vmem>>, %arg4: memref<2x1x64xf32, #tpu.memory_space<vmem>>, %arg5: memref<2x64x192xf32, #tpu.memory_space<vmem>>, %arg6: memref<2x1x192xf32, #tpu.memory_space<vmem>>, %arg7: memref<2x64x64xf32, #tpu.memory_space<vmem>>, %arg8: memref<2x1x64xf32, #tpu.memory_space<vmem>>, %arg9: memref<2x1x64xf32, #tpu.memory_space<vmem>>, %arg10: memref<2x1x64xf32, #tpu.memory_space<vmem>>, %arg11: memref<2x64x128xf32, #tpu.memory_space<vmem>>, %arg12: memref<2x1x128xf32, #tpu.memory_space<vmem>>, %arg13: memref<2x128x64xf32, #tpu.memory_space<vmem>>, %arg14: memref<2x1x64xf32, #tpu.memory_space<vmem>>, %arg15: memref<1x64xf32, #tpu.memory_space<vmem>>, %arg16: memref<1x64xf32, #tpu.memory_space<vmem>>, %arg17: memref<64x64xf32, #tpu.memory_space<vmem>>, %arg18: memref<1x64xf32, #tpu.memory_space<vmem>>, %arg19: memref<64x256xf32, #tpu.memory_space<vmem>>, %arg20: memref<1x256xf32, #tpu.memory_space<vmem>>, %arg21: memref<1x16x256xf32, #tpu.memory_space<vmem>>, %arg22: memref<1x16x64xf32, #tpu.memory_space<vmem>>) attributes {dimension_semantics = [#tpu.dimension_semantics<parallel>], iteration_bounds = array<i64: 2>, scalar_prefetch = 0 : i64, scratch_operands = 0 : i64, tpu.core_type = #tpu.core_type<tc>, window_params = [{transform_indices = @transform_0, window_bounds = array<i64: 1, 16, 64>}, {transform_indices = @transform_1, window_bounds = array<i64: 1, 1, 16>}, {pipeline_mode = #tpu.pipeline_mode<synchronous>, transform_indices = @transform_2, window_bounds = array<i64: 2, 1, 64>}, {pipeline_mode = #tpu.pipeline_mode<synchronous>, transform_indices = @transform_3, window_bounds = array<i64: 2, 1, 64>}, {pipeline_mode = #tpu.pipeline_mode<synchronous>, transform_indices = @transform_4, window_bounds = array<i64: 2, 64, 192>}, {pipeline_mode = #tpu.pipeline_mode<synchronous>, transform_indices = @transform_5, window_bounds = array<i64: 2, 1, 192>}, {pipeline_mode = #tpu.pipeline_mode<synchronous>, transform_indices = @transform_6, window_bounds = array<i64: 2, 64, 64>}, {pipeline_mode = #tpu.pipeline_mode<synchronous>, transform_indices = @transform_7, window_bounds = array<i64: 2, 1, 64>}, {pipeline_mode = #tpu.pipeline_mode<synchronous>, transform_indices = @transform_8, window_bounds = array<i64: 2, 1, 64>}, {pipeline_mode = #tpu.pipeline_mode<synchronous>, transform_indices = @transform_9, window_bounds = array<i64: 2, 1, 64>}, {pipeline_mode = #tpu.pipeline_mode<synchronous>, transform_indices = @transform_10, window_bounds = array<i64: 2, 64, 128>}, {pipeline_mode = #tpu.pipeline_mode<synchronous>, transform_indices = @transform_11, window_bounds = array<i64: 2, 1, 128>}, {pipeline_mode = #tpu.pipeline_mode<synchronous>, transform_indices = @transform_12, window_bounds = array<i64: 2, 128, 64>}, {pipeline_mode = #tpu.pipeline_mode<synchronous>, transform_indices = @transform_13, window_bounds = array<i64: 2, 1, 64>}, {pipeline_mode = #tpu.pipeline_mode<synchronous>, transform_indices = @transform_14, window_bounds = array<i64: 1, 64>}, {pipeline_mode = #tpu.pipeline_mode<synchronous>, transform_indices = @transform_15, window_bounds = array<i64: 1, 64>}, {pipeline_mode = #tpu.pipeline_mode<synchronous>, transform_indices = @transform_16, window_bounds = array<i64: 64, 64>}, {pipeline_mode = #tpu.pipeline_mode<synchronous>, transform_indices = @transform_17, window_bounds = array<i64: 1, 64>}, {pipeline_mode = #tpu.pipeline_mode<synchronous>, transform_indices = @transform_18, window_bounds = array<i64: 64, 256>}, {pipeline_mode = #tpu.pipeline_mode<synchronous>, transform_indices = @transform_19, window_bounds = array<i64: 1, 256>}, {transform_indices = @transform_20, window_bounds = array<i64: 1, 16, 256>}, {transform_indices = @transform_21, window_bounds = array<i64: 1, 16, 64>}]} {
    %c0 = arith.constant 0 : index
    %c0_0 = arith.constant 0 : index
    %c0_1 = arith.constant 0 : index
    %0 = vector.load %arg1[%c0, %c0_0, %c0_1] : memref<1x16x64xf32, #tpu.memory_space<vmem>>, vector<1x16x64xf32>
    %1 = vector.shape_cast %0 : vector<1x16x64xf32> to vector<16x64xf32>
    %c0_2 = arith.constant 0 : index
    %c0_3 = arith.constant 0 : index
    %c0_4 = arith.constant 0 : index
    %2 = vector.load %arg2[%c0_2, %c0_3, %c0_4] : memref<1x1x16xf32, #tpu.memory_space<vmem>>, vector<1x1x16xf32>
    %3 = vector.shape_cast %2 : vector<1x1x16xf32> to vector<1x16xf32>
    %4 = tpu.iota {dimensions = array<i32: 0>} : vector<16x16xi32>
    %5 = tpu.iota {dimensions = array<i32: 1>} : vector<16x16xi32>
    %6 = arith.cmpi sle, %5, %4 : vector<16x16xi32>
    %c0_5 = arith.constant 0 : index
    %c0_6 = arith.constant 0 : index
    %c0_7 = arith.constant 0 : index
    %7 = vector.load %arg3[%c0_5, %c0_6, %c0_7] : memref<2x1x64xf32, #tpu.memory_space<vmem>>, vector<1x1x64xf32>
    %8 = vector.shape_cast %7 : vector<1x1x64xf32> to vector<1x64xf32>
    %c0_8 = arith.constant 0 : index
    %c0_9 = arith.constant 0 : index
    %c0_10 = arith.constant 0 : index
    %9 = vector.load %arg4[%c0_8, %c0_9, %c0_10] : memref<2x1x64xf32, #tpu.memory_space<vmem>>, vector<1x1x64xf32>
    %10 = vector.shape_cast %9 : vector<1x1x64xf32> to vector<1x64xf32>
    %cst = arith.constant dense<0.000000e+00> : vector<16xf32>
    %11 = vector.multi_reduction <add>, %1, %cst [1] : vector<16x64xf32> to vector<16xf32>
    %12 = vector.shape_cast %11 : vector<16xf32> to vector<16x1xf32>
    %cst_11 = arith.constant 6.400000e+01 : f32
    %13 = vector.broadcast %cst_11 : f32 to vector<16x1xf32>
    %14 = arith.divf %12, %13 : vector<16x1xf32>
    %15 = vector.broadcast %14 : vector<16x1xf32> to vector<16x64xf32>
    %16 = arith.subf %1, %15 : vector<16x64xf32>
    %17 = arith.mulf %16, %16 : vector<16x64xf32>
    %cst_12 = arith.constant dense<0.000000e+00> : vector<16xf32>
    %18 = vector.multi_reduction <add>, %17, %cst_12 [1] : vector<16x64xf32> to vector<16xf32>
    %19 = vector.shape_cast %18 : vector<16xf32> to vector<16x1xf32>
    %cst_13 = arith.constant 6.400000e+01 : f32
    %20 = vector.broadcast %cst_13 : f32 to vector<16x1xf32>
    %21 = arith.divf %19, %20 : vector<16x1xf32>
    %22 = vector.broadcast %14 : vector<16x1xf32> to vector<16x64xf32>
    %23 = arith.subf %1, %22 : vector<16x64xf32>
    %cst_14 = arith.constant 9.99999974E-6 : f32
    %24 = vector.broadcast %cst_14 : f32 to vector<16x1xf32>
    %25 = arith.addf %21, %24 : vector<16x1xf32>
    %26 = math.rsqrt %25 : vector<16x1xf32>
    %27 = vector.broadcast %26 : vector<16x1xf32> to vector<16x64xf32>
    %28 = arith.mulf %23, %27 : vector<16x64xf32>
    %29 = vector.broadcast %8 : vector<1x64xf32> to vector<16x64xf32>
    %30 = arith.mulf %28, %29 : vector<16x64xf32>
    %31 = vector.broadcast %10 : vector<1x64xf32> to vector<16x64xf32>
    %32 = arith.addf %30, %31 : vector<16x64xf32>
    %c0_15 = arith.constant 0 : index
    %c0_16 = arith.constant 0 : index
    %c0_17 = arith.constant 0 : index
    %33 = vector.load %arg5[%c0_15, %c0_16, %c0_17] : memref<2x64x192xf32, #tpu.memory_space<vmem>>, vector<1x64x192xf32>
    %34 = vector.shape_cast %33 : vector<1x64x192xf32> to vector<64x192xf32>
    %cst_18 = arith.constant dense<0.000000e+00> : vector<16x192xf32>
    %35 = tpu.matmul %32, %34, %cst_18 {dimension_numbers = #tpu.dot_dimension_numbers<[1], [0], [0], [1], [0, 0, 1, 1], [], []>} : vector<16x64xf32>, vector<64x192xf32>, vector<16x192xf32> -> vector<16x192xf32>
    %c0_19 = arith.constant 0 : index
    %c0_20 = arith.constant 0 : index
    %c0_21 = arith.constant 0 : index
    %36 = vector.load %arg6[%c0_19, %c0_20, %c0_21] : memref<2x1x192xf32, #tpu.memory_space<vmem>>, vector<1x1x192xf32>
    %37 = vector.shape_cast %36 : vector<1x1x192xf32> to vector<1x192xf32>
    %38 = vector.broadcast %37 : vector<1x192xf32> to vector<16x192xf32>
    %39 = arith.addf %35, %38 : vector<16x192xf32>
    %c0_22 = arith.constant 0 : index
    %c0_23 = arith.constant 0 : index
    %c0_24 = arith.constant 0 : index
    %40 = vector.load %arg7[%c0_22, %c0_23, %c0_24] : memref<2x64x64xf32, #tpu.memory_space<vmem>>, vector<1x64x64xf32>
    %41 = vector.shape_cast %40 : vector<1x64x64xf32> to vector<64x64xf32>
    %cst_25 = arith.constant 0.000000e+00 : f32
    %42 = vector.broadcast %cst_25 : f32 to vector<16x64xf32>
    %43 = vector.extract_strided_slice %39 {offsets = [0, 0], sizes = [16, 16], strides = [1, 1]} : vector<16x192xf32> to vector<16x16xf32>
    %44 = vector.extract_strided_slice %39 {offsets = [0, 64], sizes = [16, 16], strides = [1, 1]} : vector<16x192xf32> to vector<16x16xf32>
    %45 = vector.extract_strided_slice %39 {offsets = [0, 128], sizes = [16, 16], strides = [1, 1]} : vector<16x192xf32> to vector<16x16xf32>
    %46 = tpu.transpose %44, [1, 0] : vector<16x16xf32> -> vector<16x16xf32>
    %cst_26 = arith.constant dense<0.000000e+00> : vector<16x16xf32>
    %47 = tpu.matmul %43, %46, %cst_26 {dimension_numbers = #tpu.dot_dimension_numbers<[1], [0], [0], [1], [0, 0, 1, 1], [], []>} : vector<16x16xf32>, vector<16x16xf32>, vector<16x16xf32> -> vector<16x16xf32>
    %cst_27 = arith.constant 2.500000e-01 : f32
    %48 = vector.broadcast %cst_27 : f32 to vector<16x16xf32>
    %49 = arith.mulf %47, %48 : vector<16x16xf32>
    %cst_28 = arith.constant -1.000000e+30 : f32
    %50 = vector.broadcast %cst_28 : f32 to vector<16x16xf32>
    %51 = arith.select %6, %49, %50 : vector<16x16xi1>, vector<16x16xf32>
    %52 = vector.broadcast %3 : vector<1x16xf32> to vector<16x16xf32>
    %53 = arith.addf %51, %52 : vector<16x16xf32>
    %cst_29 = arith.constant dense<0xFF800000> : vector<16xf32>
    %54 = vector.multi_reduction <maximumf>, %53, %cst_29 [1] : vector<16x16xf32> to vector<16xf32>
    %55 = vector.shape_cast %54 : vector<16xf32> to vector<16x1xf32>
    %56 = vector.broadcast %55 : vector<16x1xf32> to vector<16x16xf32>
    %57 = arith.subf %53, %56 : vector<16x16xf32>
    %58 = math.exp %57 : vector<16x16xf32>
    %cst_30 = arith.constant dense<0.000000e+00> : vector<16xf32>
    %59 = vector.multi_reduction <add>, %58, %cst_30 [1] : vector<16x16xf32> to vector<16xf32>
    %60 = vector.shape_cast %59 : vector<16xf32> to vector<16x1xf32>
    %cst_31 = arith.constant dense<0.000000e+00> : vector<16x16xf32>
    %61 = tpu.matmul %58, %45, %cst_31 {dimension_numbers = #tpu.dot_dimension_numbers<[1], [0], [0], [1], [0, 0, 1, 1], [], []>} : vector<16x16xf32>, vector<16x16xf32>, vector<16x16xf32> -> vector<16x16xf32>
    %62 = tpu.reciprocal %60 {approx = true} : vector<16x1xf32> -> vector<16x1xf32>
    %63 = vector.broadcast %62 : vector<16x1xf32> to vector<16x16xf32>
    %64 = arith.mulf %61, %63 : vector<16x16xf32>
    %65 = vector.extract_strided_slice %41 {offsets = [0, 0], sizes = [16, 64], strides = [1, 1]} : vector<64x64xf32> to vector<16x64xf32>
    %cst_32 = arith.constant dense<0.000000e+00> : vector<16x64xf32>
    %66 = tpu.matmul %64, %65, %cst_32 {dimension_numbers = #tpu.dot_dimension_numbers<[1], [0], [0], [1], [0, 0, 1, 1], [], []>} : vector<16x16xf32>, vector<16x64xf32>, vector<16x64xf32> -> vector<16x64xf32>
    %67 = arith.addf %42, %66 : vector<16x64xf32>
    %68 = vector.extract_strided_slice %39 {offsets = [0, 16], sizes = [16, 16], strides = [1, 1]} : vector<16x192xf32> to vector<16x16xf32>
    %69 = vector.extract_strided_slice %39 {offsets = [0, 80], sizes = [16, 16], strides = [1, 1]} : vector<16x192xf32> to vector<16x16xf32>
    %70 = vector.extract_strided_slice %39 {offsets = [0, 144], sizes = [16, 16], strides = [1, 1]} : vector<16x192xf32> to vector<16x16xf32>
    %71 = tpu.transpose %69, [1, 0] : vector<16x16xf32> -> vector<16x16xf32>
    %cst_33 = arith.constant dense<0.000000e+00> : vector<16x16xf32>
    %72 = tpu.matmul %68, %71, %cst_33 {dimension_numbers = #tpu.dot_dimension_numbers<[1], [0], [0], [1], [0, 0, 1, 1], [], []>} : vector<16x16xf32>, vector<16x16xf32>, vector<16x16xf32> -> vector<16x16xf32>
    %cst_34 = arith.constant 2.500000e-01 : f32
    %73 = vector.broadcast %cst_34 : f32 to vector<16x16xf32>
    %74 = arith.mulf %72, %73 : vector<16x16xf32>
    %cst_35 = arith.constant -1.000000e+30 : f32
    %75 = vector.broadcast %cst_35 : f32 to vector<16x16xf32>
    %76 = arith.select %6, %74, %75 : vector<16x16xi1>, vector<16x16xf32>
    %77 = vector.broadcast %3 : vector<1x16xf32> to vector<16x16xf32>
    %78 = arith.addf %76, %77 : vector<16x16xf32>
    %cst_36 = arith.constant dense<0xFF800000> : vector<16xf32>
    %79 = vector.multi_reduction <maximumf>, %78, %cst_36 [1] : vector<16x16xf32> to vector<16xf32>
    %80 = vector.shape_cast %79 : vector<16xf32> to vector<16x1xf32>
    %81 = vector.broadcast %80 : vector<16x1xf32> to vector<16x16xf32>
    %82 = arith.subf %78, %81 : vector<16x16xf32>
    %83 = math.exp %82 : vector<16x16xf32>
    %cst_37 = arith.constant dense<0.000000e+00> : vector<16xf32>
    %84 = vector.multi_reduction <add>, %83, %cst_37 [1] : vector<16x16xf32> to vector<16xf32>
    %85 = vector.shape_cast %84 : vector<16xf32> to vector<16x1xf32>
    %cst_38 = arith.constant dense<0.000000e+00> : vector<16x16xf32>
    %86 = tpu.matmul %83, %70, %cst_38 {dimension_numbers = #tpu.dot_dimension_numbers<[1], [0], [0], [1], [0, 0, 1, 1], [], []>} : vector<16x16xf32>, vector<16x16xf32>, vector<16x16xf32> -> vector<16x16xf32>
    %87 = tpu.reciprocal %85 {approx = true} : vector<16x1xf32> -> vector<16x1xf32>
    %88 = vector.broadcast %87 : vector<16x1xf32> to vector<16x16xf32>
    %89 = arith.mulf %86, %88 : vector<16x16xf32>
    %90 = vector.extract_strided_slice %41 {offsets = [16, 0], sizes = [16, 64], strides = [1, 1]} : vector<64x64xf32> to vector<16x64xf32>
    %cst_39 = arith.constant dense<0.000000e+00> : vector<16x64xf32>
    %91 = tpu.matmul %89, %90, %cst_39 {dimension_numbers = #tpu.dot_dimension_numbers<[1], [0], [0], [1], [0, 0, 1, 1], [], []>} : vector<16x16xf32>, vector<16x64xf32>, vector<16x64xf32> -> vector<16x64xf32>
    %92 = arith.addf %67, %91 : vector<16x64xf32>
    %93 = vector.extract_strided_slice %39 {offsets = [0, 32], sizes = [16, 16], strides = [1, 1]} : vector<16x192xf32> to vector<16x16xf32>
    %94 = vector.extract_strided_slice %39 {offsets = [0, 96], sizes = [16, 16], strides = [1, 1]} : vector<16x192xf32> to vector<16x16xf32>
    %95 = vector.extract_strided_slice %39 {offsets = [0, 160], sizes = [16, 16], strides = [1, 1]} : vector<16x192xf32> to vector<16x16xf32>
    %96 = tpu.transpose %94, [1, 0] : vector<16x16xf32> -> vector<16x16xf32>
    %cst_40 = arith.constant dense<0.000000e+00> : vector<16x16xf32>
    %97 = tpu.matmul %93, %96, %cst_40 {dimension_numbers = #tpu.dot_dimension_numbers<[1], [0], [0], [1], [0, 0, 1, 1], [], []>} : vector<16x16xf32>, vector<16x16xf32>, vector<16x16xf32> -> vector<16x16xf32>
    %cst_41 = arith.constant 2.500000e-01 : f32
    %98 = vector.broadcast %cst_41 : f32 to vector<16x16xf32>
    %99 = arith.mulf %97, %98 : vector<16x16xf32>
    %cst_42 = arith.constant -1.000000e+30 : f32
    %100 = vector.broadcast %cst_42 : f32 to vector<16x16xf32>
    %101 = arith.select %6, %99, %100 : vector<16x16xi1>, vector<16x16xf32>
    %102 = vector.broadcast %3 : vector<1x16xf32> to vector<16x16xf32>
    %103 = arith.addf %101, %102 : vector<16x16xf32>
    %cst_43 = arith.constant dense<0xFF800000> : vector<16xf32>
    %104 = vector.multi_reduction <maximumf>, %103, %cst_43 [1] : vector<16x16xf32> to vector<16xf32>
    %105 = vector.shape_cast %104 : vector<16xf32> to vector<16x1xf32>
    %106 = vector.broadcast %105 : vector<16x1xf32> to vector<16x16xf32>
    %107 = arith.subf %103, %106 : vector<16x16xf32>
    %108 = math.exp %107 : vector<16x16xf32>
    %cst_44 = arith.constant dense<0.000000e+00> : vector<16xf32>
    %109 = vector.multi_reduction <add>, %108, %cst_44 [1] : vector<16x16xf32> to vector<16xf32>
    %110 = vector.shape_cast %109 : vector<16xf32> to vector<16x1xf32>
    %cst_45 = arith.constant dense<0.000000e+00> : vector<16x16xf32>
    %111 = tpu.matmul %108, %95, %cst_45 {dimension_numbers = #tpu.dot_dimension_numbers<[1], [0], [0], [1], [0, 0, 1, 1], [], []>} : vector<16x16xf32>, vector<16x16xf32>, vector<16x16xf32> -> vector<16x16xf32>
    %112 = tpu.reciprocal %110 {approx = true} : vector<16x1xf32> -> vector<16x1xf32>
    %113 = vector.broadcast %112 : vector<16x1xf32> to vector<16x16xf32>
    %114 = arith.mulf %111, %113 : vector<16x16xf32>
    %115 = vector.extract_strided_slice %41 {offsets = [32, 0], sizes = [16, 64], strides = [1, 1]} : vector<64x64xf32> to vector<16x64xf32>
    %cst_46 = arith.constant dense<0.000000e+00> : vector<16x64xf32>
    %116 = tpu.matmul %114, %115, %cst_46 {dimension_numbers = #tpu.dot_dimension_numbers<[1], [0], [0], [1], [0, 0, 1, 1], [], []>} : vector<16x16xf32>, vector<16x64xf32>, vector<16x64xf32> -> vector<16x64xf32>
    %117 = arith.addf %92, %116 : vector<16x64xf32>
    %118 = vector.extract_strided_slice %39 {offsets = [0, 48], sizes = [16, 16], strides = [1, 1]} : vector<16x192xf32> to vector<16x16xf32>
    %119 = vector.extract_strided_slice %39 {offsets = [0, 112], sizes = [16, 16], strides = [1, 1]} : vector<16x192xf32> to vector<16x16xf32>
    %120 = vector.extract_strided_slice %39 {offsets = [0, 176], sizes = [16, 16], strides = [1, 1]} : vector<16x192xf32> to vector<16x16xf32>
    %121 = tpu.transpose %119, [1, 0] : vector<16x16xf32> -> vector<16x16xf32>
    %cst_47 = arith.constant dense<0.000000e+00> : vector<16x16xf32>
    %122 = tpu.matmul %118, %121, %cst_47 {dimension_numbers = #tpu.dot_dimension_numbers<[1], [0], [0], [1], [0, 0, 1, 1], [], []>} : vector<16x16xf32>, vector<16x16xf32>, vector<16x16xf32> -> vector<16x16xf32>
    %cst_48 = arith.constant 2.500000e-01 : f32
    %123 = vector.broadcast %cst_48 : f32 to vector<16x16xf32>
    %124 = arith.mulf %122, %123 : vector<16x16xf32>
    %cst_49 = arith.constant -1.000000e+30 : f32
    %125 = vector.broadcast %cst_49 : f32 to vector<16x16xf32>
    %126 = arith.select %6, %124, %125 : vector<16x16xi1>, vector<16x16xf32>
    %127 = vector.broadcast %3 : vector<1x16xf32> to vector<16x16xf32>
    %128 = arith.addf %126, %127 : vector<16x16xf32>
    %cst_50 = arith.constant dense<0xFF800000> : vector<16xf32>
    %129 = vector.multi_reduction <maximumf>, %128, %cst_50 [1] : vector<16x16xf32> to vector<16xf32>
    %130 = vector.shape_cast %129 : vector<16xf32> to vector<16x1xf32>
    %131 = vector.broadcast %130 : vector<16x1xf32> to vector<16x16xf32>
    %132 = arith.subf %128, %131 : vector<16x16xf32>
    %133 = math.exp %132 : vector<16x16xf32>
    %cst_51 = arith.constant dense<0.000000e+00> : vector<16xf32>
    %134 = vector.multi_reduction <add>, %133, %cst_51 [1] : vector<16x16xf32> to vector<16xf32>
    %135 = vector.shape_cast %134 : vector<16xf32> to vector<16x1xf32>
    %cst_52 = arith.constant dense<0.000000e+00> : vector<16x16xf32>
    %136 = tpu.matmul %133, %120, %cst_52 {dimension_numbers = #tpu.dot_dimension_numbers<[1], [0], [0], [1], [0, 0, 1, 1], [], []>} : vector<16x16xf32>, vector<16x16xf32>, vector<16x16xf32> -> vector<16x16xf32>
    %137 = tpu.reciprocal %135 {approx = true} : vector<16x1xf32> -> vector<16x1xf32>
    %138 = vector.broadcast %137 : vector<16x1xf32> to vector<16x16xf32>
    %139 = arith.mulf %136, %138 : vector<16x16xf32>
    %140 = vector.extract_strided_slice %41 {offsets = [48, 0], sizes = [16, 64], strides = [1, 1]} : vector<64x64xf32> to vector<16x64xf32>
    %cst_53 = arith.constant dense<0.000000e+00> : vector<16x64xf32>
    %141 = tpu.matmul %139, %140, %cst_53 {dimension_numbers = #tpu.dot_dimension_numbers<[1], [0], [0], [1], [0, 0, 1, 1], [], []>} : vector<16x16xf32>, vector<16x64xf32>, vector<16x64xf32> -> vector<16x64xf32>
    %142 = arith.addf %117, %141 : vector<16x64xf32>
    %143 = arith.addf %1, %142 : vector<16x64xf32>
    %c0_54 = arith.constant 0 : index
    %c0_55 = arith.constant 0 : index
    %c0_56 = arith.constant 0 : index
    %144 = vector.load %arg8[%c0_54, %c0_55, %c0_56] : memref<2x1x64xf32, #tpu.memory_space<vmem>>, vector<1x1x64xf32>
    %145 = vector.shape_cast %144 : vector<1x1x64xf32> to vector<1x64xf32>
    %146 = vector.broadcast %145 : vector<1x64xf32> to vector<16x64xf32>
    %147 = arith.addf %143, %146 : vector<16x64xf32>
    %c0_57 = arith.constant 0 : index
    %c0_58 = arith.constant 0 : index
    %c0_59 = arith.constant 0 : index
    %148 = vector.load %arg9[%c0_57, %c0_58, %c0_59] : memref<2x1x64xf32, #tpu.memory_space<vmem>>, vector<1x1x64xf32>
    %149 = vector.shape_cast %148 : vector<1x1x64xf32> to vector<1x64xf32>
    %c0_60 = arith.constant 0 : index
    %c0_61 = arith.constant 0 : index
    %c0_62 = arith.constant 0 : index
    %150 = vector.load %arg10[%c0_60, %c0_61, %c0_62] : memref<2x1x64xf32, #tpu.memory_space<vmem>>, vector<1x1x64xf32>
    %151 = vector.shape_cast %150 : vector<1x1x64xf32> to vector<1x64xf32>
    %cst_63 = arith.constant dense<0.000000e+00> : vector<16xf32>
    %152 = vector.multi_reduction <add>, %147, %cst_63 [1] : vector<16x64xf32> to vector<16xf32>
    %153 = vector.shape_cast %152 : vector<16xf32> to vector<16x1xf32>
    %cst_64 = arith.constant 6.400000e+01 : f32
    %154 = vector.broadcast %cst_64 : f32 to vector<16x1xf32>
    %155 = arith.divf %153, %154 : vector<16x1xf32>
    %156 = vector.broadcast %155 : vector<16x1xf32> to vector<16x64xf32>
    %157 = arith.subf %147, %156 : vector<16x64xf32>
    %158 = arith.mulf %157, %157 : vector<16x64xf32>
    %cst_65 = arith.constant dense<0.000000e+00> : vector<16xf32>
    %159 = vector.multi_reduction <add>, %158, %cst_65 [1] : vector<16x64xf32> to vector<16xf32>
    %160 = vector.shape_cast %159 : vector<16xf32> to vector<16x1xf32>
    %cst_66 = arith.constant 6.400000e+01 : f32
    %161 = vector.broadcast %cst_66 : f32 to vector<16x1xf32>
    %162 = arith.divf %160, %161 : vector<16x1xf32>
    %163 = vector.broadcast %155 : vector<16x1xf32> to vector<16x64xf32>
    %164 = arith.subf %147, %163 : vector<16x64xf32>
    %cst_67 = arith.constant 9.99999974E-6 : f32
    %165 = vector.broadcast %cst_67 : f32 to vector<16x1xf32>
    %166 = arith.addf %162, %165 : vector<16x1xf32>
    %167 = math.rsqrt %166 : vector<16x1xf32>
    %168 = vector.broadcast %167 : vector<16x1xf32> to vector<16x64xf32>
    %169 = arith.mulf %164, %168 : vector<16x64xf32>
    %170 = vector.broadcast %149 : vector<1x64xf32> to vector<16x64xf32>
    %171 = arith.mulf %169, %170 : vector<16x64xf32>
    %172 = vector.broadcast %151 : vector<1x64xf32> to vector<16x64xf32>
    %173 = arith.addf %171, %172 : vector<16x64xf32>
    %c0_68 = arith.constant 0 : index
    %c0_69 = arith.constant 0 : index
    %c0_70 = arith.constant 0 : index
    %174 = vector.load %arg11[%c0_68, %c0_69, %c0_70] : memref<2x64x128xf32, #tpu.memory_space<vmem>>, vector<1x64x128xf32>
    %175 = vector.shape_cast %174 : vector<1x64x128xf32> to vector<64x128xf32>
    %cst_71 = arith.constant dense<0.000000e+00> : vector<16x128xf32>
    %176 = tpu.matmul %173, %175, %cst_71 {dimension_numbers = #tpu.dot_dimension_numbers<[1], [0], [0], [1], [0, 0, 1, 1], [], []>} : vector<16x64xf32>, vector<64x128xf32>, vector<16x128xf32> -> vector<16x128xf32>
    %c0_72 = arith.constant 0 : index
    %c0_73 = arith.constant 0 : index
    %c0_74 = arith.constant 0 : index
    %177 = vector.load %arg12[%c0_72, %c0_73, %c0_74] : memref<2x1x128xf32, #tpu.memory_space<vmem>>, vector<1x1x128xf32>
    %178 = vector.shape_cast %177 : vector<1x1x128xf32> to vector<1x128xf32>
    %179 = vector.broadcast %178 : vector<1x128xf32> to vector<16x128xf32>
    %180 = arith.addf %176, %179 : vector<16x128xf32>
    %181 = arith.mulf %180, %180 : vector<16x128xf32>
    %182 = arith.mulf %180, %181 : vector<16x128xf32>
    %cst_75 = arith.constant 4.471500e-02 : f32
    %183 = vector.broadcast %cst_75 : f32 to vector<16x128xf32>
    %184 = arith.mulf %183, %182 : vector<16x128xf32>
    %185 = arith.addf %180, %184 : vector<16x128xf32>
    %cst_76 = arith.constant 0.797884583 : f32
    %186 = vector.broadcast %cst_76 : f32 to vector<16x128xf32>
    %187 = arith.mulf %186, %185 : vector<16x128xf32>
    %188 = math.tanh %187 : vector<16x128xf32>
    %cst_77 = arith.constant 1.000000e+00 : f32
    %189 = vector.broadcast %cst_77 : f32 to vector<16x128xf32>
    %190 = arith.addf %189, %188 : vector<16x128xf32>
    %cst_78 = arith.constant 5.000000e-01 : f32
    %191 = vector.broadcast %cst_78 : f32 to vector<16x128xf32>
    %192 = arith.mulf %191, %190 : vector<16x128xf32>
    %193 = arith.mulf %180, %192 : vector<16x128xf32>
    %c0_79 = arith.constant 0 : index
    %c0_80 = arith.constant 0 : index
    %c0_81 = arith.constant 0 : index
    %194 = vector.load %arg13[%c0_79, %c0_80, %c0_81] : memref<2x128x64xf32, #tpu.memory_space<vmem>>, vector<1x128x64xf32>
    %195 = vector.shape_cast %194 : vector<1x128x64xf32> to vector<128x64xf32>
    %cst_82 = arith.constant dense<0.000000e+00> : vector<16x64xf32>
    %196 = tpu.matmul %193, %195, %cst_82 {dimension_numbers = #tpu.dot_dimension_numbers<[1], [0], [0], [1], [0, 0, 1, 1], [], []>} : vector<16x128xf32>, vector<128x64xf32>, vector<16x64xf32> -> vector<16x64xf32>
    %197 = arith.addf %147, %196 : vector<16x64xf32>
    %c0_83 = arith.constant 0 : index
    %c0_84 = arith.constant 0 : index
    %c0_85 = arith.constant 0 : index
    %198 = vector.load %arg14[%c0_83, %c0_84, %c0_85] : memref<2x1x64xf32, #tpu.memory_space<vmem>>, vector<1x1x64xf32>
    %199 = vector.shape_cast %198 : vector<1x1x64xf32> to vector<1x64xf32>
    %200 = vector.broadcast %199 : vector<1x64xf32> to vector<16x64xf32>
    %201 = arith.addf %197, %200 : vector<16x64xf32>
    %c1 = arith.constant 1 : index
    %c0_86 = arith.constant 0 : index
    %c0_87 = arith.constant 0 : index
    %202 = vector.load %arg3[%c1, %c0_86, %c0_87] : memref<2x1x64xf32, #tpu.memory_space<vmem>>, vector<1x1x64xf32>
    %203 = vector.shape_cast %202 : vector<1x1x64xf32> to vector<1x64xf32>
    %c1_88 = arith.constant 1 : index
    %c0_89 = arith.constant 0 : index
    %c0_90 = arith.constant 0 : index
    %204 = vector.load %arg4[%c1_88, %c0_89, %c0_90] : memref<2x1x64xf32, #tpu.memory_space<vmem>>, vector<1x1x64xf32>
    %205 = vector.shape_cast %204 : vector<1x1x64xf32> to vector<1x64xf32>
    %cst_91 = arith.constant dense<0.000000e+00> : vector<16xf32>
    %206 = vector.multi_reduction <add>, %201, %cst_91 [1] : vector<16x64xf32> to vector<16xf32>
    %207 = vector.shape_cast %206 : vector<16xf32> to vector<16x1xf32>
    %cst_92 = arith.constant 6.400000e+01 : f32
    %208 = vector.broadcast %cst_92 : f32 to vector<16x1xf32>
    %209 = arith.divf %207, %208 : vector<16x1xf32>
    %210 = vector.broadcast %209 : vector<16x1xf32> to vector<16x64xf32>
    %211 = arith.subf %201, %210 : vector<16x64xf32>
    %212 = arith.mulf %211, %211 : vector<16x64xf32>
    %cst_93 = arith.constant dense<0.000000e+00> : vector<16xf32>
    %213 = vector.multi_reduction <add>, %212, %cst_93 [1] : vector<16x64xf32> to vector<16xf32>
    %214 = vector.shape_cast %213 : vector<16xf32> to vector<16x1xf32>
    %cst_94 = arith.constant 6.400000e+01 : f32
    %215 = vector.broadcast %cst_94 : f32 to vector<16x1xf32>
    %216 = arith.divf %214, %215 : vector<16x1xf32>
    %217 = vector.broadcast %209 : vector<16x1xf32> to vector<16x64xf32>
    %218 = arith.subf %201, %217 : vector<16x64xf32>
    %cst_95 = arith.constant 9.99999974E-6 : f32
    %219 = vector.broadcast %cst_95 : f32 to vector<16x1xf32>
    %220 = arith.addf %216, %219 : vector<16x1xf32>
    %221 = math.rsqrt %220 : vector<16x1xf32>
    %222 = vector.broadcast %221 : vector<16x1xf32> to vector<16x64xf32>
    %223 = arith.mulf %218, %222 : vector<16x64xf32>
    %224 = vector.broadcast %203 : vector<1x64xf32> to vector<16x64xf32>
    %225 = arith.mulf %223, %224 : vector<16x64xf32>
    %226 = vector.broadcast %205 : vector<1x64xf32> to vector<16x64xf32>
    %227 = arith.addf %225, %226 : vector<16x64xf32>
    %c1_96 = arith.constant 1 : index
    %c0_97 = arith.constant 0 : index
    %c0_98 = arith.constant 0 : index
    %228 = vector.load %arg5[%c1_96, %c0_97, %c0_98] : memref<2x64x192xf32, #tpu.memory_space<vmem>>, vector<1x64x192xf32>
    %229 = vector.shape_cast %228 : vector<1x64x192xf32> to vector<64x192xf32>
    %cst_99 = arith.constant dense<0.000000e+00> : vector<16x192xf32>
    %230 = tpu.matmul %227, %229, %cst_99 {dimension_numbers = #tpu.dot_dimension_numbers<[1], [0], [0], [1], [0, 0, 1, 1], [], []>} : vector<16x64xf32>, vector<64x192xf32>, vector<16x192xf32> -> vector<16x192xf32>
    %c1_100 = arith.constant 1 : index
    %c0_101 = arith.constant 0 : index
    %c0_102 = arith.constant 0 : index
    %231 = vector.load %arg6[%c1_100, %c0_101, %c0_102] : memref<2x1x192xf32, #tpu.memory_space<vmem>>, vector<1x1x192xf32>
    %232 = vector.shape_cast %231 : vector<1x1x192xf32> to vector<1x192xf32>
    %233 = vector.broadcast %232 : vector<1x192xf32> to vector<16x192xf32>
    %234 = arith.addf %230, %233 : vector<16x192xf32>
    %c1_103 = arith.constant 1 : index
    %c0_104 = arith.constant 0 : index
    %c0_105 = arith.constant 0 : index
    %235 = vector.load %arg7[%c1_103, %c0_104, %c0_105] : memref<2x64x64xf32, #tpu.memory_space<vmem>>, vector<1x64x64xf32>
    %236 = vector.shape_cast %235 : vector<1x64x64xf32> to vector<64x64xf32>
    %cst_106 = arith.constant 0.000000e+00 : f32
    %237 = vector.broadcast %cst_106 : f32 to vector<16x64xf32>
    %238 = vector.extract_strided_slice %234 {offsets = [0, 0], sizes = [16, 16], strides = [1, 1]} : vector<16x192xf32> to vector<16x16xf32>
    %239 = vector.extract_strided_slice %234 {offsets = [0, 64], sizes = [16, 16], strides = [1, 1]} : vector<16x192xf32> to vector<16x16xf32>
    %240 = vector.extract_strided_slice %234 {offsets = [0, 128], sizes = [16, 16], strides = [1, 1]} : vector<16x192xf32> to vector<16x16xf32>
    %241 = tpu.transpose %239, [1, 0] : vector<16x16xf32> -> vector<16x16xf32>
    %cst_107 = arith.constant dense<0.000000e+00> : vector<16x16xf32>
    %242 = tpu.matmul %238, %241, %cst_107 {dimension_numbers = #tpu.dot_dimension_numbers<[1], [0], [0], [1], [0, 0, 1, 1], [], []>} : vector<16x16xf32>, vector<16x16xf32>, vector<16x16xf32> -> vector<16x16xf32>
    %cst_108 = arith.constant 2.500000e-01 : f32
    %243 = vector.broadcast %cst_108 : f32 to vector<16x16xf32>
    %244 = arith.mulf %242, %243 : vector<16x16xf32>
    %cst_109 = arith.constant -1.000000e+30 : f32
    %245 = vector.broadcast %cst_109 : f32 to vector<16x16xf32>
    %246 = arith.select %6, %244, %245 : vector<16x16xi1>, vector<16x16xf32>
    %247 = vector.broadcast %3 : vector<1x16xf32> to vector<16x16xf32>
    %248 = arith.addf %246, %247 : vector<16x16xf32>
    %cst_110 = arith.constant dense<0xFF800000> : vector<16xf32>
    %249 = vector.multi_reduction <maximumf>, %248, %cst_110 [1] : vector<16x16xf32> to vector<16xf32>
    %250 = vector.shape_cast %249 : vector<16xf32> to vector<16x1xf32>
    %251 = vector.broadcast %250 : vector<16x1xf32> to vector<16x16xf32>
    %252 = arith.subf %248, %251 : vector<16x16xf32>
    %253 = math.exp %252 : vector<16x16xf32>
    %cst_111 = arith.constant dense<0.000000e+00> : vector<16xf32>
    %254 = vector.multi_reduction <add>, %253, %cst_111 [1] : vector<16x16xf32> to vector<16xf32>
    %255 = vector.shape_cast %254 : vector<16xf32> to vector<16x1xf32>
    %cst_112 = arith.constant dense<0.000000e+00> : vector<16x16xf32>
    %256 = tpu.matmul %253, %240, %cst_112 {dimension_numbers = #tpu.dot_dimension_numbers<[1], [0], [0], [1], [0, 0, 1, 1], [], []>} : vector<16x16xf32>, vector<16x16xf32>, vector<16x16xf32> -> vector<16x16xf32>
    %257 = tpu.reciprocal %255 {approx = true} : vector<16x1xf32> -> vector<16x1xf32>
    %258 = vector.broadcast %257 : vector<16x1xf32> to vector<16x16xf32>
    %259 = arith.mulf %256, %258 : vector<16x16xf32>
    %260 = vector.extract_strided_slice %236 {offsets = [0, 0], sizes = [16, 64], strides = [1, 1]} : vector<64x64xf32> to vector<16x64xf32>
    %cst_113 = arith.constant dense<0.000000e+00> : vector<16x64xf32>
    %261 = tpu.matmul %259, %260, %cst_113 {dimension_numbers = #tpu.dot_dimension_numbers<[1], [0], [0], [1], [0, 0, 1, 1], [], []>} : vector<16x16xf32>, vector<16x64xf32>, vector<16x64xf32> -> vector<16x64xf32>
    %262 = arith.addf %237, %261 : vector<16x64xf32>
    %263 = vector.extract_strided_slice %234 {offsets = [0, 16], sizes = [16, 16], strides = [1, 1]} : vector<16x192xf32> to vector<16x16xf32>
    %264 = vector.extract_strided_slice %234 {offsets = [0, 80], sizes = [16, 16], strides = [1, 1]} : vector<16x192xf32> to vector<16x16xf32>
    %265 = vector.extract_strided_slice %234 {offsets = [0, 144], sizes = [16, 16], strides = [1, 1]} : vector<16x192xf32> to vector<16x16xf32>
    %266 = tpu.transpose %264, [1, 0] : vector<16x16xf32> -> vector<16x16xf32>
    %cst_114 = arith.constant dense<0.000000e+00> : vector<16x16xf32>
    %267 = tpu.matmul %263, %266, %cst_114 {dimension_numbers = #tpu.dot_dimension_numbers<[1], [0], [0], [1], [0, 0, 1, 1], [], []>} : vector<16x16xf32>, vector<16x16xf32>, vector<16x16xf32> -> vector<16x16xf32>
    %cst_115 = arith.constant 2.500000e-01 : f32
    %268 = vector.broadcast %cst_115 : f32 to vector<16x16xf32>
    %269 = arith.mulf %267, %268 : vector<16x16xf32>
    %cst_116 = arith.constant -1.000000e+30 : f32
    %270 = vector.broadcast %cst_116 : f32 to vector<16x16xf32>
    %271 = arith.select %6, %269, %270 : vector<16x16xi1>, vector<16x16xf32>
    %272 = vector.broadcast %3 : vector<1x16xf32> to vector<16x16xf32>
    %273 = arith.addf %271, %272 : vector<16x16xf32>
    %cst_117 = arith.constant dense<0xFF800000> : vector<16xf32>
    %274 = vector.multi_reduction <maximumf>, %273, %cst_117 [1] : vector<16x16xf32> to vector<16xf32>
    %275 = vector.shape_cast %274 : vector<16xf32> to vector<16x1xf32>
    %276 = vector.broadcast %275 : vector<16x1xf32> to vector<16x16xf32>
    %277 = arith.subf %273, %276 : vector<16x16xf32>
    %278 = math.exp %277 : vector<16x16xf32>
    %cst_118 = arith.constant dense<0.000000e+00> : vector<16xf32>
    %279 = vector.multi_reduction <add>, %278, %cst_118 [1] : vector<16x16xf32> to vector<16xf32>
    %280 = vector.shape_cast %279 : vector<16xf32> to vector<16x1xf32>
    %cst_119 = arith.constant dense<0.000000e+00> : vector<16x16xf32>
    %281 = tpu.matmul %278, %265, %cst_119 {dimension_numbers = #tpu.dot_dimension_numbers<[1], [0], [0], [1], [0, 0, 1, 1], [], []>} : vector<16x16xf32>, vector<16x16xf32>, vector<16x16xf32> -> vector<16x16xf32>
    %282 = tpu.reciprocal %280 {approx = true} : vector<16x1xf32> -> vector<16x1xf32>
    %283 = vector.broadcast %282 : vector<16x1xf32> to vector<16x16xf32>
    %284 = arith.mulf %281, %283 : vector<16x16xf32>
    %285 = vector.extract_strided_slice %236 {offsets = [16, 0], sizes = [16, 64], strides = [1, 1]} : vector<64x64xf32> to vector<16x64xf32>
    %cst_120 = arith.constant dense<0.000000e+00> : vector<16x64xf32>
    %286 = tpu.matmul %284, %285, %cst_120 {dimension_numbers = #tpu.dot_dimension_numbers<[1], [0], [0], [1], [0, 0, 1, 1], [], []>} : vector<16x16xf32>, vector<16x64xf32>, vector<16x64xf32> -> vector<16x64xf32>
    %287 = arith.addf %262, %286 : vector<16x64xf32>
    %288 = vector.extract_strided_slice %234 {offsets = [0, 32], sizes = [16, 16], strides = [1, 1]} : vector<16x192xf32> to vector<16x16xf32>
    %289 = vector.extract_strided_slice %234 {offsets = [0, 96], sizes = [16, 16], strides = [1, 1]} : vector<16x192xf32> to vector<16x16xf32>
    %290 = vector.extract_strided_slice %234 {offsets = [0, 160], sizes = [16, 16], strides = [1, 1]} : vector<16x192xf32> to vector<16x16xf32>
    %291 = tpu.transpose %289, [1, 0] : vector<16x16xf32> -> vector<16x16xf32>
    %cst_121 = arith.constant dense<0.000000e+00> : vector<16x16xf32>
    %292 = tpu.matmul %288, %291, %cst_121 {dimension_numbers = #tpu.dot_dimension_numbers<[1], [0], [0], [1], [0, 0, 1, 1], [], []>} : vector<16x16xf32>, vector<16x16xf32>, vector<16x16xf32> -> vector<16x16xf32>
    %cst_122 = arith.constant 2.500000e-01 : f32
    %293 = vector.broadcast %cst_122 : f32 to vector<16x16xf32>
    %294 = arith.mulf %292, %293 : vector<16x16xf32>
    %cst_123 = arith.constant -1.000000e+30 : f32
    %295 = vector.broadcast %cst_123 : f32 to vector<16x16xf32>
    %296 = arith.select %6, %294, %295 : vector<16x16xi1>, vector<16x16xf32>
    %297 = vector.broadcast %3 : vector<1x16xf32> to vector<16x16xf32>
    %298 = arith.addf %296, %297 : vector<16x16xf32>
    %cst_124 = arith.constant dense<0xFF800000> : vector<16xf32>
    %299 = vector.multi_reduction <maximumf>, %298, %cst_124 [1] : vector<16x16xf32> to vector<16xf32>
    %300 = vector.shape_cast %299 : vector<16xf32> to vector<16x1xf32>
    %301 = vector.broadcast %300 : vector<16x1xf32> to vector<16x16xf32>
    %302 = arith.subf %298, %301 : vector<16x16xf32>
    %303 = math.exp %302 : vector<16x16xf32>
    %cst_125 = arith.constant dense<0.000000e+00> : vector<16xf32>
    %304 = vector.multi_reduction <add>, %303, %cst_125 [1] : vector<16x16xf32> to vector<16xf32>
    %305 = vector.shape_cast %304 : vector<16xf32> to vector<16x1xf32>
    %cst_126 = arith.constant dense<0.000000e+00> : vector<16x16xf32>
    %306 = tpu.matmul %303, %290, %cst_126 {dimension_numbers = #tpu.dot_dimension_numbers<[1], [0], [0], [1], [0, 0, 1, 1], [], []>} : vector<16x16xf32>, vector<16x16xf32>, vector<16x16xf32> -> vector<16x16xf32>
    %307 = tpu.reciprocal %305 {approx = true} : vector<16x1xf32> -> vector<16x1xf32>
    %308 = vector.broadcast %307 : vector<16x1xf32> to vector<16x16xf32>
    %309 = arith.mulf %306, %308 : vector<16x16xf32>
    %310 = vector.extract_strided_slice %236 {offsets = [32, 0], sizes = [16, 64], strides = [1, 1]} : vector<64x64xf32> to vector<16x64xf32>
    %cst_127 = arith.constant dense<0.000000e+00> : vector<16x64xf32>
    %311 = tpu.matmul %309, %310, %cst_127 {dimension_numbers = #tpu.dot_dimension_numbers<[1], [0], [0], [1], [0, 0, 1, 1], [], []>} : vector<16x16xf32>, vector<16x64xf32>, vector<16x64xf32> -> vector<16x64xf32>
    %312 = arith.addf %287, %311 : vector<16x64xf32>
    %313 = vector.extract_strided_slice %234 {offsets = [0, 48], sizes = [16, 16], strides = [1, 1]} : vector<16x192xf32> to vector<16x16xf32>
    %314 = vector.extract_strided_slice %234 {offsets = [0, 112], sizes = [16, 16], strides = [1, 1]} : vector<16x192xf32> to vector<16x16xf32>
    %315 = vector.extract_strided_slice %234 {offsets = [0, 176], sizes = [16, 16], strides = [1, 1]} : vector<16x192xf32> to vector<16x16xf32>
    %316 = tpu.transpose %314, [1, 0] : vector<16x16xf32> -> vector<16x16xf32>
    %cst_128 = arith.constant dense<0.000000e+00> : vector<16x16xf32>
    %317 = tpu.matmul %313, %316, %cst_128 {dimension_numbers = #tpu.dot_dimension_numbers<[1], [0], [0], [1], [0, 0, 1, 1], [], []>} : vector<16x16xf32>, vector<16x16xf32>, vector<16x16xf32> -> vector<16x16xf32>
    %cst_129 = arith.constant 2.500000e-01 : f32
    %318 = vector.broadcast %cst_129 : f32 to vector<16x16xf32>
    %319 = arith.mulf %317, %318 : vector<16x16xf32>
    %cst_130 = arith.constant -1.000000e+30 : f32
    %320 = vector.broadcast %cst_130 : f32 to vector<16x16xf32>
    %321 = arith.select %6, %319, %320 : vector<16x16xi1>, vector<16x16xf32>
    %322 = vector.broadcast %3 : vector<1x16xf32> to vector<16x16xf32>
    %323 = arith.addf %321, %322 : vector<16x16xf32>
    %cst_131 = arith.constant dense<0xFF800000> : vector<16xf32>
    %324 = vector.multi_reduction <maximumf>, %323, %cst_131 [1] : vector<16x16xf32> to vector<16xf32>
    %325 = vector.shape_cast %324 : vector<16xf32> to vector<16x1xf32>
    %326 = vector.broadcast %325 : vector<16x1xf32> to vector<16x16xf32>
    %327 = arith.subf %323, %326 : vector<16x16xf32>
    %328 = math.exp %327 : vector<16x16xf32>
    %cst_132 = arith.constant dense<0.000000e+00> : vector<16xf32>
    %329 = vector.multi_reduction <add>, %328, %cst_132 [1] : vector<16x16xf32> to vector<16xf32>
    %330 = vector.shape_cast %329 : vector<16xf32> to vector<16x1xf32>
    %cst_133 = arith.constant dense<0.000000e+00> : vector<16x16xf32>
    %331 = tpu.matmul %328, %315, %cst_133 {dimension_numbers = #tpu.dot_dimension_numbers<[1], [0], [0], [1], [0, 0, 1, 1], [], []>} : vector<16x16xf32>, vector<16x16xf32>, vector<16x16xf32> -> vector<16x16xf32>
    %332 = tpu.reciprocal %330 {approx = true} : vector<16x1xf32> -> vector<16x1xf32>
    %333 = vector.broadcast %332 : vector<16x1xf32> to vector<16x16xf32>
    %334 = arith.mulf %331, %333 : vector<16x16xf32>
    %335 = vector.extract_strided_slice %236 {offsets = [48, 0], sizes = [16, 64], strides = [1, 1]} : vector<64x64xf32> to vector<16x64xf32>
    %cst_134 = arith.constant dense<0.000000e+00> : vector<16x64xf32>
    %336 = tpu.matmul %334, %335, %cst_134 {dimension_numbers = #tpu.dot_dimension_numbers<[1], [0], [0], [1], [0, 0, 1, 1], [], []>} : vector<16x16xf32>, vector<16x64xf32>, vector<16x64xf32> -> vector<16x64xf32>
    %337 = arith.addf %312, %336 : vector<16x64xf32>
    %338 = arith.addf %201, %337 : vector<16x64xf32>
    %c1_135 = arith.constant 1 : index
    %c0_136 = arith.constant 0 : index
    %c0_137 = arith.constant 0 : index
    %339 = vector.load %arg8[%c1_135, %c0_136, %c0_137] : memref<2x1x64xf32, #tpu.memory_space<vmem>>, vector<1x1x64xf32>
    %340 = vector.shape_cast %339 : vector<1x1x64xf32> to vector<1x64xf32>
    %341 = vector.broadcast %340 : vector<1x64xf32> to vector<16x64xf32>
    %342 = arith.addf %338, %341 : vector<16x64xf32>
    %c1_138 = arith.constant 1 : index
    %c0_139 = arith.constant 0 : index
    %c0_140 = arith.constant 0 : index
    %343 = vector.load %arg9[%c1_138, %c0_139, %c0_140] : memref<2x1x64xf32, #tpu.memory_space<vmem>>, vector<1x1x64xf32>
    %344 = vector.shape_cast %343 : vector<1x1x64xf32> to vector<1x64xf32>
    %c1_141 = arith.constant 1 : index
    %c0_142 = arith.constant 0 : index
    %c0_143 = arith.constant 0 : index
    %345 = vector.load %arg10[%c1_141, %c0_142, %c0_143] : memref<2x1x64xf32, #tpu.memory_space<vmem>>, vector<1x1x64xf32>
    %346 = vector.shape_cast %345 : vector<1x1x64xf32> to vector<1x64xf32>
    %cst_144 = arith.constant dense<0.000000e+00> : vector<16xf32>
    %347 = vector.multi_reduction <add>, %342, %cst_144 [1] : vector<16x64xf32> to vector<16xf32>
    %348 = vector.shape_cast %347 : vector<16xf32> to vector<16x1xf32>
    %cst_145 = arith.constant 6.400000e+01 : f32
    %349 = vector.broadcast %cst_145 : f32 to vector<16x1xf32>
    %350 = arith.divf %348, %349 : vector<16x1xf32>
    %351 = vector.broadcast %350 : vector<16x1xf32> to vector<16x64xf32>
    %352 = arith.subf %342, %351 : vector<16x64xf32>
    %353 = arith.mulf %352, %352 : vector<16x64xf32>
    %cst_146 = arith.constant dense<0.000000e+00> : vector<16xf32>
    %354 = vector.multi_reduction <add>, %353, %cst_146 [1] : vector<16x64xf32> to vector<16xf32>
    %355 = vector.shape_cast %354 : vector<16xf32> to vector<16x1xf32>
    %cst_147 = arith.constant 6.400000e+01 : f32
    %356 = vector.broadcast %cst_147 : f32 to vector<16x1xf32>
    %357 = arith.divf %355, %356 : vector<16x1xf32>
    %358 = vector.broadcast %350 : vector<16x1xf32> to vector<16x64xf32>
    %359 = arith.subf %342, %358 : vector<16x64xf32>
    %cst_148 = arith.constant 9.99999974E-6 : f32
    %360 = vector.broadcast %cst_148 : f32 to vector<16x1xf32>
    %361 = arith.addf %357, %360 : vector<16x1xf32>
    %362 = math.rsqrt %361 : vector<16x1xf32>
    %363 = vector.broadcast %362 : vector<16x1xf32> to vector<16x64xf32>
    %364 = arith.mulf %359, %363 : vector<16x64xf32>
    %365 = vector.broadcast %344 : vector<1x64xf32> to vector<16x64xf32>
    %366 = arith.mulf %364, %365 : vector<16x64xf32>
    %367 = vector.broadcast %346 : vector<1x64xf32> to vector<16x64xf32>
    %368 = arith.addf %366, %367 : vector<16x64xf32>
    %c1_149 = arith.constant 1 : index
    %c0_150 = arith.constant 0 : index
    %c0_151 = arith.constant 0 : index
    %369 = vector.load %arg11[%c1_149, %c0_150, %c0_151] : memref<2x64x128xf32, #tpu.memory_space<vmem>>, vector<1x64x128xf32>
    %370 = vector.shape_cast %369 : vector<1x64x128xf32> to vector<64x128xf32>
    %cst_152 = arith.constant dense<0.000000e+00> : vector<16x128xf32>
    %371 = tpu.matmul %368, %370, %cst_152 {dimension_numbers = #tpu.dot_dimension_numbers<[1], [0], [0], [1], [0, 0, 1, 1], [], []>} : vector<16x64xf32>, vector<64x128xf32>, vector<16x128xf32> -> vector<16x128xf32>
    %c1_153 = arith.constant 1 : index
    %c0_154 = arith.constant 0 : index
    %c0_155 = arith.constant 0 : index
    %372 = vector.load %arg12[%c1_153, %c0_154, %c0_155] : memref<2x1x128xf32, #tpu.memory_space<vmem>>, vector<1x1x128xf32>
    %373 = vector.shape_cast %372 : vector<1x1x128xf32> to vector<1x128xf32>
    %374 = vector.broadcast %373 : vector<1x128xf32> to vector<16x128xf32>
    %375 = arith.addf %371, %374 : vector<16x128xf32>
    %376 = arith.mulf %375, %375 : vector<16x128xf32>
    %377 = arith.mulf %375, %376 : vector<16x128xf32>
    %cst_156 = arith.constant 4.471500e-02 : f32
    %378 = vector.broadcast %cst_156 : f32 to vector<16x128xf32>
    %379 = arith.mulf %378, %377 : vector<16x128xf32>
    %380 = arith.addf %375, %379 : vector<16x128xf32>
    %cst_157 = arith.constant 0.797884583 : f32
    %381 = vector.broadcast %cst_157 : f32 to vector<16x128xf32>
    %382 = arith.mulf %381, %380 : vector<16x128xf32>
    %383 = math.tanh %382 : vector<16x128xf32>
    %cst_158 = arith.constant 1.000000e+00 : f32
    %384 = vector.broadcast %cst_158 : f32 to vector<16x128xf32>
    %385 = arith.addf %384, %383 : vector<16x128xf32>
    %cst_159 = arith.constant 5.000000e-01 : f32
    %386 = vector.broadcast %cst_159 : f32 to vector<16x128xf32>
    %387 = arith.mulf %386, %385 : vector<16x128xf32>
    %388 = arith.mulf %375, %387 : vector<16x128xf32>
    %c1_160 = arith.constant 1 : index
    %c0_161 = arith.constant 0 : index
    %c0_162 = arith.constant 0 : index
    %389 = vector.load %arg13[%c1_160, %c0_161, %c0_162] : memref<2x128x64xf32, #tpu.memory_space<vmem>>, vector<1x128x64xf32>
    %390 = vector.shape_cast %389 : vector<1x128x64xf32> to vector<128x64xf32>
    %cst_163 = arith.constant dense<0.000000e+00> : vector<16x64xf32>
    %391 = tpu.matmul %388, %390, %cst_163 {dimension_numbers = #tpu.dot_dimension_numbers<[1], [0], [0], [1], [0, 0, 1, 1], [], []>} : vector<16x128xf32>, vector<128x64xf32>, vector<16x64xf32> -> vector<16x64xf32>
    %392 = arith.addf %342, %391 : vector<16x64xf32>
    %c1_164 = arith.constant 1 : index
    %c0_165 = arith.constant 0 : index
    %c0_166 = arith.constant 0 : index
    %393 = vector.load %arg14[%c1_164, %c0_165, %c0_166] : memref<2x1x64xf32, #tpu.memory_space<vmem>>, vector<1x1x64xf32>
    %394 = vector.shape_cast %393 : vector<1x1x64xf32> to vector<1x64xf32>
    %395 = vector.broadcast %394 : vector<1x64xf32> to vector<16x64xf32>
    %396 = arith.addf %392, %395 : vector<16x64xf32>
    %c0_167 = arith.constant 0 : index
    %c0_168 = arith.constant 0 : index
    %397 = vector.load %arg15[%c0_167, %c0_168] : memref<1x64xf32, #tpu.memory_space<vmem>>, vector<1x64xf32>
    %c0_169 = arith.constant 0 : index
    %c0_170 = arith.constant 0 : index
    %398 = vector.load %arg16[%c0_169, %c0_170] : memref<1x64xf32, #tpu.memory_space<vmem>>, vector<1x64xf32>
    %cst_171 = arith.constant dense<0.000000e+00> : vector<16xf32>
    %399 = vector.multi_reduction <add>, %396, %cst_171 [1] : vector<16x64xf32> to vector<16xf32>
    %400 = vector.shape_cast %399 : vector<16xf32> to vector<16x1xf32>
    %cst_172 = arith.constant 6.400000e+01 : f32
    %401 = vector.broadcast %cst_172 : f32 to vector<16x1xf32>
    %402 = arith.divf %400, %401 : vector<16x1xf32>
    %403 = vector.broadcast %402 : vector<16x1xf32> to vector<16x64xf32>
    %404 = arith.subf %396, %403 : vector<16x64xf32>
    %405 = arith.mulf %404, %404 : vector<16x64xf32>
    %cst_173 = arith.constant dense<0.000000e+00> : vector<16xf32>
    %406 = vector.multi_reduction <add>, %405, %cst_173 [1] : vector<16x64xf32> to vector<16xf32>
    %407 = vector.shape_cast %406 : vector<16xf32> to vector<16x1xf32>
    %cst_174 = arith.constant 6.400000e+01 : f32
    %408 = vector.broadcast %cst_174 : f32 to vector<16x1xf32>
    %409 = arith.divf %407, %408 : vector<16x1xf32>
    %410 = vector.broadcast %402 : vector<16x1xf32> to vector<16x64xf32>
    %411 = arith.subf %396, %410 : vector<16x64xf32>
    %cst_175 = arith.constant 9.99999974E-6 : f32
    %412 = vector.broadcast %cst_175 : f32 to vector<16x1xf32>
    %413 = arith.addf %409, %412 : vector<16x1xf32>
    %414 = math.rsqrt %413 : vector<16x1xf32>
    %415 = vector.broadcast %414 : vector<16x1xf32> to vector<16x64xf32>
    %416 = arith.mulf %411, %415 : vector<16x64xf32>
    %417 = vector.broadcast %397 : vector<1x64xf32> to vector<16x64xf32>
    %418 = arith.mulf %416, %417 : vector<16x64xf32>
    %419 = vector.broadcast %398 : vector<1x64xf32> to vector<16x64xf32>
    %420 = arith.addf %418, %419 : vector<16x64xf32>
    %c0_176 = arith.constant 0 : index
    %c0_177 = arith.constant 0 : index
    %421 = vector.load %arg17[%c0_176, %c0_177] : memref<64x64xf32, #tpu.memory_space<vmem>>, vector<64x64xf32>
    %cst_178 = arith.constant dense<0.000000e+00> : vector<16x64xf32>
    %422 = tpu.matmul %420, %421, %cst_178 {dimension_numbers = #tpu.dot_dimension_numbers<[1], [0], [0], [1], [0, 0, 1, 1], [], []>} : vector<16x64xf32>, vector<64x64xf32>, vector<16x64xf32> -> vector<16x64xf32>
    %c0_179 = arith.constant 0 : index
    %c0_180 = arith.constant 0 : index
    %423 = vector.load %arg18[%c0_179, %c0_180] : memref<1x64xf32, #tpu.memory_space<vmem>>, vector<1x64xf32>
    %424 = vector.broadcast %423 : vector<1x64xf32> to vector<16x64xf32>
    %425 = arith.addf %422, %424 : vector<16x64xf32>
    %c0_181 = arith.constant 0 : index
    %c0_182 = arith.constant 0 : index
    %426 = vector.load %arg19[%c0_181, %c0_182] : memref<64x256xf32, #tpu.memory_space<vmem>>, vector<64x256xf32>
    %cst_183 = arith.constant dense<0.000000e+00> : vector<16x256xf32>
    %427 = tpu.matmul %425, %426, %cst_183 {dimension_numbers = #tpu.dot_dimension_numbers<[1], [0], [0], [1], [0, 0, 1, 1], [], []>} : vector<16x64xf32>, vector<64x256xf32>, vector<16x256xf32> -> vector<16x256xf32>
    %c0_184 = arith.constant 0 : index
    %c0_185 = arith.constant 0 : index
    %428 = vector.load %arg20[%c0_184, %c0_185] : memref<1x256xf32, #tpu.memory_space<vmem>>, vector<1x256xf32>
    %429 = vector.broadcast %428 : vector<1x256xf32> to vector<16x256xf32>
    %430 = arith.addf %427, %429 : vector<16x256xf32>
    %c0_186 = arith.constant 0 : index
    %c0_187 = arith.constant 0 : index
    %c0_188 = arith.constant 0 : index
    %431 = vector.load %arg22[%c0_186, %c0_187, %c0_188] : memref<1x16x64xf32, #tpu.memory_space<vmem>>, vector<1x16x64xf32>
    %432 = vector.shape_cast %431 : vector<1x16x64xf32> to vector<16x64xf32>
    %433 = vector.shape_cast %425 : vector<16x64xf32> to vector<1x16x64xf32>
    tpu.vector_store %arg22[%c0_186, %c0_187, %c0_188], %433 {strides = array<i32>} : memref<1x16x64xf32, #tpu.memory_space<vmem>>, vector<1x16x64xf32>,
    %c0_189 = arith.constant 0 : index
    %c0_190 = arith.constant 0 : index
    %c0_191 = arith.constant 0 : index
    %434 = vector.load %arg21[%c0_189, %c0_190, %c0_191] : memref<1x16x256xf32, #tpu.memory_space<vmem>>, vector<1x16x256xf32>
    %435 = vector.shape_cast %434 : vector<1x16x256xf32> to vector<16x256xf32>
    %436 = vector.shape_cast %430 : vector<16x256xf32> to vector<1x16x256xf32>
    tpu.vector_store %arg21[%c0_189, %c0_190, %c0_191], %436 {strides = array<i32>} : memref<1x16x256xf32, #tpu.memory_space<vmem>>, vector<1x16x256xf32>,
    return
  }
  func.func @transform_0(%arg0: i32) -> (i32, i32, i32) {
    %c0_i32 = arith.constant 0 : i32
    %c0_i32_0 = arith.constant 0 : i32
    %c0_i32_1 = arith.constant 0 : i32
    return %arg0, %c0_i32, %c0_i32_0 : i32, i32, i32
  }
  func.func @transform_1(%arg0: i32) -> (i32, i32, i32) {
    %c0_i32 = arith.constant 0 : i32
    %c0_i32_0 = arith.constant 0 : i32
    %c0_i32_1 = arith.constant 0 : i32
    return %arg0, %c0_i32, %c0_i32_0 : i32, i32, i32
  }
  func.func @transform_2(%arg0: i32) -> (i32, i32, i32) {
    %c0_i32 = arith.constant 0 : i32
    %c0_i32_0 = arith.constant 0 : i32
    %c0_i32_1 = arith.constant 0 : i32
    %c0_i32_2 = arith.constant 0 : i32
    return %c0_i32, %c0_i32_0, %c0_i32_1 : i32, i32, i32
  }
  func.func @transform_3(%arg0: i32) -> (i32, i32, i32) {
    %c0_i32 = arith.constant 0 : i32
    %c0_i32_0 = arith.constant 0 : i32
    %c0_i32_1 = arith.constant 0 : i32
    %c0_i32_2 = arith.constant 0 : i32
    return %c0_i32, %c0_i32_0, %c0_i32_1 : i32, i32, i32
  }
  func.func @transform_4(%arg0: i32) -> (i32, i32, i32) {
    %c0_i32 = arith.constant 0 : i32
    %c0_i32_0 = arith.constant 0 : i32
    %c0_i32_1 = arith.constant 0 : i32
    %c0_i32_2 = arith.constant 0 : i32
    return %c0_i32, %c0_i32_0, %c0_i32_1 : i32, i32, i32
  }
  func.func @transform_5(%arg0: i32) -> (i32, i32, i32) {
    %c0_i32 = arith.constant 0 : i32
    %c0_i32_0 = arith.constant 0 : i32
    %c0_i32_1 = arith.constant 0 : i32
    %c0_i32_2 = arith.constant 0 : i32
    return %c0_i32, %c0_i32_0, %c0_i32_1 : i32, i32, i32
  }
  func.func @transform_6(%arg0: i32) -> (i32, i32, i32) {
    %c0_i32 = arith.constant 0 : i32
    %c0_i32_0 = arith.constant 0 : i32
    %c0_i32_1 = arith.constant 0 : i32
    %c0_i32_2 = arith.constant 0 : i32
    return %c0_i32, %c0_i32_0, %c0_i32_1 : i32, i32, i32
  }
  func.func @transform_7(%arg0: i32) -> (i32, i32, i32) {
    %c0_i32 = arith.constant 0 : i32
    %c0_i32_0 = arith.constant 0 : i32
    %c0_i32_1 = arith.constant 0 : i32
    %c0_i32_2 = arith.constant 0 : i32
    return %c0_i32, %c0_i32_0, %c0_i32_1 : i32, i32, i32
  }
  func.func @transform_8(%arg0: i32) -> (i32, i32, i32) {
    %c0_i32 = arith.constant 0 : i32
    %c0_i32_0 = arith.constant 0 : i32
    %c0_i32_1 = arith.constant 0 : i32
    %c0_i32_2 = arith.constant 0 : i32
    return %c0_i32, %c0_i32_0, %c0_i32_1 : i32, i32, i32
  }
  func.func @transform_9(%arg0: i32) -> (i32, i32, i32) {
    %c0_i32 = arith.constant 0 : i32
    %c0_i32_0 = arith.constant 0 : i32
    %c0_i32_1 = arith.constant 0 : i32
    %c0_i32_2 = arith.constant 0 : i32
    return %c0_i32, %c0_i32_0, %c0_i32_1 : i32, i32, i32
  }
  func.func @transform_10(%arg0: i32) -> (i32, i32, i32) {
    %c0_i32 = arith.constant 0 : i32
    %c0_i32_0 = arith.constant 0 : i32
    %c0_i32_1 = arith.constant 0 : i32
    %c0_i32_2 = arith.constant 0 : i32
    return %c0_i32, %c0_i32_0, %c0_i32_1 : i32, i32, i32
  }
  func.func @transform_11(%arg0: i32) -> (i32, i32, i32) {
    %c0_i32 = arith.constant 0 : i32
    %c0_i32_0 = arith.constant 0 : i32
    %c0_i32_1 = arith.constant 0 : i32
    %c0_i32_2 = arith.constant 0 : i32
    return %c0_i32, %c0_i32_0, %c0_i32_1 : i32, i32, i32
  }
  func.func @transform_12(%arg0: i32) -> (i32, i32, i32) {
    %c0_i32 = arith.constant 0 : i32
    %c0_i32_0 = arith.constant 0 : i32
    %c0_i32_1 = arith.constant 0 : i32
    %c0_i32_2 = arith.constant 0 : i32
    return %c0_i32, %c0_i32_0, %c0_i32_1 : i32, i32, i32
  }
  func.func @transform_13(%arg0: i32) -> (i32, i32, i32) {
    %c0_i32 = arith.constant 0 : i32
    %c0_i32_0 = arith.constant 0 : i32
    %c0_i32_1 = arith.constant 0 : i32
    %c0_i32_2 = arith.constant 0 : i32
    return %c0_i32, %c0_i32_0, %c0_i32_1 : i32, i32, i32
  }
  func.func @transform_14(%arg0: i32) -> (i32, i32) {
    %c0_i32 = arith.constant 0 : i32
    %c0_i32_0 = arith.constant 0 : i32
    %c0_i32_1 = arith.constant 0 : i32
    return %c0_i32, %c0_i32_0 : i32, i32
  }
  func.func @transform_15(%arg0: i32) -> (i32, i32) {
    %c0_i32 = arith.constant 0 : i32
    %c0_i32_0 = arith.constant 0 : i32
    %c0_i32_1 = arith.constant 0 : i32
    return %c0_i32, %c0_i32_0 : i32, i32
  }
  func.func @transform_16(%arg0: i32) -> (i32, i32) {
    %c0_i32 = arith.constant 0 : i32
    %c0_i32_0 = arith.constant 0 : i32
    %c0_i32_1 = arith.constant 0 : i32
    return %c0_i32, %c0_i32_0 : i32, i32
  }
  func.func @transform_17(%arg0: i32) -> (i32, i32) {
    %c0_i32 = arith.constant 0 : i32
    %c0_i32_0 = arith.constant 0 : i32
    %c0_i32_1 = arith.constant 0 : i32
    return %c0_i32, %c0_i32_0 : i32, i32
  }
  func.func @transform_18(%arg0: i32) -> (i32, i32) {
    %c0_i32 = arith.constant 0 : i32
    %c0_i32_0 = arith.constant 0 : i32
    %c0_i32_1 = arith.constant 0 : i32
    return %c0_i32, %c0_i32_0 : i32, i32
  }
  func.func @transform_19(%arg0: i32) -> (i32, i32) {
    %c0_i32 = arith.constant 0 : i32
    %c0_i32_0 = arith.constant 0 : i32
    %c0_i32_1 = arith.constant 0 : i32
    return %c0_i32, %c0_i32_0 : i32, i32
  }
  func.func @transform_20(%arg0: i32) -> (i32, i32, i32) {
    %c0_i32 = arith.constant 0 : i32
    %c0_i32_0 = arith.constant 0 : i32
    %c0_i32_1 = arith.constant 0 : i32
    return %arg0, %c0_i32, %c0_i32_0 : i32, i32, i32
  }
  func.func @transform_21(%arg0: i32) -> (i32, i32, i32) {
    %c0_i32 = arith.constant 0 : i32
    %c0_i32_0 = arith.constant 0 : i32
    %c0_i32_1 = arith.constant 0 : i32
    return %arg0, %c0_i32, %c0_i32_0 : i32, i32, i32
  }
}

</mosaic_0001>

<bundles_post_ra>
// kernel: stp_forward.1
= control target key start
LH: loop header
LB: loop body
LE: loop exit
PB: predicated region body
PF: predicated region fallthrough
CT: control target
= control target key end

     0   :  { %s4194_s0 = inlined_call_operand.vmem [shape: f32[2,16,64], index: 0, kind: input, shape index: {}]   ;;  %s4195_s1 = inlined_call_operand.vmem [shape: f32[2,1,16], index: 1, kind: input, shape index: {}]   ;;  %s4196_s2 = inlined_call_operand.vmem [shape: f32[2,1,64], index: 2, kind: input, shape index: {}]   ;;  %s4197_s3 = inlined_call_operand.vmem [shape: f32[2,1,64], index: 3, kind: input, shape index: {}]   ;;  %s4198_s4 = inlined_call_operand.vmem [shape: f32[2,64,192], index: 4, kind: input, shape index: {}]   ;;  %s4199_s5 = inlined_call_operand.vmem [shape: f32[2,1,192], index: 5, kind: input, shape index: {}]   ;;  %s4200_s6 = inlined_call_operand.vmem [shape: f32[2,64,64], index: 6, kind: input, shape index: {}]   ;;  %s4201_s7 = inlined_call_operand.vmem [shape: f32[2,1,64], index: 7, kind: input, shape index: {}]   ;;  %s4202_s8 = inlined_call_operand.vmem [shape: f32[2,1,64], index: 8, kind: input, shape index: {}]   ;;  %s4203_s9 = inlined_call_operand.vmem [shape: f32[2,1,64], index: 9, kind: input, shape index: {}]   ;;  %s4204_s10 = inlined_call_operand.vmem [shape: f32[2,64,128], index: 10, kind: input, shape index: {}]   ;;  %s4205_s11 = inlined_call_operand.vmem [shape: f32[2,1,128], index: 11, kind: input, shape index: {}]   ;;  %s4206_s12 = inlined_call_operand.vmem [shape: f32[2,128,64], index: 12, kind: input, shape index: {}]   ;;  %s4207_s13 = inlined_call_operand.vmem [shape: f32[2,1,64], index: 13, kind: input, shape index: {}]   ;;  %s4208_s14 = inlined_call_operand.vmem [shape: f32[1,64], index: 14, kind: input, shape index: {}]   ;;  %s4209_s15 = inlined_call_operand.vmem [shape: f32[1,64], index: 15, kind: input, shape index: {}]   ;;  %s4210_s16 = inlined_call_operand.vmem [shape: f32[64,64], index: 16, kind: input, shape index: {}]   ;;  %s4211_s17 = inlined_call_operand.vmem [shape: f32[1,64], index: 17, kind: input, shape index: {}]   ;;  %s4212_s18 = inlined_call_operand.vmem [shape: f32[64,256], index: 18, kind: input, shape index: {}]   ;;  %s4213_s19 = inlined_call_operand.vmem [shape: f32[1,256], index: 19, kind: input, shape index: {}]   ;;  %s4214_s20 = inlined_call_operand.hbm [shape: f32[2,16,256], index: 20, kind: output, shape index: {0}]   ;;  %s4215_s21 = inlined_call_operand.hbm [shape: f32[2,16,64], index: 21, kind: output, shape index: {1}]  }
   0x1   :  { %4244 = sst [smem:[#allocation14_spill]] %s4194_s0 }
   0x2   :  { %4245 = sst [smem:[#allocation15_spill]] %s4195_s1 }
   0x3   :  { %4246 = sst [smem:[#allocation16_spill]] %s4196_s2 }
   0x4   :  { %4247 = sst [smem:[#allocation17_spill]] %s4197_s3 }
   0x5   :  { %4248 = sst [smem:[#allocation18_spill]] %s4198_s4 }
   0x6   :  { %4249 = sst [smem:[#allocation19_spill]] %s4199_s5 }
   0x7   :  { %4250 = sst [smem:[#allocation20_spill]] %s4200_s6 }
   0x8   :  { %4251 = sst [smem:[#allocation21_spill]] %s4201_s7 }
   0x9   :  { %4252 = sst [smem:[#allocation22_spill]] %s4202_s8 }
   0xa   :  { %4253 = sst [smem:[#allocation23_spill]] %s4203_s9 }
   0xb   :  { %4254 = sst [smem:[#allocation24_spill]] %s4204_s10 }
   0xc   :  { %4255 = sst [smem:[#allocation25_spill]] %s4213_s19 }
   0xd   :  { %4256 = sst [smem:[#allocation26_spill]] %s4214_s20 }
   0xe   :  { %4257 = sst [smem:[#allocation27_spill]] %s4215_s21 }
   0xf   :  { %27 = vsyncpa [#allocation3], 0 }
  0x10   :  { %29 = vsyncpa [#allocation3 + $0x1], 0 }
  0x11   :  { %30 = vsyncpa [#allocation5], 0 }
  0x12   :  { %32 = vsyncpa [#allocation5 + $0x1], 0  ;;  %s3267_s2 = smov 0   ;;  %s3269_s25 = smov 0  }
  0x13   :  { %s3271_s26 = smov 0   ;;  %s3273_s27 = smov 0  }
  0x14 LB: > { %4258 = sst [smem:[#allocation8_spill]] %s3132_s2  ;;  %s3288_s3 = sadd.s32 4294967295, %s3144_s27   ;;  %s3144_s27 = sphi %s3273_s27, %s4296_s27   ;;  %s3140_s26 = sphi %s3271_s26, %s4298_s26   ;;  %s3136_s25 = sphi %s3269_s25, %s4300_s25   ;;  %s3132_s2 = sphi %s3267_s2, %s4299_s2  }
  0x15   : > { %4259 = sst [smem:[#allocation9_spill]] %s3140_s26  ;;  %s2693_s28 = sadd.s32 4294967294, %s3144_s27  }
  0x16   : > { %4260 = sst [smem:[#allocation10_spill]] %s3144_s27  ;;  %s3292_s29 = sadd.s32 1, %s3144_s27  }
  0x17   : > { %4261 = sst [smem:[#allocation11_spill]] %s3292_s29  ;;  %s475_s0 = sadd.s32 1, %s3140_s26 }
  0x18   : > { %s472_s4 = ssub.s32 %s3144_s27, %s3292_s29  ;;  %p485_p0 = scmp.ne.s32.totalorder %s3140_s26, %s3136_s25 }
  0x19   : > { %p473_p1 = scmp.eq.s32.totalorder %s472_s4, 0  ;;  %p486_p2 = scmp.eq.s32.totalorder %s3288_s3, 1 }
  0x1a   : > { %p491_p3 = scmp.ne.s32.totalorder %s3136_s25, %s3132_s2  ;;  %p492_p4 = scmp.eq.s32.totalorder %s2693_s28, 1 }
  0x1b   : > { %s3303_s30 = scalar_select %p473_p1, %s3140_s26, %s475_s0  }
  0x1c   : > { %p3305_p5 = por %p486_p2, %p485_p0  ;;  %p3309_p6 = por %p492_p4, %p491_p3 }
  0x1d   : > { %4262 = sst [smem:[#allocation12_spill]] %s3303_s30  ;;  %p2696_p7 = scmp.ge.s32.totalorder %s3144_s27, 1 }
  0x1e   : > { %s4264_s22 = scalar_select %p3309_p6, 1, 0 }
  0x1f   : > { %p604_p8 = scmp.lt.s32.totalorder %s3144_s27, 3 }
  0x20   : > { %4265 = sst [smem:[#allocation13_spill]] %s4264_s22 }
  0x21   : > { %p605_p9 = pnand %p2696_p7, %p604_p8 }
  0x22   : > { %p672_p10 = scmp.lt.s32.totalorder (!%p605_p9), %s3288_s3, 1  ;;  %s4266_s0 = sld [smem:[#allocation15_spill]] (!%p605_p9) }
  0x23   : > { %608 = sbr.rel (%p605_p9) target bundleno = 4643 (0x1223), region = 100  ;;  %s4267_s29 = sld [smem:[#allocation14_spill]] (!%p605_p9) }
  0x24   : > { %s4238_s26 = smov (!%p605_p9), 64   ;;  %s4234_s24 = smov (!%p605_p9), 96  }
  0x25   : > { %s4230_s28 = smov (!%p605_p9), 48   ;;  %s4236_s27 = smov (!%p605_p9), 112  }
  0x26   : > { %s4228_s22 = smov (!%p605_p9), 16   ;;  %s4277_s6 = sld [smem:[#allocation20_spill]] (!%p605_p9) }
  0x27   : > { %s4278_s7 = sld [smem:[#allocation21_spill]] (!%p605_p9)  ;;  %s4284_s19 = smov (!%p605_p9), 112  }
  0x28   : > { %s673_s23 = scalar_select %p672_p10, %s3288_s3, 1  ;;  %vm692_vm0 = vcmask 523264   ;;  %v3146_v4 = vmov 64.0   ;;  %vm842_vm8 = vcmask 130048  }
  0x29   : > { %2955 = vrcp.f32 %v3146_v4  ;;  %s4279_s10 = sld [smem:[#allocation24_spill]]  ;;  %s4285_s21 = smov 16  }
  0x2a   : > { %s2847_s1 = sshll.u32 %s673_s23, 4  ;;  %s3320_s4 = scalar_lea.vmem %s4266_s0, %s673_s23 }
  0x2b   : > { %s676_s2 = scalar_lea.vmem %s4267_s29, %s2847_s1  ;;  %s4268_s29 = sld [smem:[#allocation18_spill]] }
  0x2c   : > { %v3325_v0 = vld [vmem:[%s676_s2] sm:$0xff]  ;;  %v3329_v2 = vld [vmem:[%s676_s2 + $0x8] sm:$0xff]  ;;  %s4269_s1 = sld [smem:[#allocation16_spill]]  ;;  %s4226_s23 = smov 32  }
  0x2d   : > { %v693_v1 = vsel %vm692_vm0, %v3325_v0, 0.0  ;;  %v696_v3 = vsel %vm692_vm0, %v3329_v2, 0.0  ;;  %s4270_s0 = sld [smem:[#allocation17_spill]]  ;;  %s4286_s20 = smov 32  }
  0x2e   : > { %694 = vadd.xlane.f32.xlu0 %v693_v1  ;;  %s4271_s2 = sld [smem:[#allocation19_spill]] }
  0x2f   : > { %v2956_v5 = vpop.eup %2955  ;;  %s4280_s8 = sld [smem:[#allocation22_spill]] }
  0x30   : > { %v700_v6 = vmul.f32 64.0, %v2956_v5  ;;  %vm704_vm1 = vweird.f32 %v2956_v5  ;;  %s4281_s9 = sld [smem:[#allocation23_spill]] }
  0x31   : > { %v768_v21 = vld [vmem:[%s4268_s29 + $0x70] sm:$0xff]  ;;  %v769_v22 = vld [vmem:[%s4268_s29 + $0x78] sm:$0xff]  ;;  %v766_v23 = vld [vmem:[%s4268_s29 + $0x60] sm:$0xff] }
  0x32   : > { %v701_v7 = vsub.f32 1.0, %v700_v6  ;;  %790 = vmatpush.msra.mxu0 %v768_v21  ;;  %813 = vmatpush.msra.mxu1 %v769_v22  ;;  %v767_v24 = vld [vmem:[%s4268_s29 + $0x68] sm:$0xff]  ;;  %v764_v25 = vld [vmem:[%s4268_s29 + $0x50] sm:$0xff]  ;;  %v765_v26 = vld [vmem:[%s4268_s29 + $0x58] sm:$0xff] }
  0x33   : > { %v762_v27 = vld [vmem:[%s4268_s29 + $0x40] sm:$0xff]  ;;  %v763_v28 = vld [vmem:[%s4268_s29 + $0x48] sm:$0xff]  ;;  %v760_v29 = vld [vmem:[%s4268_s29 + $0x30] sm:$0xff] }
  0x34   : > { %v702_v8 = vmul.f32 %v2956_v5, %v701_v7  ;;  %791 = vmatpush.msra.mxu0 %v766_v23  ;;  %814 = vmatpush.msra.mxu1 %v767_v24  ;;  %v761_v30 = vld [vmem:[%s4268_s29 + $0x38] sm:$0xff]  ;;  %v758_v31 = vld [vmem:[%s4268_s29 + $0x20] sm:$0xff]  ;;  %v759_v32 = vld [vmem:[%s4268_s29 + $0x28] sm:$0xff]  ;;  %s4272_s30 = smov %s4271_s2 }
  0x35   : > { %v756_v33 = vld [vmem:[%s4268_s29 + $0x10] sm:$0xff]  ;;  %v757_v34 = vld [vmem:[%s4268_s29 + $0x18] sm:$0xff]  ;;  %v754_v35 = vld [vmem:[%s4268_s29] sm:$0xff] }
  0x36   : > { %697 = vadd.xlane.f32.xlu0 %v696_v3  ;;  %v703_v9 = vadd.f32 %v2956_v5, %v702_v8  ;;  %792 = vmatpush.msra.mxu0 %v764_v25  ;;  %v755_v36 = vld [vmem:[%s4268_s29 + $0x8] sm:$0xff]  ;;  %v2938_v51 = vld [vmem:[%s4269_s1] ss:$0 sm:$0xff] }
  0x37   : > { %815 = vmatpush.msra.mxu1 %v765_v26  ;;  %v2939_v55 = vld [vmem:[%s4270_s0] ss:$0 sm:$0xff] }
  0x38   : > { %v3333_v10 = vsel %vm704_vm1, %v2956_v5, %v703_v9  ;;  %793 = vmatpush.msra.mxu0 %v762_v27  ;;  %v770_v5 = vld [vmem:[%s4271_s2] sm:$0x3]  ;;  %s4283_s2 = smov 48  }
  0x39   : > { %816 = vmatpush.msra.mxu1 %v763_v28  ;;  %v772_v6 = vperm.slane %v770_v5, 0  ;;  %v773_v7 = vperm.slane %v770_v5, 1 }
  0x3a   : > { %794 = vmatpush.msra.mxu0 %v760_v29 }
  0x3b   : > { %817 = vmatpush.msra.mxu1 %v761_v30 }
  0x3c   : > { %795 = vmatpush.msra.mxu0 %v758_v31 }
  0x3d   : > { %818 = vmatpush.msra.mxu1 %v759_v32 }
  0x3e   : > { %796 = vmatpush.msra.mxu0 %v756_v33 }
  0x3f   : > { %819 = vmatpush.msra.mxu1 %v757_v34 }
  0x40   : > { %797 = vmatpush.msra.mxu0 %v754_v35 }
  0x41   : > { %820 = vmatpush.msra.mxu1 %v755_v36 }
  0xa1   : > { %v695_v11 = vpop.xlane.xlu0 %694 }
  0xa2   : > { %v706_v12 = vmul.f32 %v3333_v10, %v695_v11 }
  0xa4   : > { %v3337_v13 = vsub.f32 %v3325_v0, %v706_v12 }
  0xa6   : > { %v710_v14 = vmul.f32 %v3337_v13, %v3337_v13 }
  0xa8   : > { %v712_v15 = vsel %vm692_vm0, %v710_v14, 0.0 }
  0xa9   : > { %713 = vadd.xlane.f32.xlu1 %v712_v15  ;;  %v698_v16 = vpop.xlane.xlu0 %697 }
  0xaa   : > { %v707_v17 = vmul.f32 %v3333_v10, %v698_v16 }
  0xac   : > { %v3344_v18 = vsub.f32 %v3329_v2, %v707_v17  ;;  %v683_v17 = vlaneseq }
  0xae   : > { %v711_v19 = vmul.f32 %v3344_v18, %v3344_v18 }
  0xb0   : > { %v715_v20 = vsel %vm692_vm0, %v711_v19, 0.0  ;;  %v687_v19 = vand.u32 127, %v683_v17 }
  0xb1   : > { %716 = vadd.xlane.f32.xlu1 %v715_v20  ;;  %v3441_v20 = vld [vmem:[%s3320_s4] ss:$0 sm:$0xff] }
 0x11c   : > { %v714_v37 = vpop.xlane.xlu1 %713 }
 0x11d   : > { %v718_v38 = vmul.f32 %v714_v37, %v3333_v10 }
 0x11f   : > { %v720_v39 = vadd.f32 1e-05, %v718_v38 }
 0x121   : > { %2957 = vrsqrt.f32 %v720_v39  ;;  %vm728_vm3 = vweird.f32 %v720_v39 }
 0x124   : > { %v717_v40 = vpop.xlane.xlu1 %716 }
 0x125   : > { %v719_v41 = vmul.f32 %v717_v40, %v3333_v10 }
 0x127   : > { %v2958_v42 = vpop.eup %2957  ;;  %v721_v43 = vadd.f32 1e-05, %v719_v41 }
 0x128   : > { %v723_v44 = vmul.f32 %v2958_v42, %v720_v39  ;;  %vm729_vm2 = vweird.f32 %v2958_v42 }
 0x129   : > { %2959 = vrsqrt.f32 %v721_v43  ;;  %vm730_vm4 = vmor %vm728_vm3, %vm729_vm2  ;;  %vm738_vm6 = vweird.f32 %v721_v43 }
 0x12a   : > { %v724_v45 = vmul.f32 %v2958_v42, %v723_v44 }
 0x12c   : > { %v725_v46 = vmul.f32 0.5, %v724_v45 }
 0x12e   : > { %v726_v47 = vsub.f32 1.5, %v725_v46 }
 0x12f   : > { %v2960_v48 = vpop.eup %2959 }
 0x130   : > { %v727_v49 = vmul.f32 %v2958_v42, %v726_v47  ;;  %v733_v50 = vmul.f32 %v2960_v48, %v721_v43  ;;  %vm739_vm5 = vweird.f32 %v2960_v48  ;;  %v828_v43 = vld [vmem:[%s4277_s6] sm:$0xff] }
 0x131   : > { %vm740_vm7 = vmor %vm738_vm6, %vm739_vm5 }
 0x132   : > { %v731_v52 = vsel %vm730_vm4, %v2958_v42, %v727_v49  ;;  %v734_v53 = vmul.f32 %v2960_v48, %v733_v50  ;;  %v829_v42 = vld [vmem:[%s4277_s6 + $0x8] sm:$0xff] }
 0x133   : > { %v742_v54 = vmul.f32 %v731_v52, %v3337_v13  ;;  %1087 = vmatpush.msrb.mxu1 %v829_v42 }
 0x134   : > { %v735_v56 = vmul.f32 0.5, %v734_v53 }
 0x135   : > { %v747_v57 = vmul.f32 %v2938_v51, %v742_v54  ;;  %1088 = vmatpush.msrb.mxu1 %v828_v43 }
 0x136   : > { %v736_v58 = vsub.f32 1.5, %v735_v56 }
 0x137   : > { %v752_v59 = vadd.f32 %v2939_v55, %v747_v57 }
 0x138   : > { %v737_v60 = vmul.f32 %v2960_v48, %v736_v58 }
 0x139   : > { %2701 = vmatmul.msk.f32.vlgmr.msra.gmra.mxu0 %vm692_vm0, %v752_v59  ;;  %2703 = vmatmul.msk.f32.vlgmr.msra.gmra.mxu1 %vm692_vm0, %v752_v59 }
 0x13a   : > { %v741_v61 = vsel %vm740_vm7, %v2960_v48, %v737_v60 }
 0x13b   : > { %v743_v62 = vmul.f32 %v741_v61, %v3344_v18  ;;  %v684_v18 = vshrl.u32 %v683_v17, 7 }
 0x13d   : > { %v748_v63 = vmul.f32 %v2938_v51, %v743_v62  ;;  %vm3443_vm9 = vcmp.le.s32.totalorder %v687_v19, %v684_v18  ;;  %v685_v26 = vadd.s32 8, %v684_v18 }
 0x13f   : > { %v753_v1 = vadd.f32 %v2939_v55, %v748_v63  ;;  %vm3451_vm10 = vcmp.le.s32.totalorder %v687_v19, %v685_v26 }
 0x141   : > { %2702 = vmatmul.msk.f32.gmra.mxu0 %vm692_vm0, %v753_v1  ;;  %2704 = vmatmul.msk.f32.gmra.mxu1 %vm692_vm0, %v753_v1 }
 0x1b6   : > { %v799_v3 = vpop.f32.mrf.mxu0  ;;  %v822_v4 = vpop.f32.mrf.mxu1 }
 0x1b7   : > { %v3418_v13 = vadd.f32 %v822_v4, %v773_v7  ;;  %v3424_v14 = vadd.f32 %v799_v3, %v772_v6 }
 0x1be   : > { %v802_v8 = vpop.f32.mrf.mxu0  ;;  %v825_v9 = vpop.f32.mrf.mxu1 }
 0x1bf   : > { %v3414_v11 = vadd.f32 %v802_v8, %v772_v6  ;;  %v3416_v12 = vadd.f32 %v825_v9, %v773_v7 }
 0x1c1   : > { %2850 = vmatpush.msra.mxu3 %v3416_v12  ;;  %840 = vrot.lane.b32.xlu2 %v3414_v11, %s4238_s26  ;;  %v3495_v50 = vpack.i.bf16 %v3418_v13, %v3416_v12 }
 0x1c3   : > { %2851 = vmatpush.msra.mxu3 %v3418_v13 }
 0x1c9   : > { %838 = vrot.lane.b32.xlu2 %v3424_v14, %s4238_s26  ;;  %s4287_s26 = smov 96  }
 0x1d1   : > { %1102 = vrot.lane.b32.xlu2 %v3414_v11, %s4226_s23 }
 0x1d9   : > { %1096 = vrot.lane.b32.xlu2 %v3424_v14, %s4234_s24 }
 0x21b   : > { %v841_v15 = vpop.permute.xlu2 %840 }
 0x21c   : > { %2705 = vmatpush.xpose.msk.msra.mxu2 %vm842_vm8, %v841_v15 }
 0x223   : > { %v839_v16 = vpop.permute.xlu2 %838 }
 0x224   : > { %2706 = vmatpush.xpose.msk.msra.mxu2 %vm842_vm8, %v839_v16 }
 0x227   : > { %2707 = vmatmul.msk.f32.vlgmr.msra.gmra.mxu2 %vm842_vm8, %v3424_v14 }
 0x228   : > { %921 = vmatpush.msrb.mxu2 %v3416_v12 }
 0x22a   : > { %922 = vmatpush.msrb.mxu2 %v3418_v13 }
 0x22b   : > { %v1103_v48 = vpop.permute.xlu2 %1102 }
 0x22f   : > { %2708 = vmatmul.msk.f32.gmra.mxu2 %vm842_vm8, %v3414_v11 }
 0x233   : > { %v1097_v54 = vpop.permute.xlu2 %1096 }
 0x2aa   : > { %v868_v22 = vpop.f32.mrf.mxu2 }
 0x2ab   : > { %v874_v23 = vmul.f32 0.25, %v868_v22 }
 0x2ad   : > { %v876_v24 = vsel %vm3443_vm9, %v874_v23, -1e+30 }
 0x2ae   : > { %v881_v25 = vadd.f32 %v3441_v20, %v876_v24 }
 0x2b0   : > { %v883_v27 = vsel %vm842_vm8, %v881_v25, -inf }
 0x2b1   : > { %884 = vmax.xlane.f32.xlu0 %v883_v27 }
 0x2b2   : > { %v871_v29 = vpop.f32.mrf.mxu2 }
 0x2b3   : > { %v875_v30 = vmul.f32 0.25, %v871_v29 }
 0x2b5   : > { %v877_v31 = vsel %vm3451_vm10, %v875_v30, -1e+30 }
 0x2b6   : > { %v882_v32 = vadd.f32 %v3441_v20, %v877_v31 }
 0x2b8   : > { %v886_v33 = vsel %vm842_vm8, %v882_v32, -inf }
 0x2b9   : > { %887 = vmax.xlane.f32.xlu1 %v886_v33 }
 0x2c5   : > { %940 = vrot.lane.b32.xlu0 %v3414_v11, %s4230_s28 }
 0x2d2   : > { %938 = vrot.lane.b32.xlu1 %v3424_v14, %s4230_s28 }
 0x2da   : > { %934 = vrot.lane.b32.xlu1 %v3424_v14, %s4236_s27 }
 0x2e2   : > { %936 = vrot.lane.b32.xlu1 %v3414_v11, %s4236_s27 }
 0x2ea   : > { %1235 = vrot.lane.b32.xlu1 %v3414_v11, %s4228_s22 }
 0x2f2   : > { %1100 = vrot.lane.b32.xlu1 %v3424_v14, %s4226_s23  ;;  %s4232_s23 = smov 80  }
 0x2fa   : > { %1233 = vrot.lane.b32.xlu1 %v3424_v14, %s4228_s22  ;;  %s4282_s22 = smov 64  }
 0x302   : > { %1098 = vrot.lane.b32.xlu1 %v3414_v11, %s4234_s24 }
 0x324   : > { %v885_v34 = vpop.xlane.xlu0 %884 }
 0x325   : > { %v889_v35 = vsub.f32 %v881_v25, %v885_v34 }
 0x327   : > { %v891_v36 = vmul.f32 1.442695, %v889_v35 }
 0x329   : > { %2961 = vpow2.f32 %v891_v36 }
 0x32c   : > { %v888_v37 = vpop.xlane.xlu1 %887 }
 0x32d   : > { %v890_v38 = vsub.f32 %v882_v32, %v888_v37 }
 0x32f   : > { %v2962_v39 = vpop.eup %2961  ;;  %v893_v40 = vmul.f32 1.442695, %v890_v38 }
 0x330   : > { %2709 = vmatmul.msk.f32.vlgmr.msrb.gmra.mxu2 %vm842_vm8, %v2962_v39  ;;  %v895_v41 = vsel %vm842_vm8, %v2962_v39, 0.0 }
 0x331   : > { %2963 = vpow2.f32 %v893_v40  ;;  %896 = vadd.xlane.f32.xlu2 %v895_v41 }
 0x337   : > { %v2964_v44 = vpop.eup %2963  ;;  %v941_v45 = vpop.permute.xlu0 %940 }
 0x338   : > { %2710 = vmatmul.msk.f32.vlgmr.msra.gmra.mxu3 %vm842_vm8, %v2964_v44  ;;  %v898_v46 = vsel %vm842_vm8, %v2964_v44, 0.0 }
 0x339   : > { %2711 = vmatpush.xpose.msk.msrb.mxu3 %vm842_vm8, %v941_v45  ;;  %899 = vadd.xlane.f32.xlu0 %v898_v46 }
 0x344   : > { %v939_v47 = vpop.permute.xlu1 %938 }
 0x345   : > { %2712 = vmatpush.xpose.msk.msrb.mxu3 %vm842_vm8, %v939_v47 }
 0x349   : > { %2721 = vmatpush.xpose.msk.msra.mxu3 %vm842_vm8, %v1103_v48  ;;  %1231 = vrot.lane.b32.xlu2 %v3414_v11, %s4232_s23 }
 0x34c   : > { %v935_v49 = vpop.permute.xlu1 %934 }
 0x34d   : > { %1229 = vrot.lane.b32.xlu0 %v3424_v14, %s4232_s23  ;;  %2713 = vmatmul.msk.f32.vlgmr.msrb.gmra.mxu3 %vm842_vm8, %v935_v49 }
 0x354   : > { %v937_v51 = vpop.permute.xlu1 %936 }
 0x355   : > { %2908 = vrot.lane.b32.xlu0 %v3495_v50, %s4236_s27  ;;  %2714 = vmatmul.msk.f32.gmra.mxu3 %vm842_vm8, %v937_v51 }
 0x35c   : > { %v1236_v52 = vpop.permute.xlu1 %1235 }
 0x35d   : > { %2729 = vmatpush.xpose.msk.msra.mxu1 %vm842_vm8, %v1236_v52 }
 0x364   : > { %v1101_v53 = vpop.permute.xlu1 %1100 }
 0x365   : > { %2722 = vmatpush.xpose.msk.msra.mxu3 %vm842_vm8, %v1101_v53 }
 0x368   : > { %2723 = vmatmul.msk.f32.vlgmr.msra.gmra.mxu3 %vm842_vm8, %v1097_v54 }
 0x36c   : > { %v1234_v55 = vpop.permute.xlu1 %1233 }
 0x36d   : > { %2730 = vmatpush.xpose.msk.msra.mxu1 %vm842_vm8, %v1234_v55 }
 0x374   : > { %v1099_v56 = vpop.permute.xlu1 %1098 }
 0x375   : > { %2724 = vmatmul.msk.f32.gmra.mxu3 %vm842_vm8, %v1099_v56 }
 0x3a4   : > { %v897_v57 = vpop.xlane.xlu2 %896 }
 0x3a5   : > { %2965 = vrcp.f32 %v897_v57 }
 0x3ab   : > { %v2966_v59 = vpop.eup %2965 }
 0x3ac   : > { %v900_v58 = vpop.xlane.xlu0 %899  ;;  %v1232_v7 = vpop.permute.xlu2 %1231 }
 0x3ad   : > { %2967 = vrcp.f32 %v900_v58 }
 0x3b3   : > { %v924_v60 = vpop.f32.mrf.mxu2  ;;  %v2968_v62 = vpop.eup %2967 }
 0x3b4   : > { %v932_v61 = vmul.f32 %v2966_v59, %v924_v60 }
 0x3b6   : > { %2719 = vmatmul.msk.f32.vlgmr.msrb.gmra.mxu1 %vm842_vm8, %v932_v61 }
 0x3bb   : > { %v927_v63 = vpop.f32.mrf.mxu3 }
 0x3bc   : > { %v933_v1 = vmul.f32 %v2968_v62, %v927_v63 }
 0x3be   : > { %2720 = vmatmul.msk.f32.gmra.mxu1 %vm842_vm8, %v933_v1 }
 0x3bf   : > { %v1230_v3 = vpop.permute.xlu0 %1229 }
 0x3c6   : > { %2731 = vmatmul.msk.f32.vlgmr.msra.gmra.mxu1 %vm842_vm8, %v1230_v3 }
 0x3c7   : > { %v2909_v4 = vpop.permute.xlu0 %2908 }
 0x3c8   : > { %v2910_v5 = vunpack.i.l.bf16 %v2909_v4  ;;  %v2911_v6 = vunpack.i.h.bf16 %v2909_v4 }
 0x3ca   : > { %1025 = vmatpush.msra.mxu2 %v2910_v5  ;;  %v830_v5 = vld [vmem:[%s4277_s6 + $0x10] sm:$0xff] }
 0x3cc   : > { %1026 = vmatpush.msra.mxu2 %v2911_v6 }
 0x3ce   : > { %2732 = vmatmul.msk.f32.gmra.mxu1 %vm842_vm8, %v1232_v7 }
 0x3d0   : > { %v967_v8 = vpop.f32.mrf.mxu3 }
 0x3d1   : > { %v973_v9 = vmul.f32 0.25, %v967_v8 }
 0x3d3   : > { %v975_v11 = vsel %vm3443_vm9, %v973_v9, -1e+30 }
 0x3d4   : > { %v977_v12 = vadd.f32 %v3441_v20, %v975_v11 }
 0x3d6   : > { %v979_v13 = vsel %vm842_vm8, %v977_v12, -inf }
 0x3d7   : > { %980 = vmax.xlane.f32.xlu1 %v979_v13 }
 0x3d8   : > { %v970_v14 = vpop.f32.mrf.mxu3 }
 0x3d9   : > { %v974_v15 = vmul.f32 0.25, %v970_v14 }
 0x3db   : > { %v976_v16 = vsel %vm3451_vm10, %v974_v15, -1e+30 }
 0x3dc   : > { %v978_v17 = vadd.f32 %v3441_v20, %v976_v16 }
 0x3de   : > { %v982_v18 = vsel %vm842_vm8, %v978_v17, -inf }
 0x3df   : > { %983 = vmax.xlane.f32.xlu2 %v982_v18 }
 0x3eb   : > { %v1129_v19 = vpop.f32.mrf.mxu3 }
 0x3ec   : > { %v1135_v22 = vmul.f32 0.25, %v1129_v19 }
 0x3ee   : > { %v1137_v23 = vsel %vm3443_vm9, %v1135_v22, -1e+30 }
 0x3ef   : > { %v1139_v24 = vadd.f32 %v3441_v20, %v1137_v23 }
 0x3f1   : > { %v1141_v25 = vsel %vm842_vm8, %v1139_v24, -inf }
 0x3f2   : > { %1142 = vmax.xlane.f32.xlu2 %v1141_v25 }
 0x3f8   : > { %v1132_v26 = vpop.f32.mrf.mxu3 }
 0x3f9   : > { %v1136_v27 = vmul.f32 0.25, %v1132_v26 }
 0x3fb   : > { %v1138_v29 = vsel %vm3451_vm10, %v1136_v27, -1e+30 }
 0x3fc   : > { %v1140_v30 = vadd.f32 %v3441_v20, %v1138_v29 }
 0x3fe   : > { %v1144_v31 = vsel %vm842_vm8, %v1140_v30, -inf }
 0x3ff   : > { %1145 = vmax.xlane.f32.xlu1 %v1144_v31  ;;  %v835_v31 = vld [vmem:[%s4277_s6 + $0x38] sm:$0xff] }
 0x40a   : > { %2913 = vrot.lane.b32.xlu2 %v3495_v50, %s4232_s23  ;;  %s2849_s23 = sshll.u32 %s3288_s3, 4 }
 0x433   : > { %v3527_v32 = vpop.f32.mrf.mxu1 }
 0x43b   : > { %v3529_v33 = vpop.f32.mrf.mxu1 }
 0x443   : > { %v1262_v34 = vpop.f32.mrf.mxu1 }
 0x444   : > { %v1268_v35 = vmul.f32 0.25, %v1262_v34  ;;  %v834_v34 = vld [vmem:[%s4277_s6 + $0x30] sm:$0xff] }
 0x446   : > { %v1270_v36 = vsel %vm3443_vm9, %v1268_v35, -1e+30 }
 0x447   : > { %v1272_v37 = vadd.f32 %v3441_v20, %v1270_v36 }
 0x449   : > { %v1274_v38 = vsel %vm842_vm8, %v1272_v37, -inf }
 0x44a   : > { %v981_v39 = vpop.xlane.xlu1 %980  ;;  %1275 = vmax.xlane.f32.xlu0 %v1274_v38  ;;  %v832_v38 = vld [vmem:[%s4277_s6 + $0x20] sm:$0xff] }
 0x44b   : > { %v985_v40 = vsub.f32 %v977_v12, %v981_v39  ;;  %v1265_v41 = vpop.f32.mrf.mxu1 }
 0x44c   : > { %v1269_v42 = vmul.f32 0.25, %v1265_v41 }
 0x44d   : > { %v987_v43 = vmul.f32 1.442695, %v985_v40 }
 0x44e   : > { %v1271_v44 = vsel %vm3451_vm10, %v1269_v42, -1e+30 }
 0x44f   : > { %2969 = vpow2.f32 %v987_v43  ;;  %v1273_v45 = vadd.f32 %v3441_v20, %v1271_v44 }
 0x451   : > { %v1277_v46 = vsel %vm842_vm8, %v1273_v45, -inf }
 0x452   : > { %1278 = vmax.xlane.f32.xlu1 %v1277_v46  ;;  %v984_v47 = vpop.xlane.xlu2 %983 }
 0x453   : > { %v986_v48 = vsub.f32 %v978_v17, %v984_v47 }
 0x455   : > { %v2970_v49 = vpop.eup %2969  ;;  %v989_v51 = vmul.f32 1.442695, %v986_v48 }
 0x456   : > { %2715 = vmatmul.msk.f32.vlgmr.msra.gmra.mxu2 %vm842_vm8, %v2970_v49  ;;  %v991_v52 = vsel %vm842_vm8, %v2970_v49, 0.0 }
 0x457   : > { %2971 = vpow2.f32 %v989_v51  ;;  %992 = vadd.xlane.f32.xlu0 %v991_v52 }
 0x45d   : > { %v2972_v53 = vpop.eup %2971 }
 0x45e   : > { %2716 = vmatmul.msk.f32.gmra.mxu2 %vm842_vm8, %v2972_v53  ;;  %v994_v54 = vsel %vm842_vm8, %v2972_v53, 0.0 }
 0x45f   : > { %995 = vadd.xlane.f32.xlu0 %v994_v54 }
 0x465   : > { %v1143_v20 = vpop.xlane.xlu2 %1142 }
 0x466   : > { %v1147_v55 = vsub.f32 %v1139_v24, %v1143_v20 }
 0x468   : > { %v1149_v56 = vmul.f32 1.442695, %v1147_v55 }
 0x46a   : > { %2973 = vpow2.f32 %v1149_v56 }
 0x46b   : > { %2918 = vrot.lane.b32.xlu1 %v3495_v50, %s4234_s24  ;;  %v831_v50 = vld [vmem:[%s4277_s6 + $0x18] sm:$0xff] }
 0x46c   : > { %1058 = vmatpush.msrb.mxu0 %v831_v50 }
 0x46d   : > { %v2914_v57 = vpop.permute.xlu2 %2913 }
 0x46e   : > { %v2915_v58 = vunpack.i.l.bf16 %v2914_v57  ;;  %v2916_v60 = vunpack.i.h.bf16 %v2914_v57  ;;  %1059 = vmatpush.msrb.mxu0 %v830_v5 }
 0x470   : > { %v2974_v59 = vpop.eup %2973  ;;  %1318 = vmatpush.msrb.mxu3 %v2915_v58 }
 0x471   : > { %v1153_v61 = vsel %vm842_vm8, %v2974_v59, 0.0 }
 0x472   : > { %1154 = vadd.xlane.f32.xlu0 %v1153_v61  ;;  %1319 = vmatpush.msrb.mxu3 %v2916_v60  ;;  %v1146_v62 = vpop.xlane.xlu1 %1145  ;;  %v2940_v60 = vld [vmem:[%s4278_s7] ss:$0 sm:$0xff] }
 0x473   : > { %v1148_v63 = vsub.f32 %v1140_v30, %v1146_v62 }
 0x475   : > { %v1151_v1 = vmul.f32 1.442695, %v1148_v63 }
 0x477   : > { %2975 = vpow2.f32 %v1151_v1 }
 0x47d   : > { %v2976_v3 = vpop.eup %2975 }
 0x47e   : > { %v1156_v4 = vsel %vm842_vm8, %v2976_v3, 0.0 }
 0x495   : > { %1157 = vadd.xlane.f32.xlu1 %v1156_v4 }
 0x4bd   : > { %v1276_v6 = vpop.xlane.xlu0 %1275 }
 0x4be   : > { %v1280_v7 = vsub.f32 %v1272_v37, %v1276_v6  ;;  %v833_v37 = vld [vmem:[%s4277_s6 + $0x28] sm:$0xff] }
 0x4bf   : > { %1218 = vmatpush.msra.mxu0 %v833_v37 }
 0x4c0   : > { %v1282_v8 = vmul.f32 1.442695, %v1280_v7 }
 0x4c1   : > { %1219 = vmatpush.msra.mxu0 %v832_v38 }
 0x4c2   : > { %2977 = vpow2.f32 %v1282_v8 }
 0x4c5   : > { %v1279_v9 = vpop.xlane.xlu1 %1278 }
 0x4c6   : > { %v1281_v11 = vsub.f32 %v1273_v45, %v1279_v9 }
 0x4c8   : > { %v2978_v12 = vpop.eup %2977  ;;  %v1284_v13 = vmul.f32 1.442695, %v1281_v11 }
 0x4c9   : > { %2733 = vmatmul.msk.f32.vlgmr.msrb.gmra.mxu3 %vm842_vm8, %v2978_v12  ;;  %v1286_v14 = vsel %vm842_vm8, %v2978_v12, 0.0 }
 0x4ca   : > { %2979 = vpow2.f32 %v1284_v13  ;;  %1287 = vadd.xlane.f32.xlu2 %v1286_v14  ;;  %v993_v15 = vpop.xlane.xlu0 %992 }
 0x4cb   : > { %2981 = vrcp.f32 %v993_v15 }
 0x4d0   : > { %v2980_v16 = vpop.eup %2979 }
 0x4d1   : > { %2734 = vmatmul.msk.f32.gmra.mxu3 %vm842_vm8, %v2980_v16  ;;  %v1289_v17 = vsel %vm842_vm8, %v2980_v16, 0.0  ;;  %v2982_v19 = vpop.eup %2981  ;;  %v1433_v16 = vld [vmem:[%s4279_s10 + $0x38] sm:$0xff] }
 0x4d2   : > { %1290 = vadd.xlane.f32.xlu0 %v1289_v17  ;;  %v996_v18 = vpop.xlane.xlu0 %995  ;;  %v1432_v17 = vld [vmem:[%s4279_s10 + $0x30] sm:$0xff] }
 0x4d3   : > { %2983 = vrcp.f32 %v996_v18  ;;  %v1431_v18 = vld [vmem:[%s4279_s10 + $0x28] sm:$0xff] }
 0x4d9   : > { %v1028_v22 = vpop.f32.mrf.mxu2  ;;  %v2984_v27 = vpop.eup %2983 }
 0x4da   : > { %v1036_v23 = vmul.f32 %v2982_v19, %v1028_v22  ;;  %v1430_v19 = vld [vmem:[%s4279_s10 + $0x20] sm:$0xff]  ;;  %v1429_v22 = vld [vmem:[%s4279_s10 + $0x18] sm:$0xff] }
 0x4dc   : > { %2717 = vmatmul.msk.f32.vlgmr.msrb.gmra.mxu0 %vm842_vm8, %v1036_v23  ;;  %v1428_v23 = vld [vmem:[%s4279_s10 + $0x10] sm:$0xff] }
 0x4dd   : > { %v2919_v24 = vpop.permute.xlu1 %2918  ;;  %1452 = vmatpush.msrb.mxu0 %v1433_v16 }
 0x4de   : > { %v2920_v25 = vunpack.i.l.bf16 %v2919_v24  ;;  %v2921_v26 = vunpack.i.h.bf16 %v2919_v24  ;;  %v1427_v24 = vld [vmem:[%s4279_s10 + $0x8] sm:$0xff] }
 0x4df   : > { %1453 = vmatpush.msrb.mxu0 %v1432_v17 }
 0x4e0   : > { %1185 = vmatpush.msrb.mxu2 %v2920_v25  ;;  %v1426_v25 = vld [vmem:[%s4279_s10] sm:$0xff] }
 0x4e1   : > { %v1031_v29 = vpop.f32.mrf.mxu2  ;;  %1454 = vmatpush.msrb.mxu0 %v1431_v18 }
 0x4e2   : > { %v1037_v30 = vmul.f32 %v2984_v27, %v1031_v29  ;;  %1186 = vmatpush.msrb.mxu2 %v2921_v26 }
 0x4e3   : > { %2725 = vmatmul.msk.f32.vlgmr.msrb.gmra.mxu2 %vm842_vm8, %v2974_v59  ;;  %1455 = vmatpush.msrb.mxu0 %v1430_v19 }
 0x4e4   : > { %2718 = vmatmul.msk.f32.gmra.mxu0 %vm842_vm8, %v1037_v30  ;;  %1351 = vmatpush.msra.mxu2 %v835_v31  ;;  %v1500_v30 = vld [vmem:[%s4206_s12 + $0x78] sm:$0xff]  ;;  %v1499_v31 = vld [vmem:[%s4206_s12 + $0x70] sm:$0xff] }
 0x4e5   : > { %v1155_v35 = vpop.xlane.xlu0 %1154  ;;  %1456 = vmatpush.msrb.mxu0 %v1429_v22  ;;  %1501 = vmatpush.msrb.mxu1 %v1500_v30 }
 0x4e6   : > { %1352 = vmatpush.msra.mxu2 %v834_v34  ;;  %v1498_v34 = vld [vmem:[%s4206_s12 + $0x68] sm:$0xff] }
 0x4e7   : > { %1457 = vmatpush.msrb.mxu0 %v1428_v23  ;;  %1502 = vmatpush.msrb.mxu1 %v1499_v31 }
 0x4e9   : > { %1458 = vmatpush.msrb.mxu0 %v1427_v24  ;;  %1503 = vmatpush.msrb.mxu1 %v1498_v34 }
 0x4eb   : > { %2726 = vmatmul.msk.f32.gmra.mxu2 %vm842_vm8, %v2976_v3  ;;  %1459 = vmatpush.msrb.mxu0 %v1426_v25 }
 0x508   : > { %v1158_v46 = vpop.xlane.xlu1 %1157 }
 0x53d   : > { %v1288_v36 = vpop.xlane.xlu2 %1287 }
 0x53e   : > { %2985 = vrcp.f32 %v1288_v36 }
 0x544   : > { %v2986_v40 = vpop.eup %2985 }
 0x545   : > { %v1291_v39 = vpop.xlane.xlu0 %1290 }
 0x546   : > { %2987 = vrcp.f32 %v1291_v39 }
 0x547   : > { %2989 = vrcp.f32 %v1155_v35 }
 0x548   : > { %2991 = vrcp.f32 %v1158_v46  ;;  %v2941_v46 = vld [vmem:[%s4280_s8] ss:$0 sm:$0xff] }
 0x54c   : > { %v1321_v41 = vpop.f32.mrf.mxu3  ;;  %v2988_v43 = vpop.eup %2987 }
 0x54d   : > { %v1329_v42 = vmul.f32 %v2986_v40, %v1321_v41  ;;  %v2990_v47 = vpop.eup %2989 }
 0x54e   : > { %v2992_v51 = vpop.eup %2991 }
 0x54f   : > { %2735 = vmatmul.msk.f32.vlgmr.msra.gmra.mxu2 %vm842_vm8, %v1329_v42 }
 0x554   : > { %v1324_v44 = vpop.f32.mrf.mxu3 }
 0x555   : > { %v1330_v45 = vmul.f32 %v2988_v43, %v1324_v44 }
 0x557   : > { %2736 = vmatmul.msk.f32.gmra.mxu2 %vm842_vm8, %v1330_v45 }
 0x559   : > { %v1061_v54 = vpop.f32.mrf.mxu0 }
 0x55a   : > { %v1091_v55 = vadd.f32 %v3527_v32, %v1061_v54 }
 0x561   : > { %v1064_v20 = vpop.f32.mrf.mxu0 }
 0x562   : > { %v1094_v62 = vadd.f32 %v3529_v33, %v1064_v20 }
 0x566   : > { %v1188_v48 = vpop.f32.mrf.mxu2 }
 0x567   : > { %v1196_v49 = vmul.f32 %v2990_v47, %v1188_v48 }
 0x569   : > { %2727 = vmatmul.msk.f32.vlgmr.msra.gmra.mxu0 %vm842_vm8, %v1196_v49 }
 0x56e   : > { %v1191_v52 = vpop.f32.mrf.mxu2 }
 0x56f   : > { %v1197_v53 = vmul.f32 %v2992_v51, %v1191_v52  ;;  %v2942_v51 = vld [vmem:[%s4281_s9] ss:$0 sm:$0xff] }
 0x571   : > { %2728 = vmatmul.msk.f32.gmra.mxu0 %vm842_vm8, %v1197_v53 }
 0x5d2   : > { %v1354_v56 = vpop.f32.mrf.mxu2 }
 0x5da   : > { %v1357_v32 = vpop.f32.mrf.mxu2 }
 0x5e6   : > { %v1221_v57 = vpop.f32.mrf.mxu0 }
 0x5e7   : > { %v1227_v58 = vadd.f32 %v1221_v57, %v1091_v55 }
 0x5e9   : > { %v1360_v59 = vadd.f32 %v1354_v56, %v1227_v58 }
 0x5eb   : > { %v1362_v61 = vadd.f32 %v1360_v59, %v3325_v0 }
 0x5ed   : > { %v3583_v63 = vadd.f32 %v2940_v60, %v1362_v61  ;;  %v1496_v61 = vld [vmem:[%s4206_s12 + $0x58] sm:$0xff] }
 0x5ee   : > { %v1224_v1 = vpop.f32.mrf.mxu0 }
 0x5ef   : > { %v1228_v3 = vadd.f32 %v1224_v1, %v1094_v62  ;;  %v1372_v4 = vsel %vm692_vm0, %v3583_v63, 0.0  ;;  %v1495_v62 = vld [vmem:[%s4206_s12 + $0x50] sm:$0xff]  ;;  %v1494_v1 = vld [vmem:[%s4206_s12 + $0x48] sm:$0xff] }
 0x5f0   : > { %1373 = vadd.xlane.f32.xlu0 %v1372_v4  ;;  %v1492_v4 = vld [vmem:[%s4206_s12 + $0x38] sm:$0xff] }
 0x5f1   : > { %v1361_v50 = vadd.f32 %v1357_v32, %v1228_v3  ;;  %v1493_v3 = vld [vmem:[%s4206_s12 + $0x40] sm:$0xff]  ;;  %v1491_v32 = vld [vmem:[%s4206_s12 + $0x30] sm:$0xff] }
 0x5f3   : > { %v1363_v5 = vadd.f32 %v1361_v50, %v3329_v2  ;;  %v1490_v50 = vld [vmem:[%s4206_s12 + $0x28] sm:$0xff] }
 0x5f5   : > { %v3588_v6 = vadd.f32 %v2940_v60, %v1363_v5  ;;  %v1497_v60 = vld [vmem:[%s4206_s12 + $0x60] sm:$0xff] }
 0x5f6   : > { %1504 = vmatpush.msrb.mxu1 %v1497_v60  ;;  %v1489_v5 = vld [vmem:[%s4206_s12 + $0x20] sm:$0xff] }
 0x5f7   : > { %v1375_v7 = vsel %vm692_vm0, %v3588_v6, 0.0  ;;  %v2749_v60 = vld [vmem:[%s4268_s29 + $0xc0] sm:$0xff] }
 0x5f8   : > { %1376 = vadd.xlane.f32.xlu0 %v1375_v7  ;;  %1505 = vmatpush.msrb.mxu1 %v1496_v61  ;;  %v1488_v7 = vld [vmem:[%s4206_s12 + $0x18] sm:$0xff]  ;;  %v2750_v61 = vld [vmem:[%s4268_s29 + $0xc8] sm:$0xff] }
 0x5fa   : > { %1506 = vmatpush.msrb.mxu1 %v1495_v62  ;;  %v2747_v62 = vld [vmem:[%s4268_s29 + $0xb0] sm:$0xff] }
 0x5fc   : > { %1507 = vmatpush.msrb.mxu1 %v1494_v1  ;;  %v2748_v1 = vld [vmem:[%s4268_s29 + $0xb8] sm:$0xff] }
 0x5fe   : > { %1508 = vmatpush.msrb.mxu1 %v1493_v3  ;;  %v2745_v3 = vld [vmem:[%s4268_s29 + $0xa0] sm:$0xff] }
 0x600   : > { %1509 = vmatpush.msrb.mxu1 %v1492_v4  ;;  %v2746_v4 = vld [vmem:[%s4268_s29 + $0xa8] sm:$0xff] }
 0x602   : > { %1510 = vmatpush.msrb.mxu1 %v1491_v32  ;;  %v2743_v32 = vld [vmem:[%s4268_s29 + $0x90] sm:$0xff] }
 0x604   : > { %1511 = vmatpush.msrb.mxu1 %v1490_v50  ;;  %v2744_v50 = vld [vmem:[%s4268_s29 + $0x98] sm:$0xff] }
 0x606   : > { %1512 = vmatpush.msrb.mxu1 %v1489_v5  ;;  %v2741_v5 = vld [vmem:[%s4268_s29 + $0x80] sm:$0xff] }
 0x608   : > { %1513 = vmatpush.msrb.mxu1 %v1488_v7  ;;  %v2742_v7 = vld [vmem:[%s4268_s29 + $0x88] sm:$0xff] }
 0x663   : > { %v1374_v0 = vpop.xlane.xlu0 %1373 }
 0x664   : > { %v1378_v33 = vmul.f32 %v1374_v0, %v3333_v10  ;;  %v1487_v0 = vld [vmem:[%s4206_s12 + $0x10] sm:$0xff] }
 0x665   : > { %1514 = vmatpush.msrb.mxu1 %v1487_v0 }
 0x666   : > { %v1380_v8 = vsub.f32 %v3583_v63, %v1378_v33  ;;  %v1486_v33 = vld [vmem:[%s4206_s12 + $0x8] sm:$0xff] }
 0x667   : > { %1515 = vmatpush.msrb.mxu1 %v1486_v33 }
 0x668   : > { %v1382_v9 = vmul.f32 %v1380_v8, %v1380_v8 }
 0x66a   : > { %v1384_v11 = vsel %vm692_vm0, %v1382_v9, 0.0  ;;  %v2943_v9 = vld [vmem:[%s4205_s11] ss:$0 sm:$0xff] }
 0x66b   : > { %1385 = vadd.xlane.f32.xlu0 %v1384_v11  ;;  %v1377_v12 = vpop.xlane.xlu0 %1376 }
 0x66c   : > { %v1379_v13 = vmul.f32 %v1377_v12, %v3333_v10 }
 0x66e   : > { %v1381_v2 = vsub.f32 %v3588_v6, %v1379_v13 }
 0x670   : > { %v1383_v14 = vmul.f32 %v1381_v2, %v1381_v2 }
 0x672   : > { %v1387_v15 = vsel %vm692_vm0, %v1383_v14, 0.0 }
 0x673   : > { %1388 = vadd.xlane.f32.xlu2 %v1387_v15 }
 0x6de   : > { %v1386_v26 = vpop.xlane.xlu0 %1385 }
 0x6df   : > { %v1390_v27 = vmul.f32 %v1386_v26, %v3333_v10 }
 0x6e1   : > { %v1392_v29 = vadd.f32 1e-05, %v1390_v27 }
 0x6e3   : > { %2993 = vrsqrt.f32 %v1392_v29  ;;  %vm1400_vm12 = vweird.f32 %v1392_v29 }
 0x6e6   : > { %v1389_v35 = vpop.xlane.xlu2 %1388 }
 0x6e7   : > { %v1391_v36 = vmul.f32 %v1389_v35, %v3333_v10 }
 0x6e9   : > { %v2994_v37 = vpop.eup %2993  ;;  %v1393_v38 = vadd.f32 1e-05, %v1391_v36 }
 0x6ea   : > { %v1395_v39 = vmul.f32 %v2994_v37, %v1392_v29  ;;  %vm1401_vm11 = vweird.f32 %v2994_v37 }
 0x6eb   : > { %2995 = vrsqrt.f32 %v1393_v38  ;;  %vm1402_vm13 = vmor %vm1400_vm12, %vm1401_vm11  ;;  %vm1410_vm15 = vweird.f32 %v1393_v38 }
 0x6ec   : > { %v1396_v40 = vmul.f32 %v2994_v37, %v1395_v39 }
 0x6ee   : > { %v1397_v41 = vmul.f32 0.5, %v1396_v40 }
 0x6f0   : > { %v1398_v42 = vsub.f32 1.5, %v1397_v41 }
 0x6f1   : > { %v2996_v43 = vpop.eup %2995 }
 0x6f2   : > { %v1399_v44 = vmul.f32 %v2994_v37, %v1398_v42  ;;  %v1405_v45 = vmul.f32 %v2996_v43, %v1393_v38  ;;  %vm1411_vm14 = vweird.f32 %v2996_v43 }
 0x6f3   : > { %vm1412_vm1 = vmor %vm1410_vm15, %vm1411_vm14 }
 0x6f4   : > { %v1403_v47 = vsel %vm1402_vm13, %v2994_v37, %v1399_v44  ;;  %v1406_v48 = vmul.f32 %v2996_v43, %v1405_v45  ;;  %v2944_v37 = vld [vmem:[%s4207_s13] ss:$0 sm:$0xff] }
 0x6f5   : > { %v1414_v49 = vmul.f32 %v1403_v47, %v1380_v8  ;;  %v1485_v8 = vld [vmem:[%s4206_s12] sm:$0xff] }
 0x6f6   : > { %v1407_v52 = vmul.f32 0.5, %v1406_v48  ;;  %1516 = vmatpush.msrb.mxu1 %v1485_v8 }
 0x6f7   : > { %v1419_v53 = vmul.f32 %v2941_v46, %v1414_v49 }
 0x6f8   : > { %v1408_v54 = vsub.f32 1.5, %v1407_v52 }
 0x6f9   : > { %v1424_v20 = vadd.f32 %v2942_v51, %v1419_v53 }
 0x6fa   : > { %v1409_v55 = vmul.f32 %v2996_v43, %v1408_v54 }
 0x6fb   : > { %2737 = vmatmul.msk.f32.vlgmr.msrb.gmra.mxu0 %vm692_vm0, %v1424_v20  ;;  %v2755_v20 = vld [vmem:[%s4268_s29 + $0xf0] sm:$0xff] }
 0x6fc   : > { %v1413_v56 = vsel %vm1412_vm1, %v2996_v43, %v1409_v55  ;;  %v2756_v55 = vld [vmem:[%s4268_s29 + $0xf8] sm:$0xff]  ;;  %1628 = vmatpush.msra.mxu3 %v2755_v20 }
 0x6fd   : > { %v1415_v57 = vmul.f32 %v1413_v56, %v1381_v2  ;;  %1651 = vmatpush.msrb.mxu2 %v2756_v55  ;;  %v2753_v56 = vld [vmem:[%s4268_s29 + $0xe0] sm:$0xff] }
 0x6fe   : > { %1629 = vmatpush.msra.mxu3 %v2753_v56 }
 0x6ff   : > { %v1420_v58 = vmul.f32 %v2941_v46, %v1415_v57  ;;  %v2754_v57 = vld [vmem:[%s4268_s29 + $0xe8] sm:$0xff] }
 0x700   : > { %1652 = vmatpush.msrb.mxu2 %v2754_v57  ;;  %v3809_v57 = vld [vmem:[%s3320_s4] ss:$0 sm:$0xff]  ;;  %s4288_s4 = smov 80  }
 0x701   : > { %v1425_v59 = vadd.f32 %v2942_v51, %v1420_v58  ;;  %v2751_v58 = vld [vmem:[%s4268_s29 + $0xd0] sm:$0xff] }
 0x702   : > { %1630 = vmatpush.msra.mxu3 %v2751_v58 }
 0x703   : > { %2738 = vmatmul.msk.f32.gmra.mxu0 %vm692_vm0, %v1425_v59  ;;  %v2752_v59 = vld [vmem:[%s4268_s29 + $0xd8] sm:$0xff] }
 0x704   : > { %1653 = vmatpush.msrb.mxu2 %v2752_v59  ;;  %1631 = vmatpush.msra.mxu3 %v2749_v60 }
 0x706   : > { %1654 = vmatpush.msrb.mxu2 %v2750_v61  ;;  %1632 = vmatpush.msra.mxu3 %v2747_v62 }
 0x708   : > { %1655 = vmatpush.msrb.mxu2 %v2748_v1  ;;  %1633 = vmatpush.msra.mxu3 %v2745_v3 }
 0x70a   : > { %1656 = vmatpush.msrb.mxu2 %v2746_v4  ;;  %1634 = vmatpush.msra.mxu3 %v2743_v32  ;;  %v2763_v4 = vld [vmem:[%s4277_s6 + $0x48] sm:$0xff]  ;;  %v2762_v32 = vld [vmem:[%s4277_s6 + $0x40] sm:$0xff] }
 0x70c   : > { %1657 = vmatpush.msrb.mxu2 %v2744_v50  ;;  %1635 = vmatpush.msra.mxu3 %v2741_v5 }
 0x70e   : > { %1658 = vmatpush.msrb.mxu2 %v2742_v7 }
 0x778   : > { %v1461_v11 = vpop.f32.mrf.mxu0 }
 0x779   : > { %v1462_v12 = vadd.f32 %v2943_v9, %v1461_v11 }
 0x77b   : > { %v1467_v13 = vmul.f32 %v1462_v12, %v1462_v12 }
 0x77d   : > { %v1469_v2 = vmul.f32 %v1467_v13, %v1462_v12 }
 0x77f   : > { %v1471_v14 = vmul.f32 0.044715, %v1469_v2 }
 0x780   : > { %v1464_v15 = vpop.f32.mrf.mxu0 }
 0x781   : > { %v1473_v16 = vadd.f32 %v1471_v14, %v1462_v12  ;;  %v1465_v17 = vadd.f32 %v2943_v9, %v1464_v15 }
 0x783   : > { %v1475_v18 = vmul.f32 0.7978846, %v1473_v16  ;;  %v1468_v19 = vmul.f32 %v1465_v17, %v1465_v17 }
 0x785   : > { %2997 = vtanh.f32 %v1475_v18  ;;  %v1470_v22 = vmul.f32 %v1468_v19, %v1465_v17 }
 0x787   : > { %v1472_v23 = vmul.f32 0.044715, %v1470_v22  ;;  %v2945_v22 = vld [vmem:[%s4269_s1 + $0x1] ss:$0 sm:$0xff] }
 0x789   : > { %v1474_v24 = vadd.f32 %v1472_v23, %v1465_v17 }
 0x78b   : > { %v2998_v25 = vpop.eup %2997  ;;  %v1476_v26 = vmul.f32 0.7978846, %v1474_v24 }
 0x78c   : > { %v1479_v27 = vadd.f32 1.0, %v2998_v25 }
 0x78d   : > { %2999 = vtanh.f32 %v1476_v26  ;;  %v2946_v26 = vld [vmem:[%s4270_s0 + $0x1] ss:$0 sm:$0xff] }
 0x78e   : > { %v1481_v29 = vmul.f32 0.5, %v1479_v27 }
 0x790   : > { %v1483_v30 = vmul.f32 %v1481_v29, %v1462_v12 }
 0x792   : > { %1517 = vmatmul.f32.vlgmr.msrb.gmra.mxu1 %v1483_v30 }
 0x793   : > { %v3000_v31 = vpop.eup %2999 }
 0x794   : > { %v1480_v34 = vadd.f32 1.0, %v3000_v31 }
 0x796   : > { %v1482_v35 = vmul.f32 0.5, %v1480_v34 }
 0x798   : > { %v1484_v36 = vmul.f32 %v1482_v35, %v1465_v17 }
 0x79a   : > { %1520 = vmatmul.f32.gmra.mxu1 %v1484_v36 }
 0x80f   : > { %v1518_v38 = vpop.f32.mrf.mxu1 }
 0x810   : > { %v1524_v39 = vadd.f32 %v1518_v38, %v3583_v63 }
 0x812   : > { %v3687_v40 = vadd.f32 %v2944_v37, %v1524_v39  ;;  %v2757_v39 = vld [vmem:[%s4272_s30 + $0x2] sm:$0x3] }
 0x814   : > { %v1536_v41 = vsel %vm692_vm0, %v3687_v40, 0.0 }
 0x815   : > { %1537 = vadd.xlane.f32.xlu0 %v1536_v41  ;;  %v1610_v41 = vperm.slane %v2757_v39, 0 }
 0x817   : > { %v1521_v42 = vpop.f32.mrf.mxu1 }
 0x818   : > { %v1525_v43 = vadd.f32 %v1521_v42, %v3588_v6 }
 0x81a   : > { %v3692_v44 = vadd.f32 %v2944_v37, %v1525_v43 }
 0x81c   : > { %v1539_v45 = vsel %vm692_vm0, %v3692_v44, 0.0 }
 0x81d   : > { %1540 = vadd.xlane.f32.xlu2 %v1539_v45 }
 0x888   : > { %v1538_v46 = vpop.xlane.xlu0 %1537 }
 0x889   : > { %v1542_v47 = vmul.f32 %v1538_v46, %v3333_v10  ;;  %v1611_v46 = vperm.slane %v2757_v39, 1 }
 0x88b   : > { %v3698_v63 = vsub.f32 %v3687_v40, %v1542_v47 }
 0x88d   : > { %v1546_v48 = vmul.f32 %v3698_v63, %v3698_v63 }
 0x88f   : > { %v1548_v49 = vsel %vm692_vm0, %v1546_v48, 0.0 }
 0x890   : > { %1549 = vadd.xlane.f32.xlu0 %v1548_v49  ;;  %v1541_v51 = vpop.xlane.xlu2 %1540 }
 0x891   : > { %v1543_v6 = vmul.f32 %v1541_v51, %v3333_v10 }
 0x893   : > { %v3705_v52 = vsub.f32 %v3692_v44, %v1543_v6 }
 0x895   : > { %v1547_v53 = vmul.f32 %v3705_v52, %v3705_v52 }
 0x897   : > { %v1551_v54 = vsel %vm692_vm0, %v1547_v53, 0.0 }
 0x898   : > { %1552 = vadd.xlane.f32.xlu1 %v1551_v54 }
 0x903   : > { %v1550_v0 = vpop.xlane.xlu0 %1549 }
 0x904   : > { %v1554_v33 = vmul.f32 %v1550_v0, %v3333_v10 }
 0x906   : > { %v1556_v8 = vadd.f32 1e-05, %v1554_v33 }
 0x908   : > { %3001 = vrsqrt.f32 %v1556_v8  ;;  %vm1564_vm3 = vweird.f32 %v1556_v8 }
 0x90b   : > { %v1553_v9 = vpop.xlane.xlu1 %1552 }
 0x90c   : > { %v1555_v11 = vmul.f32 %v1553_v9, %v3333_v10 }
 0x90e   : > { %v3002_v12 = vpop.eup %3001  ;;  %v1557_v13 = vadd.f32 1e-05, %v1555_v11 }
 0x90f   : > { %v1559_v2 = vmul.f32 %v3002_v12, %v1556_v8  ;;  %vm1565_vm2 = vweird.f32 %v3002_v12 }
 0x910   : > { %3003 = vrsqrt.f32 %v1557_v13  ;;  %vm1566_vm4 = vmor %vm1564_vm3, %vm1565_vm2  ;;  %vm1574_vm6 = vweird.f32 %v1557_v13 }
 0x911   : > { %v1560_v14 = vmul.f32 %v3002_v12, %v1559_v2 }
 0x913   : > { %v1561_v15 = vmul.f32 0.5, %v1560_v14 }
 0x915   : > { %v1562_v16 = vsub.f32 1.5, %v1561_v15 }
 0x916   : > { %v3004_v17 = vpop.eup %3003 }
 0x917   : > { %v1563_v18 = vmul.f32 %v3002_v12, %v1562_v16  ;;  %v1569_v19 = vmul.f32 %v3004_v17, %v1557_v13  ;;  %vm1575_vm5 = vweird.f32 %v3004_v17 }
 0x918   : > { %vm1576_vm7 = vmor %vm1574_vm6, %vm1575_vm5 }
 0x919   : > { %v1567_v23 = vsel %vm1566_vm4, %v3002_v12, %v1563_v18  ;;  %v1570_v24 = vmul.f32 %v3004_v17, %v1569_v19 }
 0x91a   : > { %v1578_v25 = vmul.f32 %v1567_v23, %v3698_v63 }
 0x91b   : > { %v1571_v27 = vmul.f32 0.5, %v1570_v24 }
 0x91c   : > { %v1583_v29 = vmul.f32 %v2945_v22, %v1578_v25 }
 0x91d   : > { %v1572_v30 = vsub.f32 1.5, %v1571_v27 }
 0x91e   : > { %v1588_v31 = vadd.f32 %v2946_v26, %v1583_v29 }
 0x91f   : > { %v1573_v34 = vmul.f32 %v3004_v17, %v1572_v30 }
 0x920   : > { %2758 = vmatmul.msk.f32.vlgmr.msra.gmra.mxu3 %vm692_vm0, %v1588_v31  ;;  %2760 = vmatmul.msk.f32.vlgmr.msrb.gmra.mxu2 %vm692_vm0, %v1588_v31 }
 0x921   : > { %v1577_v35 = vsel %vm1576_vm7, %v3004_v17, %v1573_v34 }
 0x922   : > { %v1579_v36 = vmul.f32 %v1577_v35, %v3705_v52 }
 0x924   : > { %v1584_v37 = vmul.f32 %v2945_v22, %v1579_v36 }
 0x926   : > { %v1589_v38 = vadd.f32 %v2946_v26, %v1584_v37 }
 0x928   : > { %2759 = vmatmul.msk.f32.gmra.mxu3 %vm692_vm0, %v1589_v38  ;;  %2761 = vmatmul.msk.f32.gmra.mxu2 %vm692_vm0, %v1589_v38 }
 0x9a3   : > { %v1637_v42 = vpop.f32.mrf.mxu3  ;;  %v1660_v43 = vpop.f32.mrf.mxu2 }
 0x9a4   : > { %v3775_v45 = vadd.f32 %v1637_v42, %v1610_v41  ;;  %v1661_v48 = vadd.f32 %v1660_v43, %v1611_v46 }
 0x9a6   : > { %1677 = vrot.lane.b32.xlu0 %v3775_v45, %s4282_s22 }
 0x9ab   : > { %v1640_v47 = vpop.f32.mrf.mxu3  ;;  %v1663_v63 = vpop.f32.mrf.mxu2 }
 0x9ac   : > { %v3779_v49 = vadd.f32 %v1640_v47, %v1610_v41  ;;  %v1664_v51 = vadd.f32 %v1663_v63, %v1611_v46 }
 0x9ae   : > { %1756 = vmatpush.msrb.mxu3 %v1664_v51  ;;  %1775 = vrot.lane.b32.xlu0 %v3779_v49, %s4283_s2  ;;  %v3783_v6 = vpack.i.bf16 %v1661_v48, %v1664_v51 }
 0x9af   : > { %1679 = vrot.lane.b32.xlu2 %v3779_v49, %s4282_s22 }
 0x9b0   : > { %1757 = vmatpush.msrb.mxu3 %v1661_v48 }
 0x9b2   : > { %1922 = vmatpush.msra.mxu3 %v2763_v4 }
 0x9b4   : > { %1923 = vmatpush.msra.mxu3 %v2762_v32 }
 0x9b6   : > { %1769 = vrot.lane.b32.xlu0 %v3775_v45, %s4284_s19 }
 0x9be   : > { %2070 = vrot.lane.b32.xlu0 %v3779_v49, %s4285_s21 }
 0x9c6   : > { %1771 = vrot.lane.b32.xlu0 %v3779_v49, %s4284_s19 }
 0x9ce   : > { %2068 = vrot.lane.b32.xlu0 %v3775_v45, %s4285_s21 }
 0x9d6   : > { %1935 = vrot.lane.b32.xlu0 %v3775_v45, %s4286_s20 }
 0x9de   : > { %1933 = vrot.lane.b32.xlu0 %v3779_v49, %s4287_s26 }
 0xa09   : > { %v1680_v52 = vpop.permute.xlu2 %1679 }
 0xa0a   : > { %2770 = vmatpush.xpose.msk.msra.mxu0 %vm842_vm8, %v1680_v52 }
 0xa18   : > { %v1678_v53 = vpop.permute.xlu0 %1677 }
 0xa19   : > { %2771 = vmatpush.xpose.msk.msra.mxu0 %vm842_vm8, %v1678_v53 }
 0xa1c   : > { %2772 = vmatmul.msk.f32.vlgmr.msra.gmra.mxu0 %vm842_vm8, %v3775_v45 }
 0xa20   : > { %v1776_v54 = vpop.permute.xlu0 %1775 }
 0xa21   : > { %2776 = vmatpush.xpose.msk.msra.mxu2 %vm842_vm8, %v1776_v54 }
 0xa24   : > { %2773 = vmatmul.msk.f32.gmra.mxu0 %vm842_vm8, %v3779_v49 }
 0xa28   : > { %v1770_v50 = vpop.permute.xlu0 %1769 }
 0xa30   : > { %v2071_v5 = vpop.permute.xlu0 %2070 }
 0xa38   : > { %v1772_v8 = vpop.permute.xlu0 %1771 }
 0xa40   : > { %v2069_v14 = vpop.permute.xlu0 %2068 }
 0xa48   : > { %v1936_v19 = vpop.permute.xlu0 %1935 }
 0xa50   : > { %v1934_v34 = vpop.permute.xlu0 %1933 }
 0xa99   : > { %v1706_v20 = vpop.f32.mrf.mxu0 }
 0xa9a   : > { %v1712_v55 = vmul.f32 0.25, %v1706_v20 }
 0xa9c   : > { %v1714_v56 = vsel %vm3443_vm9, %v1712_v55, -1e+30 }
 0xa9d   : > { %v1716_v58 = vadd.f32 %v3809_v57, %v1714_v56 }
 0xa9f   : > { %v1718_v59 = vsel %vm842_vm8, %v1716_v58, -inf }
 0xaa0   : > { %1719 = vmax.xlane.f32.xlu1 %v1718_v59 }
 0xaa1   : > { %v1709_v60 = vpop.f32.mrf.mxu0 }
 0xaa2   : > { %v1713_v61 = vmul.f32 0.25, %v1709_v60 }
 0xaa4   : > { %v1715_v62 = vsel %vm3451_vm10, %v1713_v61, -1e+30 }
 0xaa5   : > { %v1717_v1 = vadd.f32 %v3809_v57, %v1715_v62 }
 0xaa7   : > { %v1721_v3 = vsel %vm842_vm8, %v1717_v1, -inf }
 0xaa8   : > { %1722 = vmax.xlane.f32.xlu1 %v1721_v3 }
 0xac1   : > { %1773 = vrot.lane.b32.xlu1 %v3775_v45, %s4283_s2  ;;  %s4289_s2 = sld [smem:[#allocation27_spill]] }
 0xac7   : > { %s4290_s0 = smov %s4289_s2 }
 0xac9   : > { %1937 = vrot.lane.b32.xlu1 %v3779_v49, %s4286_s20 }
 0xad1   : > { %2064 = vrot.lane.b32.xlu1 %v3775_v45, %s4288_s4 }
 0xb13   : > { %v1720_v7 = vpop.xlane.xlu1 %1719 }
 0xb14   : > { %v1724_v0 = vsub.f32 %v1716_v58, %v1720_v7 }
 0xb16   : > { %v1726_v33 = vmul.f32 1.442695, %v1724_v0 }
 0xb18   : > { %3005 = vpow2.f32 %v1726_v33 }
 0xb1b   : > { %v1723_v9 = vpop.xlane.xlu1 %1722 }
 0xb1c   : > { %v1725_v11 = vsub.f32 %v1717_v1, %v1723_v9 }
 0xb1e   : > { %v3006_v12 = vpop.eup %3005  ;;  %v1728_v13 = vmul.f32 1.442695, %v1725_v11 }
 0xb1f   : > { %2774 = vmatmul.msk.f32.vlgmr.msrb.gmra.mxu3 %vm842_vm8, %v3006_v12  ;;  %v1730_v2 = vsel %vm842_vm8, %v3006_v12, 0.0 }
 0xb20   : > { %3007 = vpow2.f32 %v1728_v13  ;;  %2794 = vmatpush.xpose.msk.msrb.mxu3 %vm842_vm8, %v2071_v5  ;;  %1731 = vadd.xlane.f32.xlu1 %v1730_v2 }
 0xb24   : > { %2795 = vmatpush.xpose.msk.msrb.mxu3 %vm842_vm8, %v2069_v14 }
 0xb26   : > { %v3008_v15 = vpop.eup %3007 }
 0xb27   : > { %2775 = vmatmul.msk.f32.gmra.mxu3 %vm842_vm8, %v3008_v15  ;;  %v1733_v16 = vsel %vm842_vm8, %v3008_v15, 0.0 }
 0xb28   : > { %1734 = vadd.xlane.f32.xlu2 %v1733_v16 }
 0xb33   : > { %v1774_v17 = vpop.permute.xlu1 %1773 }
 0xb34   : > { %2777 = vmatpush.xpose.msk.msra.mxu2 %vm842_vm8, %v1774_v17 }
 0xb37   : > { %2778 = vmatmul.msk.f32.vlgmr.msra.gmra.mxu2 %vm842_vm8, %v1770_v50 }
 0xb39   : > { %2066 = vrot.lane.b32.xlu1 %v3779_v49, %s4288_s4 }
 0xb3b   : > { %v1938_v18 = vpop.permute.xlu1 %1937 }
 0xb3c   : > { %2786 = vmatpush.xpose.msk.msrb.mxu2 %vm842_vm8, %v1938_v18 }
 0xb3f   : > { %2779 = vmatmul.msk.f32.gmra.mxu2 %vm842_vm8, %v1772_v8 }
 0xb40   : > { %1931 = vrot.lane.b32.xlu2 %v3775_v45, %s4287_s26  ;;  %2787 = vmatpush.xpose.msk.msrb.mxu2 %vm842_vm8, %v1936_v19 }
 0xb43   : > { %v2065_v22 = vpop.permute.xlu1 %2064 }
 0xb48   : > { %2923 = vrot.lane.b32.xlu2 %v3783_v6, %s4284_s19  ;;  %s4130_s19 = sand.u32 1, %s3136_s25  }
 0xb49   : > { %s2698_s20 = sshll.u32 %s4130_s19, 4 }
 0xb4a   : > { %s671_s24 = scalar_lea.vmem [#allocation4], %s2698_s20 }
 0xb4b   : > { %s2586_s27 = sshll.u32 %s671_s24, 4  ;;  %s2587_s27 = int_to_ptr.vmem [resolvable:$true] %s2586_s27 }
 0xb93   : > { %v1732_v23 = vpop.xlane.xlu1 %1731 }
 0xb94   : > { %3009 = vrcp.f32 %v1732_v23 }
 0xb9a   : > { %v3010_v25 = vpop.eup %3009 }
 0xb9b   : > { %v1735_v24 = vpop.xlane.xlu2 %1734 }
 0xb9c   : > { %3011 = vrcp.f32 %v1735_v24 }
 0xba2   : > { %v1759_v26 = vpop.f32.mrf.mxu3  ;;  %v3012_v30 = vpop.eup %3011 }
 0xba3   : > { %v1767_v27 = vmul.f32 %v3010_v25, %v1759_v26  ;;  %v1932_v29 = vpop.permute.xlu2 %1931 }
 0xba4   : > { %2788 = vmatmul.msk.f32.vlgmr.msrb.gmra.mxu2 %vm842_vm8, %v1932_v29 }
 0xba5   : > { %2784 = vmatmul.msk.f32.vlgmr.msra.gmra.mxu3 %vm842_vm8, %v1767_v27 }
 0xbaa   : > { %v1762_v31 = vpop.f32.mrf.mxu3 }
 0xbab   : > { %v1768_v35 = vmul.f32 %v3012_v30, %v1762_v31  ;;  %v2924_v36 = vpop.permute.xlu2 %2923  ;;  %v2067_v42 = vpop.permute.xlu1 %2066 }
 0xbac   : > { %v2925_v37 = vunpack.i.l.bf16 %v2924_v36  ;;  %2789 = vmatmul.msk.f32.gmra.mxu2 %vm842_vm8, %v1934_v34  ;;  %v2926_v38 = vunpack.i.h.bf16 %v2924_v36 }
 0xbad   : > { %2785 = vmatmul.msk.f32.gmra.mxu3 %vm842_vm8, %v1768_v35 }
 0xbae   : > { %1860 = vmatpush.msrb.mxu0 %v2925_v37 }
 0xbb0   : > { %1861 = vmatpush.msrb.mxu0 %v2926_v38 }
 0xbb5   : > { %2796 = vmatmul.msk.f32.vlgmr.msrb.gmra.mxu3 %vm842_vm8, %v2065_v22  ;;  %v2764_v22 = vld [vmem:[%s4277_s6 + $0x50] sm:$0xff] }
 0xbba   : > { %v1802_v39 = vpop.f32.mrf.mxu2 }
 0xbbb   : > { %v1808_v41 = vmul.f32 0.25, %v1802_v39 }
 0xbbd   : > { %v1810_v43 = vsel %vm3443_vm9, %v1808_v41, -1e+30  ;;  %2797 = vmatmul.msk.f32.gmra.mxu3 %vm842_vm8, %v2067_v42 }
 0xbbe   : > { %v1812_v45 = vadd.f32 %v3809_v57, %v1810_v43 }
 0xbc0   : > { %v1814_v46 = vsel %vm842_vm8, %v1812_v45, -inf }
 0xbc1   : > { %1815 = vmax.xlane.f32.xlu1 %v1814_v46 }
 0xbc2   : > { %v1805_v47 = vpop.f32.mrf.mxu2 }
 0xbc3   : > { %v1809_v63 = vmul.f32 0.25, %v1805_v47 }
 0xbc5   : > { %v1811_v48 = vsel %vm3451_vm10, %v1809_v63, -1e+30 }
 0xbc6   : > { %v1813_v49 = vadd.f32 %v3809_v57, %v1811_v48 }
 0xbc8   : > { %v1817_v51 = vsel %vm842_vm8, %v1813_v49, -inf }
 0xbc9   : > { %1818 = vmax.xlane.f32.xlu0 %v1817_v51 }
 0xc27   : > { %v1964_v52 = vpop.f32.mrf.mxu2 }
 0xc28   : > { %v1970_v53 = vmul.f32 0.25, %v1964_v52  ;;  %v3860_v54 = vpop.f32.mrf.mxu3 }
 0xc2a   : > { %v1972_v20 = vsel %vm3443_vm9, %v1970_v53, -1e+30 }
 0xc2b   : > { %v1974_v55 = vadd.f32 %v3809_v57, %v1972_v20 }
 0xc2d   : > { %v1976_v56 = vsel %vm842_vm8, %v1974_v55, -inf }
 0xc2e   : > { %1977 = vmax.xlane.f32.xlu1 %v1976_v56 }
 0xc2f   : > { %v1967_v58 = vpop.f32.mrf.mxu2 }
 0xc30   : > { %v1971_v59 = vmul.f32 0.25, %v1967_v58  ;;  %v3866_v60 = vpop.f32.mrf.mxu3 }
 0xc32   : > { %v1973_v61 = vsel %vm3451_vm10, %v1971_v59, -1e+30 }
 0xc33   : > { %v1975_v62 = vadd.f32 %v3809_v57, %v1973_v61  ;;  %v2769_v61 = vld [vmem:[%s4277_s6 + $0x78] sm:$0xff] }
 0xc34   : > { %v1816_v1 = vpop.xlane.xlu1 %1815 }
 0xc35   : > { %v1820_v3 = vsub.f32 %v1812_v45, %v1816_v1  ;;  %v1979_v4 = vsel %vm842_vm8, %v1975_v62, -inf  ;;  %v2767_v1 = vld [vmem:[%s4277_s6 + $0x68] sm:$0xff] }
 0xc36   : > { %1980 = vmax.xlane.f32.xlu0 %v1979_v4 }
 0xc37   : > { %v1822_v32 = vmul.f32 1.442695, %v1820_v3  ;;  %v2766_v3 = vld [vmem:[%s4277_s6 + $0x60] sm:$0xff] }
 0xc38   : > { %v2097_v50 = vpop.f32.mrf.mxu3 }
 0xc39   : > { %3013 = vpow2.f32 %v1822_v32  ;;  %v2103_v5 = vmul.f32 0.25, %v2097_v50 }
 0xc3b   : > { %v2105_v7 = vsel %vm3443_vm9, %v2103_v5, -1e+30 }
 0xc3c   : > { %v1819_v0 = vpop.xlane.xlu0 %1818  ;;  %v2107_v33 = vadd.f32 %v3809_v57, %v2105_v7 }
 0xc3d   : > { %v1821_v8 = vsub.f32 %v1813_v49, %v1819_v0 }
 0xc3e   : > { %v2109_v9 = vsel %vm842_vm8, %v2107_v33, -inf }
 0xc3f   : > { %v3014_v11 = vpop.eup %3013  ;;  %v1824_v12 = vmul.f32 1.442695, %v1821_v8  ;;  %2110 = vmax.xlane.f32.xlu2 %v2109_v9 }
 0xc40   : > { %2780 = vmatmul.msk.f32.vlgmr.msrb.gmra.mxu0 %vm842_vm8, %v3014_v11  ;;  %v2100_v13 = vpop.f32.mrf.mxu3  ;;  %v1826_v17 = vsel %vm842_vm8, %v3014_v11, 0.0 }
 0xc41   : > { %3015 = vpow2.f32 %v1824_v12  ;;  %v2104_v2 = vmul.f32 0.25, %v2100_v13 }
 0xc43   : > { %v2106_v14 = vsel %vm3451_vm10, %v2104_v2, -1e+30 }
 0xc44   : > { %v2108_v21 = vadd.f32 %v3809_v57, %v2106_v14  ;;  %v2765_v57 = vld [vmem:[%s4277_s6 + $0x58] sm:$0xff] }
 0xc45   : > { %1893 = vmatpush.msra.mxu1 %v2765_v57 }
 0xc46   : > { %v2112_v15 = vsel %vm842_vm8, %v2108_v21, -inf }
 0xc47   : > { %v3016_v16 = vpop.eup %3015  ;;  %2928 = vrot.lane.b32.xlu1 %v3783_v6, %s4288_s4  ;;  %2113 = vmax.xlane.f32.xlu0 %v2112_v15  ;;  %s2557_s4 = scalar_lea.sflag [#allocation5], %s4130_s19 }
 0xc48   : > { %1827 = vadd.xlane.f32.xlu2 %v1826_v17  ;;  %2781 = vmatmul.msk.f32.gmra.mxu0 %vm842_vm8, %v3016_v16  ;;  %v1829_v18 = vsel %vm842_vm8, %v3016_v16, 0.0 }
 0xc49   : > { %1894 = vmatpush.msra.mxu1 %v2764_v22 }
 0xc4b   : > { %2053 = vmatpush.msrb.mxu1 %v2767_v1 }
 0xc4d   : > { %2054 = vmatpush.msrb.mxu1 %v2766_v3 }
 0xc50   : > { %1830 = vadd.xlane.f32.xlu2 %v1829_v18 }
 0xc5b   : > { %2933 = vrot.lane.b32.xlu0 %v3783_v6, %s4287_s26  ;;  %s2585_s26 = scalar_lea.hbm %s4289_s2, %s2849_s23  ;;  %s3070_s23 = scalar_lea.hbm %s4290_s0, 32 }
 0xc5c   : > { %s2588_s20 = sshll.u32 %s2585_s26, 4  ;;  %s2589_s20 = int_to_ptr.hbm [resolvable:$true] %s2588_s20 }
 0xc5d   : > { %s3064_s1 = sshra.s32 %s2589_s20, 4  ;;  %s3065_s1 = int_to_ptr.hbm [resolvable:$true] %s3064_s1 }
 0xc5e   : > { %p3071_p0 = scmp.lt.s32.totalorder %s3065_s1, %s4290_s0 }
 0xca1   : > { %v1978_v28 = vpop.xlane.xlu1 %1977 }
 0xca2   : > { %v1982_v19 = vsub.f32 %v1974_v55, %v1978_v28 }
 0xca4   : > { %v1984_v23 = vmul.f32 1.442695, %v1982_v19 }
 0xca6   : > { %3017 = vpow2.f32 %v1984_v23  ;;  %v2947_v23 = vld [vmem:[%s4278_s7 + $0x1] ss:$0 sm:$0xff] }
 0xca9   : > { %v1981_v24 = vpop.xlane.xlu0 %1980 }
 0xcaa   : > { %v1983_v25 = vsub.f32 %v1975_v62, %v1981_v24  ;;  %v2768_v62 = vld [vmem:[%s4277_s6 + $0x70] sm:$0xff]  ;;  %s3066_s6 = scalar_lea.hbm %s3065_s1, 16 }
 0xcab   : > { %p3067_p11 = scmp.ne.s32.totalorder %s3065_s1, %s3066_s6  ;;  %p3072_p1 = scmp.lt.s32.totalorder %s3070_s23, %s3066_s6 }
 0xcac   : > { %v3018_v26 = vpop.eup %3017  ;;  %v1986_v27 = vmul.f32 1.442695, %v1983_v25 }
 0xcad   : > { %v1988_v6 = vsel %vm842_vm8, %v3018_v26, 0.0  ;;  %p3068_p12 = pnand %p3067_p11, %p3305_p5  ;;  %p3073_p2 = por %p3072_p1, %p3071_p0 }
 0xcae   : > { %3019 = vpow2.f32 %v1986_v27  ;;  %1989 = vadd.xlane.f32.xlu1 %v1988_v6 }
 0xcaf   : > { %p3069_p13 = pneg %p3068_p12 }
 0xcb1   : > { %p3074_p3 = pnand %p3073_p2, %p3069_p13 }
 0xcb2   : > { %v2111_v29 = vpop.xlane.xlu2 %2110 }
 0xcb3   : > { %v2115_v30 = vsub.f32 %v2107_v33, %v2111_v29 }
 0xcb4   : > { %v3020_v31 = vpop.eup %3019 }
 0xcb5   : > { %v2117_v34 = vmul.f32 1.442695, %v2115_v30  ;;  %v1991_v35 = vsel %vm842_vm8, %v3020_v31, 0.0 }
 0xcb6   : > { %1992 = vadd.xlane.f32.xlu0 %v1991_v35 }
 0xcb7   : > { %3021 = vpow2.f32 %v2117_v34 }
 0xcb9   : > { %v2929_v36 = vpop.permute.xlu1 %2928 }
 0xcba   : > { %v2930_v37 = vunpack.i.l.bf16 %v2929_v36  ;;  %v2114_v38 = vpop.xlane.xlu0 %2113  ;;  %v2931_v42 = vunpack.i.h.bf16 %v2929_v36 }
 0xcbb   : > { %v2116_v39 = vsub.f32 %v2108_v21, %v2114_v38  ;;  %v1828_v41 = vpop.xlane.xlu2 %1827 }
 0xcbc   : > { %3023 = vrcp.f32 %v1828_v41  ;;  %2153 = vmatpush.msra.mxu2 %v2930_v37 }
 0xcbd   : > { %v3022_v43 = vpop.eup %3021  ;;  %v2119_v45 = vmul.f32 1.442695, %v2116_v39  ;;  %v1863_v47 = vpop.f32.mrf.mxu0 }
 0xcbe   : > { %2154 = vmatpush.msra.mxu2 %v2931_v42  ;;  %v2121_v46 = vsel %vm842_vm8, %v3022_v43, 0.0 }
 0xcbf   : > { %3025 = vpow2.f32 %v2119_v45  ;;  %2122 = vadd.xlane.f32.xlu2 %v2121_v46  ;;  %2798 = vmatmul.msk.f32.vlgmr.msra.gmra.mxu2 %vm842_vm8, %v3022_v43  ;;  %v2812_v45 = vld [vmem:[%s4279_s10 + $0x78] sm:$0xff]  ;;  %v2811_v46 = vld [vmem:[%s4279_s10 + $0x70] sm:$0xff] }
 0xcc2   : > { %v3024_v63 = vpop.eup %3023 }
 0xcc3   : > { %v1871_v48 = vmul.f32 %v3024_v63, %v1863_v47  ;;  %v1831_v49 = vpop.xlane.xlu2 %1830  ;;  %v2810_v47 = vld [vmem:[%s4279_s10 + $0x68] sm:$0xff]  ;;  %v2809_v63 = vld [vmem:[%s4279_s10 + $0x60] sm:$0xff] }
 0xcc4   : > { %3027 = vrcp.f32 %v1831_v49  ;;  %v2807_v49 = vld [vmem:[%s4279_s10 + $0x50] sm:$0xff] }
 0xcc5   : > { %v3026_v51 = vpop.eup %3025  ;;  %2782 = vmatmul.msk.f32.vlgmr.msra.gmra.mxu1 %vm842_vm8, %v1871_v48  ;;  %v1866_v20 = vpop.f32.mrf.mxu0  ;;  %v2808_v48 = vld [vmem:[%s4279_s10 + $0x58] sm:$0xff] }
 0xcc6   : > { %v2124_v52 = vsel %vm842_vm8, %v3026_v51, 0.0  ;;  %2292 = vmatpush.msra.mxu1 %v2812_v45 }
 0xcc7   : > { %2125 = vadd.xlane.f32.xlu2 %v2124_v52  ;;  %2799 = vmatmul.msk.f32.gmra.mxu2 %vm842_vm8, %v3026_v51  ;;  %v2806_v51 = vld [vmem:[%s4279_s10 + $0x48] sm:$0xff]  ;;  %v2805_v52 = vld [vmem:[%s4279_s10 + $0x40] sm:$0xff] }
 0xcc8   : > { %2293 = vmatpush.msra.mxu1 %v2811_v46 }
 0xcca   : > { %v3028_v53 = vpop.eup %3027  ;;  %2294 = vmatpush.msra.mxu1 %v2810_v47 }
 0xccb   : > { %v1872_v55 = vmul.f32 %v3028_v53, %v1866_v20 }
 0xccc   : > { %2295 = vmatpush.msra.mxu1 %v2809_v63 }
 0xccd   : > { %2783 = vmatmul.msk.f32.gmra.mxu1 %vm842_vm8, %v1872_v55  ;;  %v2934_v56 = vpop.permute.xlu0 %2933 }
 0xcce   : > { %v2935_v58 = vunpack.i.l.bf16 %v2934_v56  ;;  %v2936_v59 = vunpack.i.h.bf16 %v2934_v56  ;;  %2296 = vmatpush.msra.mxu1 %v2808_v48  ;;  %v2831_v56 = vld [vmem:[%s4206_s12 + $0xf8] sm:$0xff] }
 0xccf   : > { %2342 = vmatpush.msra.mxu3 %v2831_v56 }
 0xcd0   : > { %2020 = vmatpush.msra.mxu0 %v2935_v58  ;;  %2297 = vmatpush.msra.mxu1 %v2807_v49  ;;  %v2830_v58 = vld [vmem:[%s4206_s12 + $0xf0] sm:$0xff] }
 0xcd1   : > { %2343 = vmatpush.msra.mxu3 %v2830_v58 }
 0xcd2   : > { %2021 = vmatpush.msra.mxu0 %v2936_v59  ;;  %2298 = vmatpush.msra.mxu1 %v2806_v51  ;;  %v2829_v59 = vld [vmem:[%s4206_s12 + $0xe8] sm:$0xff] }
 0xcd3   : > { %2790 = vmatmul.msk.f32.vlgmr.msra.gmra.mxu0 %vm842_vm8, %v3018_v26  ;;  %2344 = vmatpush.msra.mxu3 %v2829_v59 }
 0xcd4   : > { %2186 = vmatpush.msrb.mxu0 %v2769_v61  ;;  %2299 = vmatpush.msra.mxu1 %v2805_v52 }
 0xcd6   : > { %2187 = vmatpush.msrb.mxu0 %v2768_v62 }
 0xcdb   : > { %2791 = vmatmul.msk.f32.gmra.mxu0 %vm842_vm8, %v3020_v31 }
 0xd21   : > { %v1990_v0 = vpop.xlane.xlu1 %1989 }
 0xd29   : > { %v1993_v11 = vpop.xlane.xlu0 %1992 }
 0xd32   : > { %v2123_v4 = vpop.xlane.xlu2 %2122 }
 0xd33   : > { %3029 = vrcp.f32 %v2123_v4 }
 0xd39   : > { %v3030_v50 = vpop.eup %3029 }
 0xd3a   : > { %v2126_v32 = vpop.xlane.xlu2 %2125 }
 0xd3b   : > { %3031 = vrcp.f32 %v2126_v32 }
 0xd3c   : > { %3033 = vrcp.f32 %v1990_v0 }
 0xd3d   : > { %3035 = vrcp.f32 %v1993_v11 }
 0xd41   : > { %v3032_v33 = vpop.eup %3031 }
 0xd42   : > { %v2156_v5 = vpop.f32.mrf.mxu2  ;;  %v3034_v12 = vpop.eup %3033 }
 0xd43   : > { %v2164_v7 = vmul.f32 %v3030_v50, %v2156_v5  ;;  %v3036_v14 = vpop.eup %3035  ;;  %v1896_v16 = vpop.f32.mrf.mxu1 }
 0xd44   : > { %v1926_v18 = vadd.f32 %v3860_v54, %v1896_v16 }
 0xd45   : > { %2800 = vmatmul.msk.f32.vlgmr.msrb.gmra.mxu0 %vm842_vm8, %v2164_v7 }
 0xd4a   : > { %v2159_v8 = vpop.f32.mrf.mxu2 }
 0xd4b   : > { %v2165_v9 = vmul.f32 %v3032_v33, %v2159_v8  ;;  %v1899_v17 = vpop.f32.mrf.mxu1  ;;  %v2948_v8 = vld [vmem:[%s4280_s8 + $0x1] ss:$0 sm:$0xff] }
 0xd4c   : > { %v1929_v25 = vadd.f32 %v3866_v60, %v1899_v17 }
 0xd4d   : > { %2801 = vmatmul.msk.f32.gmra.mxu0 %vm842_vm8, %v2165_v9 }
 0xd50   : > { %v2023_v13 = vpop.f32.mrf.mxu0 }
 0xd51   : > { %v2031_v2 = vmul.f32 %v3034_v12, %v2023_v13  ;;  %v2949_v13 = vld [vmem:[%s4281_s9 + $0x1] ss:$0 sm:$0xff] }
 0xd53   : > { %2792 = vmatmul.msk.f32.vlgmr.msrb.gmra.mxu1 %vm842_vm8, %v2031_v2 }
 0xd58   : > { %v2026_v21 = vpop.f32.mrf.mxu0 }
 0xd59   : > { %v2032_v15 = vmul.f32 %v3036_v14, %v2026_v21 }
 0xd5b   : > { %2793 = vmatmul.msk.f32.gmra.mxu1 %vm842_vm8, %v2032_v15 }
 0xdc2   : > { %v2189_v28 = vpop.f32.mrf.mxu0 }
 0xdca   : > { %v2192_v54 = vpop.f32.mrf.mxu0 }
 0xdd0   : > { %v2056_v57 = vpop.f32.mrf.mxu1 }
 0xdd1   : > { %v2062_v19 = vadd.f32 %v2056_v57, %v1926_v18 }
 0xdd3   : > { %v2195_v22 = vadd.f32 %v2189_v28, %v2062_v19  ;;  %v2828_v19 = vld [vmem:[%s4206_s12 + $0xe0] sm:$0xff] }
 0xdd4   : > { %2345 = vmatpush.msra.mxu3 %v2828_v19 }
 0xdd5   : > { %v2197_v24 = vadd.f32 %v2195_v22, %v3687_v40  ;;  %v2827_v22 = vld [vmem:[%s4206_s12 + $0xd8] sm:$0xff] }
 0xdd6   : > { %2346 = vmatpush.msra.mxu3 %v2827_v22 }
 0xdd7   : > { %v3926_v26 = vadd.f32 %v2947_v23, %v2197_v24  ;;  %v2825_v24 = vld [vmem:[%s4206_s12 + $0xc8] sm:$0xff] }
 0xdd8   : > { %v2059_v27 = vpop.f32.mrf.mxu1 }
 0xdd9   : > { %v2063_v6 = vadd.f32 %v2059_v27, %v1929_v25  ;;  %v2210_v29 = vsel %vm692_vm0, %v3926_v26, 0.0  ;;  %v2824_v25 = vld [vmem:[%s4206_s12 + $0xc0] sm:$0xff]  ;;  %v2823_v27 = vld [vmem:[%s4206_s12 + $0xb8] sm:$0xff] }
 0xdda   : > { %2211 = vadd.xlane.f32.xlu2 %v2210_v29  ;;  %v2821_v29 = vld [vmem:[%s4206_s12 + $0xa8] sm:$0xff] }
 0xddb   : > { %v2196_v30 = vadd.f32 %v2192_v54, %v2063_v6  ;;  %v2822_v6 = vld [vmem:[%s4206_s12 + $0xb0] sm:$0xff]  ;;  %v2820_v54 = vld [vmem:[%s4206_s12 + $0xa0] sm:$0xff] }
 0xddd   : > { %v2198_v31 = vadd.f32 %v2196_v30, %v3692_v44  ;;  %v2819_v30 = vld [vmem:[%s4206_s12 + $0x98] sm:$0xff] }
 0xddf   : > { %v3931_v34 = vadd.f32 %v2947_v23, %v2198_v31  ;;  %v2826_v23 = vld [vmem:[%s4206_s12 + $0xd0] sm:$0xff] }
 0xde0   : > { %2347 = vmatpush.msra.mxu3 %v2826_v23  ;;  %v2818_v31 = vld [vmem:[%s4206_s12 + $0x90] sm:$0xff] }
 0xde1   : > { %v2213_v35 = vsel %vm692_vm0, %v3931_v34, 0.0 }
 0xde2   : > { %2214 = vadd.xlane.f32.xlu2 %v2213_v35  ;;  %2348 = vmatpush.msra.mxu3 %v2825_v24  ;;  %v2817_v35 = vld [vmem:[%s4206_s12 + $0x88] sm:$0xff]  ;;  %v2485_v24 = vld [vmem:[%s4212_s18 + $0x70] sm:$0xff] }
 0xde3   : > { %2507 = vmatpush.msra.mxu0 %v2485_v24 }
 0xde4   : > { %2349 = vmatpush.msra.mxu3 %v2824_v25  ;;  %v2486_v25 = vld [vmem:[%s4212_s18 + $0x78] sm:$0xff] }
 0xde5   : > { %2530 = vmatpush.msrb.mxu1 %v2486_v25 }
 0xde6   : > { %2350 = vmatpush.msra.mxu3 %v2823_v27  ;;  %v2483_v27 = vld [vmem:[%s4212_s18 + $0x60] sm:$0xff] }
 0xde7   : > { %2508 = vmatpush.msra.mxu0 %v2483_v27 }
 0xde8   : > { %2351 = vmatpush.msra.mxu3 %v2822_v6  ;;  %v2484_v6 = vld [vmem:[%s4212_s18 + $0x68] sm:$0xff] }
 0xde9   : > { %2531 = vmatpush.msrb.mxu1 %v2484_v6 }
 0xdea   : > { %2352 = vmatpush.msra.mxu3 %v2821_v29  ;;  %v2481_v29 = vld [vmem:[%s4212_s18 + $0x50] sm:$0xff] }
 0xdeb   : > { %2509 = vmatpush.msra.mxu0 %v2481_v29 }
 0xdec   : > { %2353 = vmatpush.msra.mxu3 %v2820_v54  ;;  %v2482_v54 = vld [vmem:[%s4212_s18 + $0x58] sm:$0xff] }
 0xded   : > { %2532 = vmatpush.msrb.mxu1 %v2482_v54 }
 0xdee   : > { %2354 = vmatpush.msra.mxu3 %v2819_v30 }
 0xdf0   : > { %2355 = vmatpush.msra.mxu3 %v2818_v31 }
 0xdf2   : > { %2356 = vmatpush.msra.mxu3 %v2817_v35  ;;  %v2479_v35 = vld [vmem:[%s4212_s18 + $0x40] sm:$0xff] }
 0xdf3   : > { %2510 = vmatpush.msra.mxu0 %v2479_v35 }
 0xe4d   : > { %v2212_v40 = vpop.xlane.xlu2 %2211 }
 0xe4e   : > { %v2216_v60 = vmul.f32 %v2212_v40, %v3333_v10  ;;  %v2816_v40 = vld [vmem:[%s4206_s12 + $0x80] sm:$0xff] }
 0xe4f   : > { %2357 = vmatpush.msra.mxu3 %v2816_v40  ;;  %v2480_v40 = vld [vmem:[%s4212_s18 + $0x48] sm:$0xff] }
 0xe50   : > { %v2218_v36 = vsub.f32 %v3926_v26, %v2216_v60  ;;  %v2950_v60 = vld [vmem:[%s4205_s11 + $0x1] ss:$0 sm:$0xff]  ;;  %2533 = vmatpush.msrb.mxu1 %v2480_v40 }
 0xe52   : > { %v2220_v37 = vmul.f32 %v2218_v36, %v2218_v36 }
 0xe54   : > { %v2222_v38 = vsel %vm692_vm0, %v2220_v37, 0.0 }
 0xe55   : > { %2223 = vadd.xlane.f32.xlu2 %v2222_v38  ;;  %v2215_v39 = vpop.xlane.xlu2 %2214 }
 0xe56   : > { %v2217_v41 = vmul.f32 %v2215_v39, %v3333_v10 }
 0xe58   : > { %v2219_v44 = vsub.f32 %v3931_v34, %v2217_v41 }
 0xe5a   : > { %v2221_v42 = vmul.f32 %v2219_v44, %v2219_v44 }
 0xe5c   : > { %v2225_v43 = vsel %vm692_vm0, %v2221_v42, 0.0 }
 0xe5d   : > { %2226 = vadd.xlane.f32.xlu1 %v2225_v43 }
 0xec8   : > { %v2224_v53 = vpop.xlane.xlu2 %2223 }
 0xec9   : > { %v2228_v20 = vmul.f32 %v2224_v53, %v3333_v10 }
 0xecb   : > { %v2230_v55 = vadd.f32 1e-05, %v2228_v20 }
 0xecd   : > { %3037 = vrsqrt.f32 %v2230_v55  ;;  %vm2238_vm9 = vweird.f32 %v2230_v55 }
 0xed0   : > { %v2227_v61 = vpop.xlane.xlu1 %2226 }
 0xed1   : > { %v2229_v62 = vmul.f32 %v2227_v61, %v3333_v10  ;;  %v2951_v61 = vld [vmem:[%s4207_s13 + $0x1] ss:$0 sm:$0xff] }
 0xed3   : > { %v3038_v1 = vpop.eup %3037  ;;  %v2231_v3 = vadd.f32 1e-05, %v2229_v62 }
 0xed4   : > { %v2233_v4 = vmul.f32 %v3038_v1, %v2230_v55  ;;  %vm2239_vm8 = vweird.f32 %v3038_v1 }
 0xed5   : > { %3039 = vrsqrt.f32 %v2231_v3  ;;  %vm2240_vm10 = vmor %vm2238_vm9, %vm2239_vm8  ;;  %vm2248_vm12 = vweird.f32 %v2231_v3 }
 0xed6   : > { %v2234_v32 = vmul.f32 %v3038_v1, %v2233_v4 }
 0xed8   : > { %v2235_v50 = vmul.f32 0.5, %v2234_v32 }
 0xeda   : > { %v2236_v5 = vsub.f32 1.5, %v2235_v50 }
 0xedb   : > { %v3040_v7 = vpop.eup %3039 }
 0xedc   : > { %v2237_v0 = vmul.f32 %v3038_v1, %v2236_v5  ;;  %v2243_v33 = vmul.f32 %v3040_v7, %v2231_v3  ;;  %vm2249_vm11 = vweird.f32 %v3040_v7 }
 0xedd   : > { %vm2250_vm13 = vmor %vm2248_vm12, %vm2249_vm11 }
 0xede   : > { %v2241_v9 = vsel %vm2240_vm10, %v3038_v1, %v2237_v0  ;;  %v2244_v11 = vmul.f32 %v3040_v7, %v2243_v33 }
 0xedf   : > { %v2252_v12 = vmul.f32 %v2241_v9, %v2218_v36 }
 0xee0   : > { %v2245_v2 = vmul.f32 0.5, %v2244_v11 }
 0xee1   : > { %v2257_v14 = vmul.f32 %v2948_v8, %v2252_v12 }
 0xee2   : > { %v2246_v21 = vsub.f32 1.5, %v2245_v2 }
 0xee3   : > { %v2262_v15 = vadd.f32 %v2949_v13, %v2257_v14  ;;  %v2437_v14 = vld [vmem:[%s4210_s16 + $0x38] sm:$0xff] }
 0xee4   : > { %v2247_v16 = vmul.f32 %v3040_v7, %v2246_v21  ;;  %2456 = vmatpush.msrb.mxu2 %v2437_v14  ;;  %v2436_v21 = vld [vmem:[%s4210_s16 + $0x30] sm:$0xff] }
 0xee5   : > { %2814 = vmatmul.msk.f32.vlgmr.msra.gmra.mxu1 %vm692_vm0, %v2262_v15  ;;  %v2435_v15 = vld [vmem:[%s4210_s16 + $0x28] sm:$0xff] }
 0xee6   : > { %v2251_v17 = vsel %vm2250_vm13, %v3040_v7, %v2247_v16  ;;  %2457 = vmatpush.msrb.mxu2 %v2436_v21  ;;  %v2434_v16 = vld [vmem:[%s4210_s16 + $0x20] sm:$0xff] }
 0xee7   : > { %v2253_v18 = vmul.f32 %v2251_v17, %v2219_v44  ;;  %v2433_v17 = vld [vmem:[%s4210_s16 + $0x18] sm:$0xff] }
 0xee8   : > { %2458 = vmatpush.msrb.mxu2 %v2435_v15 }
 0xee9   : > { %v2258_v28 = vmul.f32 %v2948_v8, %v2253_v18  ;;  %v2432_v18 = vld [vmem:[%s4210_s16 + $0x10] sm:$0xff] }
 0xeea   : > { %2459 = vmatpush.msrb.mxu2 %v2434_v16 }
 0xeeb   : > { %v2263_v57 = vadd.f32 %v2949_v13, %v2258_v28  ;;  %v2431_v28 = vld [vmem:[%s4210_s16 + $0x8] sm:$0xff] }
 0xeec   : > { %2460 = vmatpush.msrb.mxu2 %v2433_v17 }
 0xeed   : > { %2815 = vmatmul.msk.f32.gmra.mxu1 %vm692_vm0, %v2263_v57  ;;  %v2430_v57 = vld [vmem:[%s4210_s16] sm:$0xff] }
 0xeee   : > { %2461 = vmatpush.msrb.mxu2 %v2432_v18 }
 0xef0   : > { %2462 = vmatpush.msrb.mxu2 %v2431_v28 }
 0xef2   : > { %2463 = vmatpush.msrb.mxu2 %v2430_v57 }
 0xf62   : > { %v2301_v36 = vpop.f32.mrf.mxu1 }
 0xf63   : > { %v2302_v37 = vadd.f32 %v2950_v60, %v2301_v36 }
 0xf65   : > { %v2307_v38 = vmul.f32 %v2302_v37, %v2302_v37 }
 0xf67   : > { %v2309_v39 = vmul.f32 %v2307_v38, %v2302_v37 }
 0xf69   : > { %v2311_v41 = vmul.f32 0.044715, %v2309_v39  ;;  %v2475_v39 = vld [vmem:[%s4212_s18 + $0x20] sm:$0xff] }
 0xf6a   : > { %v2304_v44 = vpop.f32.mrf.mxu1 }
 0xf6b   : > { %v2313_v42 = vadd.f32 %v2311_v41, %v2302_v37  ;;  %v2305_v43 = vadd.f32 %v2950_v60, %v2304_v44  ;;  %v2476_v41 = vld [vmem:[%s4212_s18 + $0x28] sm:$0xff] }
 0xf6d   : > { %v2315_v45 = vmul.f32 0.7978846, %v2313_v42  ;;  %v2308_v46 = vmul.f32 %v2305_v43, %v2305_v43 }
 0xf6f   : > { %3041 = vtanh.f32 %v2315_v45  ;;  %v2310_v47 = vmul.f32 %v2308_v46, %v2305_v43 }
 0xf71   : > { %v2312_v63 = vmul.f32 0.044715, %v2310_v47 }
 0xf73   : > { %v2314_v48 = vadd.f32 %v2312_v63, %v2305_v43  ;;  %v2952_v63 = vld [vmem:[%s4208_s14] ss:$0 sm:$0xff] }
 0xf75   : > { %v3042_v49 = vpop.eup %3041  ;;  %v2316_v51 = vmul.f32 0.7978846, %v2314_v48 }
 0xf76   : > { %v2319_v52 = vadd.f32 1.0, %v3042_v49 }
 0xf77   : > { %3043 = vtanh.f32 %v2316_v51 }
 0xf78   : > { %v2321_v53 = vmul.f32 0.5, %v2319_v52  ;;  %v2953_v52 = vld [vmem:[%s4209_s15] ss:$0 sm:$0xff] }
 0xf7a   : > { %v2323_v20 = vmul.f32 %v2321_v53, %v2302_v37  ;;  %v2477_v37 = vld [vmem:[%s4212_s18 + $0x30] sm:$0xff] }
 0xf7b   : > { %2511 = vmatpush.msra.mxu0 %v2477_v37 }
 0xf7c   : > { %2358 = vmatmul.f32.vlgmr.msra.gmra.mxu3 %v2323_v20 }
 0xf7d   : > { %v3044_v55 = vpop.eup %3043  ;;  %2512 = vmatpush.msra.mxu0 %v2475_v39 }
 0xf7e   : > { %v2320_v56 = vadd.f32 1.0, %v3044_v55 }
 0xf80   : > { %v2322_v58 = vmul.f32 0.5, %v2320_v56 }
 0xf82   : > { %v2324_v59 = vmul.f32 %v2322_v58, %v2305_v43 }
 0xf84   : > { %2361 = vmatmul.f32.gmra.mxu3 %v2324_v59 }
 0xfff   : > { %v2359_v62 = vpop.f32.mrf.mxu3 }
0x1000   : > { %v2365_v1 = vadd.f32 %v2359_v62, %v3926_v26 }
0x1002   : > { %v2372_v3 = vadd.f32 %v2951_v61, %v2365_v1 }
0x1004   : > { %v2376_v4 = vsel %vm692_vm0, %v2372_v3, 0.0 }
0x1005   : > { %2377 = vadd.xlane.f32.xlu2 %v2376_v4  ;;  %v2474_v4 = vld [vmem:[%s4212_s18 + $0x18] sm:$0xff] }
0x1007   : > { %v2362_v32 = vpop.f32.mrf.mxu3 }
0x1008   : > { %v2366_v50 = vadd.f32 %v2362_v32, %v3931_v34  ;;  %v2471_v32 = vld [vmem:[%s4212_s18] sm:$0xff] }
0x100a   : > { %v2373_v5 = vadd.f32 %v2951_v61, %v2366_v50  ;;  %v2472_v50 = vld [vmem:[%s4212_s18 + $0x8] sm:$0xff] }
0x100c   : > { %v2379_v7 = vsel %vm692_vm0, %v2373_v5, 0.0 }
0x100d   : > { %2380 = vadd.xlane.f32.xlu0 %v2379_v7 }
0x1078   : > { %v2378_v0 = vpop.xlane.xlu2 %2377 }
0x1079   : > { %v2382_v33 = vmul.f32 %v2378_v0, %v3333_v10 }
0x107b   : > { %v4034_v8 = vsub.f32 %v2372_v3, %v2382_v33  ;;  %v2473_v3 = vld [vmem:[%s4212_s18 + $0x10] sm:$0xff] }
0x107c   : > { %2513 = vmatpush.msra.mxu0 %v2473_v3 }
0x107d   : > { %v2386_v9 = vmul.f32 %v4034_v8, %v4034_v8 }
0x107e   : > { %2514 = vmatpush.msra.mxu0 %v2471_v32 }
0x107f   : > { %v2388_v26 = vsel %vm692_vm0, %v2386_v9, 0.0 }
0x1080   : > { %2389 = vadd.xlane.f32.xlu1 %v2388_v26  ;;  %v2381_v11 = vpop.xlane.xlu0 %2380 }
0x1081   : > { %v2383_v12 = vmul.f32 %v2381_v11, %v3333_v10 }
0x1083   : > { %v4040_v13 = vsub.f32 %v2373_v5, %v2383_v12  ;;  %v2954_v5 = vld [vmem:[%s4211_s17] ss:$0 sm:$0xff] }
0x1085   : > { %v2387_v34 = vmul.f32 %v4040_v13, %v4040_v13 }
0x1087   : > { %v2391_v2 = vsel %vm692_vm0, %v2387_v34, 0.0 }
0x1088   : > { %2392 = vadd.xlane.f32.xlu2 %v2391_v2 }
0x10f3   : > { %v2390_v19 = vpop.xlane.xlu1 %2389 }
0x10f4   : > { %v2394_v22 = vmul.f32 %v2390_v19, %v3333_v10 }
0x10f6   : > { %v2396_v23 = vadd.f32 1e-05, %v2394_v22 }
0x10f8   : > { %3045 = vrsqrt.f32 %v2396_v23  ;;  %vm2404_vm15 = vweird.f32 %v2396_v23 }
0x10fb   : > { %v2393_v30 = vpop.xlane.xlu2 %2392 }
0x10fc   : > { %v2395_v31 = vmul.f32 %v2393_v30, %v3333_v10  ;;  %v2478_v10 = vld [vmem:[%s4212_s18 + $0x38] sm:$0xff] }
0x10fd   : > { %2534 = vmatpush.msrb.mxu1 %v2478_v10 }
0x10fe   : > { %v3046_v60 = vpop.eup %3045  ;;  %v2397_v36 = vadd.f32 1e-05, %v2395_v31 }
0x10ff   : > { %v2399_v38 = vmul.f32 %v3046_v60, %v2396_v23  ;;  %2535 = vmatpush.msrb.mxu1 %v2476_v41  ;;  %vm2405_vm14 = vweird.f32 %v3046_v60 }
0x1100   : > { %3047 = vrsqrt.f32 %v2397_v36  ;;  %vm2406_vm1 = vmor %vm2404_vm15, %vm2405_vm14  ;;  %vm2414_vm3 = vweird.f32 %v2397_v36 }
0x1101   : > { %v2400_v44 = vmul.f32 %v3046_v60, %v2399_v38  ;;  %2536 = vmatpush.msrb.mxu1 %v2474_v4 }
0x1103   : > { %v2401_v42 = vmul.f32 0.5, %v2400_v44  ;;  %2537 = vmatpush.msrb.mxu1 %v2472_v50 }
0x1105   : > { %v2402_v43 = vsub.f32 1.5, %v2401_v42 }
0x1106   : > { %v3048_v45 = vpop.eup %3047 }
0x1107   : > { %v2403_v46 = vmul.f32 %v3046_v60, %v2402_v43  ;;  %v2409_v47 = vmul.f32 %v3048_v45, %v2397_v36  ;;  %vm2415_vm2 = vweird.f32 %v3048_v45 }
0x1108   : > { %vm2416_vm4 = vmor %vm2414_vm3, %vm2415_vm2 }
0x1109   : > { %v2407_v48 = vsel %vm2406_vm1, %v3046_v60, %v2403_v46  ;;  %v2410_v49 = vmul.f32 %v3048_v45, %v2409_v47 }
0x110a   : > { %v2418_v51 = vmul.f32 %v2407_v48, %v4034_v8 }
0x110b   : > { %v2411_v53 = vmul.f32 0.5, %v2410_v49 }
0x110c   : > { %v2423_v20 = vmul.f32 %v2952_v63, %v2418_v51 }
0x110d   : > { %v2412_v55 = vsub.f32 1.5, %v2411_v53 }
0x110e   : > { %v2428_v56 = vadd.f32 %v2953_v52, %v2423_v20 }
0x110f   : > { %v2413_v58 = vmul.f32 %v3048_v45, %v2412_v55 }
0x1110   : > { %2833 = vmatmul.msk.f32.vlgmr.msrb.gmra.mxu2 %vm692_vm0, %v2428_v56 }
0x1111   : > { %v2417_v59 = vsel %vm2416_vm4, %v3048_v45, %v2413_v58 }
0x1112   : > { %v2419_v61 = vmul.f32 %v2417_v59, %v4040_v13 }
0x1114   : > { %v2424_v62 = vmul.f32 %v2952_v63, %v2419_v61 }
0x1116   : > { %v2429_v1 = vadd.f32 %v2953_v52, %v2424_v62 }
0x1118   : > { %2834 = vmatmul.msk.f32.gmra.mxu2 %vm692_vm0, %v2429_v1 }
0x1193   : > { %v2465_v7 = vpop.f32.mrf.mxu2 }
0x1194   : > { %v2466_v0 = vadd.f32 %v2954_v5, %v2465_v7 }
0x1196   : > { %2545 = vst.msk [vmem:[%s671_s24] sm:$0xff] %vm692_vm0, %v2466_v0  ;;  %2835 = vmatmul.msk.f32.vlgmr.msra.gmra.mxu0 %vm692_vm0, %v2466_v0  ;;  %2837 = vmatmul.msk.f32.vlgmr.msrb.gmra.mxu1 %vm692_vm0, %v2466_v0 }
0x119b   : > { %v2468_v33 = vpop.f32.mrf.mxu2 }
0x119c   : > { %v2469_v8 = vadd.f32 %v2954_v5, %v2468_v33 }
0x119e   : > { %2546 = vst.msk [vmem:[%s671_s24 + $0x8] sm:$0xff] %vm692_vm0, %v2469_v8  ;;  %2836 = vmatmul.msk.f32.gmra.mxu0 %vm692_vm0, %v2469_v8  ;;  %2838 = vmatmul.msk.f32.gmra.mxu1 %vm692_vm0, %v2469_v8 }
0x119f   : > { %3077 = shalt.err (!%p3074_p3)
}
0x11a0   : > { %s3154_s2 = smov 128   ;;  %s3155_s26 = smov 8  }
0x11a1   : > { %2853 = dma.vmem_to_hbm [thread:$0]  (%p3305_p5), %s2587_s27, 256, %s2589_s20, %s2557_s4, %s3154_s2, %s3154_s2, %s3155_s26  }
0x11a2   : > { %s4291_s10 = sld [smem:[#allocation25_spill]]  ;;  %s2697_s7 = sshll.u32 %s4130_s19, 5 }
0x11a3   : > { %s2848_s6 = sshll.u32 %s3288_s3, 5  ;;  %s664_s1 = scalar_lea.vmem [#allocation2], %s2697_s7 }
0x11a4   : > { %s4292_s24 = sld [smem:[#allocation26_spill]]  ;;  %s2569_s20 = sshll.u32 %s664_s1, 4  ;;  %s2570_s20 = int_to_ptr.vmem [resolvable:$true] %s2569_s20 }
0x11a5   : > { %s2552_s9 = scalar_lea.sflag [#allocation3], %s4130_s19 }
0x11a8   : > { %v2487_v9 = vld [vmem:[%s4291_s10] sm:$0x3] }
0x11a9   : > { %v2489_v26 = vperm.slane %v2487_v9, 0  ;;  %v2490_v11 = vperm.slane %v2487_v9, 1 }
0x11aa   : > { %s2568_s27 = scalar_lea.hbm %s4292_s24, %s2848_s6  ;;  %s3098_s2 = scalar_lea.hbm %s4292_s24, 64 }
0x11ab   : > { %s2571_s8 = sshll.u32 %s2568_s27, 4  ;;  %s2572_s8 = int_to_ptr.hbm [resolvable:$true] %s2571_s8 }
0x11ac   : > { %s3092_s10 = sshra.s32 %s2572_s8, 4  ;;  %s3093_s10 = int_to_ptr.hbm [resolvable:$true] %s3092_s10 }
0x11ad   : > { %s3094_s3 = scalar_lea.hbm %s3093_s10, 32  ;;  %p3099_p9 = scmp.lt.s32.totalorder %s3093_s10, %s4292_s24 }
0x11ae   : > { %p3095_p4 = scmp.ne.s32.totalorder %s3093_s10, %s3094_s3  ;;  %p3100_p10 = scmp.lt.s32.totalorder %s3098_s2, %s3094_s3 }
0x11b0   : > { %p3096_p7 = pnand %p3095_p4, %p3305_p5  ;;  %p3101_p11 = por %p3100_p10, %p3099_p9 }
0x11b2   : > { %p3097_p8 = pneg %p3096_p7 }
0x11b4   : > { %p3102_p12 = pnand %p3101_p11, %p3097_p8 }
0x1213   : > { %v2516_v12 = vpop.f32.mrf.mxu0  ;;  %v2539_v13 = vpop.f32.mrf.mxu1 }
0x1214   : > { %v2517_v34 = vadd.f32 %v2516_v12, %v2489_v26  ;;  %v2540_v2 = vadd.f32 %v2539_v13, %v2490_v11 }
0x1216   : > { %2547 = vst [vmem:[%s664_s1] sm:$0xff] %v2517_v34 }
0x1217   : > { %2548 = vst [vmem:[%s664_s1 + $0x8] sm:$0xff] %v2540_v2 }
0x121b   : > { %v2519_v14 = vpop.f32.mrf.mxu0  ;;  %v2542_v21 = vpop.f32.mrf.mxu1 }
0x121c   : > { %v2520_v15 = vadd.f32 %v2519_v14, %v2489_v26  ;;  %v2543_v16 = vadd.f32 %v2542_v21, %v2490_v11 }
0x121e   : > { %2549 = vst [vmem:[%s664_s1 + $0x10] sm:$0xff] %v2520_v15 }
0x121f   : > { %2550 = vst [vmem:[%s664_s1 + $0x18] sm:$0xff] %v2543_v16 }
0x1220   : > { %3105 = shalt.err (!%p3102_p12)
}
0x1221   : > { %s3156_s19 = smov 256  }
0x1222   : > { %2852 = dma.vmem_to_hbm [thread:$0]  (%p3305_p5), %s2570_s20, 512, %s2572_s8, %s2552_s9, %s3156_s19, %s3156_s19, %s4285_s21  }
0x1223 PF: > { %s4293_s6 = sld [smem:[#allocation10_spill]] }
0x1224   : > { %s4294_s1 = sld [smem:[#allocation8_spill]] }
0x1229   : > { %p2863_p13 = scmp.ge.s32.totalorder %s4293_s6, 2 }
0x122a   : > { %s2603_s23 = sand.u32 1, %s4294_s1  }
0x122b   : > { %p2857_p0 = pnand %p2863_p13, %p3309_p6  ;;  %s2604_s27 = scalar_lea.sflag [#allocation3], %s2603_s23 }
0x122d   : > { %p2858_p1 = pneg %p2857_p0 }
0x122f   : > { %3123 = dma.done.wait (%p2858_p1), %s2604_s27, 512  }
0x1230   : > { %3125 = vsyncadd (%p2858_p1), %s2604_s27, 4294966784  ;;  %s2614_s10 = scalar_lea.sflag [#allocation5], %s2603_s23 }
0x1231   : > { %3127 = dma.done.wait (%p2858_p1), %s2614_s10, 256  }
0x1232   : > { %3129 = vsyncadd (%p2858_p1), %s2614_s10, 4294967040  ;;  %s4296_s27 = sld [smem:[#allocation11_spill]]  ;;  %s4299_s2 = smov %s3136_s25 }
0x1233   : > { %s4297_s5 = sld [smem:[#allocation9_spill]] }
0x1234   : > { %s4298_s26 = sld [smem:[#allocation12_spill]] }
0x1238   : > { %p35_p5 = scmp.ge.s32.totalorder %s4296_s27, 4  }
0x1239   : > { %s4300_s25 = smov %s4297_s5 }
0x123a   :  { %37 = sbr.rel (!%p35_p5) target bundleno = 20 (0x14), region = 167 }
0x123f   :  { %2620 = vsyncpa [#allocation3], 1 }
0x1240   :  { %2622 = vsyncpa [#allocation3 + $0x1], 1 }
0x1241   :  { %2623 = vsyncpa [#allocation5], 1 }
0x1242   :  { %2625 = vsyncpa [#allocation5 + $0x1], 1 }

</bundles_post_ra>
